<compile_context>
chip_gen: v7x
topology: tpu7x:2x2x1
jax: 0.10.0
libtpu: 0.0.40
codegen_flags: <defaults>
</compile_context>

<pallas_src>
import jax
import jax.numpy as jnp
from jax import lax
from jax.experimental import pallas as pl
from jax.experimental.pallas import tpu as pltpu


def _round_up(n, m):
    return ((n + m - 1) // m) * m


# ----------------------------------------------------------------------------
# Fused encoder + greedy attention-decoder kernel (everything VMEM-resident).
# ----------------------------------------------------------------------------
def las_fused_kernel(x_ref, enc_w_ih_ref, enc_w_hh_ref, enc_b_ref,
                     emb_ref, dec_w_ih_ref, dec_w_hh_ref, dec_b_ref,
                     w_c_ctx_ref, w_c_h_ref, w_o_ref, b_o_ref,
                     logp_ref,
                     x_proj_ref, enc_scr_ref):
    T, Bp, Fp = x_ref.shape
    Hp = enc_w_hh_ref.shape[0]
    Vp = emb_ref.shape[0]
    dec_T = logp_ref.shape[0]

    # ------------------------- Encoder: tanh-RNN --------------------------
    # Hoisted input projection: one [T*Bp,Fp]x[Fp,Hp] bf16 MXU matmul, staged
    # through VMEM so the unrolled recurrence reads one (8,128) tile per step
    # (bounds vreg live ranges under full unrolling).
    x_flat_bf = x_ref[...].reshape(T * Bp, Fp).astype(jnp.bfloat16)
    x_proj_ref[...] = jnp.dot(x_flat_bf, enc_w_ih_ref[...],
                              preferred_element_type=jnp.float32
                              ).reshape(T, Bp, Hp)

    enc_w_hh = enc_w_hh_ref[...]                              # bf16 [Hp,Hp]
    enc_b_b = jnp.broadcast_to(enc_b_ref[...], (Bp, Hp))      # hoisted f32 bcast

    h = jnp.zeros((Bp, Hp), jnp.float32)
    for t in range(T):                       # fully unrolled (static trip count)
        h = jnp.tanh(x_proj_ref[t]
                     + jnp.dot(h.astype(jnp.bfloat16), enc_w_hh,
                               preferred_element_type=jnp.float32)
                     + enc_b_b)
        enc_scr_ref[t] = h                   # dense (8,128) f32 store per step
    enc_h = h                                # final hidden [Bp,Hp]

    # --------------- Decoder: greedy attention decoding loop ---------------
    # Flattened encoder slab for full-shape MXU attention: [T*Bp, Hp] (128x128).
    enc_flat_bf = enc_scr_ref[...].reshape(T * Bp, Hp).astype(jnp.bfloat16)

    # Fold embedding through the decoder input projection AND the decoder input
    # bias (exact: one-hot selects exactly one row). One hoisted matmul.
    emb_proj_bf = (jnp.dot(emb_ref[...], dec_w_ih_ref[...],
                           preferred_element_type=jnp.float32)
                   + jnp.broadcast_to(dec_b_ref[...], (Vp, Hp))
                   ).astype(jnp.bfloat16)                     # [Vp, Hp]

    dec_w_hh = dec_w_hh_ref[...]                              # bf16
    w_c_ctx = w_c_ctx_ref[...]                                # bf16
    w_c_h = w_c_h_ref[...]                                    # bf16
    w_o = w_o_ref[...]                                        # bf16
    b_o_b = jnp.broadcast_to(b_o_ref[...], (Bp, Vp))          # hoisted f32 bcast

    SOS = 1
    ids_v = lax.broadcasted_iota(jnp.int32, (Bp, Vp), 1)
    # Hoisted attention mask: flattened column c = t*Bp + b belongs to batch row
    # b = c % Bp; row r only keeps its own columns.
    col_b = lax.broadcasted_iota(jnp.int32, (Bp, T * Bp), 1) % Bp
    row_b = lax.broadcasted_iota(jnp.int32, (Bp, T * Bp), 0)
    attn_mask = col_b == row_b                                # [Bp, T*Bp]
    NEG = jnp.float32(-1e30)

    h = enc_h
    sym = jnp.full((Bp, 1), SOS, jnp.int32)
    for t in range(dec_T):                   # fully unrolled (static trip count)
        # Embedding lookup as one-hot matmul against the folded (bias-included) table.
        # TODO(synk): for a large vocab replace with scalar-indexed row gathers.
        onehot = (sym == ids_v).astype(jnp.bfloat16)           # [Bp, Vp]
        x_t = jnp.dot(onehot, emb_proj_bf,
                      preferred_element_type=jnp.float32)      # [Bp, Hp]

        # decoder tanh-RNN cell (dec_b already folded into emb_proj)
        h = jnp.tanh(x_t + jnp.dot(h.astype(jnp.bfloat16), dec_w_hh,
                                   preferred_element_type=jnp.float32))
        h_bf = h.astype(jnp.bfloat16)

        # dot-product attention over encoder time as two full-shape MXU matmuls
        # against the flattened slab (no batched M=1 einsums).
        scores = lax.dot_general(h_bf, enc_flat_bf,
                                 (((1,), (1,)), ((), ())),
                                 preferred_element_type=jnp.float32)  # [Bp, T*Bp]
        scores = jnp.where(attn_mask, scores, NEG)
        m = jnp.max(scores, axis=-1, keepdims=True)
        p = jnp.exp(scores - m)
        attn = p / jnp.sum(p, axis=-1, keepdims=True)          # exact softmax
        ctx = jnp.dot(attn.astype(jnp.bfloat16), enc_flat_bf,
                      preferred_element_type=jnp.float32)      # [Bp, Hp]

        # combine (split weights, no lane-axis concatenate) + output projection
        comb = jnp.tanh(jnp.dot(ctx.astype(jnp.bfloat16), w_c_ctx,
                                preferred_element_type=jnp.float32)
                        + jnp.dot(h_bf, w_c_h,
                                  preferred_element_type=jnp.float32))
        logits = jnp.dot(comb.astype(jnp.bfloat16), w_o,
                         preferred_element_type=jnp.float32) + b_o_b

        # decode_function = log_softmax (f32 elementwise math)
        lmax = jnp.max(logits, axis=-1, keepdims=True)
        lse = jnp.log(jnp.sum(jnp.exp(logits - lmax), axis=-1, keepdims=True)) + lmax
        logp_ref[t] = logits - lse                             # dense (8,128) store

        # greedy symbol for feedback only (first-max tie-break); not stored —
        # the wrapper recomputes it as argmax over logp (same tie-break).
        sym = jnp.min(jnp.where(logits >= lmax, ids_v, Vp),
                      axis=-1, keepdims=True).astype(jnp.int32)  # [Bp, 1]


# ----------------------------------------------------------------------------
# Wrapper: pad to TPU-friendly (8-sublane, 128-lane) shapes, run the fused call.
# ----------------------------------------------------------------------------
def _pad2(w, rows, cols, fill=0.0, dtype=jnp.bfloat16):
    out = jnp.full((rows, cols), fill, dtype)
    return out.at[:w.shape[0], :w.shape[1]].set(w.astype(dtype))


def run_las(params, x_tbf, dec_T):
    T, B, F = x_tbf.shape
    H = params['enc_w_hh'].shape[0]
    V = params['emb'].shape[0]
    Bp = _round_up(B, 8)
    Fp = _round_up(F, 128)
    Hp = _round_up(H, 128)
    Vp = _round_up(V, 128)

    x_p = jnp.zeros((T, Bp, Fp), jnp.float32).at[:, :B, :F].set(x_tbf)

    # MXU operands in bf16; biases stay f32 (elementwise path).
    enc_w_ih = _pad2(params['enc_w_ih'], Fp, Hp)
    enc_w_hh = _pad2(params['enc_w_hh'], Hp, Hp)
    enc_b = _pad2(params['enc_b'], 1, Hp, dtype=jnp.float32)
    emb = _pad2(params['emb'], Vp, Hp)
    dec_w_ih = _pad2(params['dec_w_ih'], Hp, Hp)
    dec_w_hh = _pad2(params['dec_w_hh'], Hp, Hp)
    dec_b = _pad2(params['dec_b'], 1, Hp, dtype=jnp.float32)
    w_c_ctx = _pad2(params['w_c'][:H], Hp, Hp)    # applies to ctx   (concat part 1)
    w_c_h = _pad2(params['w_c'][H:], Hp, Hp)      # applies to h_new (concat part 2)
    w_o = _pad2(params['w_o'], Hp, Vp)
    # padded vocab columns get a huge negative bias: exp() underflows to 0 in the
    # softmax and they can never win the argmax.
    b_o = _pad2(params['b_o'], 1, Vp, fill=-1e30, dtype=jnp.float32)

    vmem = pl.BlockSpec(memory_space=pltpu.MemorySpace.VMEM)
    # Total VMEM footprint is well under 1 MiB, so this whole-array-resident plan
    # fits v5e/v6e (128 MiB) and v7x (64 MiB) without tiling.
    # TODO(synk): at B=2 a batch grid axis for v7x's second TensorCore would just
    #             duplicate padded work; add a parallel batch grid axis only for
    #             real batch sizes >= 16, and tile vocab/embedding at production
    #             V/H (emb/w_o no longer VMEM-resident).
    logp_p = pl.pallas_call(
        las_fused_kernel,
        out_shape=jax.ShapeDtypeStruct((dec_T, Bp, Vp), jnp.float32),
        in_specs=[vmem] * 12,
        out_specs=vmem,
        scratch_shapes=[pltpu.VMEM((T, Bp, Hp), jnp.float32),   # staged x_proj
                        pltpu.VMEM((T, Bp, Hp), jnp.float32)],  # encoder outputs
    )(x_p, enc_w_ih, enc_w_hh, enc_b, emb, dec_w_ih, dec_w_hh, dec_b,
      w_c_ctx, w_c_h, w_o, b_o)

    return logp_p[:, :B, :V]                                   # [dec_T, B, V]


def init_params(key, feat_dim, hidden, vocab):
    ks = jax.random.split(key, 9)
    s = 0.1
    return dict(
        enc_w_ih=s * jax.random.normal(ks[0], (feat_dim, hidden), jnp.float32),
        enc_w_hh=s * jax.random.normal(ks[1], (hidden, hidden), jnp.float32),
        enc_b=s * jax.random.normal(ks[2], (1, hidden), jnp.float32),
        emb=s * jax.random.normal(ks[3], (vocab, hidden), jnp.float32),
        dec_w_ih=s * jax.random.normal(ks[4], (hidden, hidden), jnp.float32),
        dec_w_hh=s * jax.random.normal(ks[5], (hidden, hidden), jnp.float32),
        dec_b=s * jax.random.normal(ks[6], (1, hidden), jnp.float32),
        w_c=s * jax.random.normal(ks[7], (2 * hidden, hidden), jnp.float32),
        w_o=s * jax.random.normal(ks[8], (hidden, vocab), jnp.float32),
        b_o=jnp.zeros((1, vocab), jnp.float32),
    )


def seq2seq_forward(params, input_variable, input_lengths=None,
                    target_variable=None, teacher_forcing_ratio=0, dec_T=8):
    # input_variable: [B, Feat_Dim, Feats_Len] (PyTorch layout)
    # TODO(synk): teacher forcing (random.random() draw) unused since
    #             teacher_forcing_ratio=0; input_lengths-based packed-sequence
    #             masking is not modeled (full-length encode/attend).
    x_tbf = jnp.transpose(input_variable, (2, 0, 1)).astype(jnp.float32)  # [T,B,F]
    logp = run_las(params, x_tbf, dec_T)                       # [dec_T, B, V]
    # torch.stack(decoder_outputs, dim=2): list of [B,V] -> [B, V, Dec_T]
    final_dec_outputs = jnp.transpose(logp, (1, 2, 0))
    # Greedy symbols recomputed from logp (same first-max tie-break as in-kernel);
    # torch.stack(sequence_symbols, dim=1).squeeze(): -> [B, Dec_T] for B > 1.
    final_sequence_symbols = jnp.transpose(
        jnp.argmax(logp, axis=-1).astype(jnp.int32), (1, 0))
    return final_dec_outputs, final_sequence_symbols


if __name__ == "__main__":
    B, FEAT, T_IN = 2, 8, 16
    HIDDEN, VOCAB, DEC_T = 32, 16, 8

    key = jax.random.PRNGKey(0)
    k_in, k_par = jax.random.split(key)
    input_variable = jax.random.normal(k_in, (B, FEAT, T_IN), jnp.float32)
    params = init_params(k_par, FEAT, HIDDEN, VOCAB)

    dec_out, seq_sym = seq2seq_forward(params, input_variable,
                                       teacher_forcing_ratio=0, dec_T=DEC_T)
    jax.block_until_ready((dec_out, seq_sym))

    assert dec_out.shape == (B, VOCAB, DEC_T)
    assert seq_sym.shape == (B, DEC_T)
    assert bool(jnp.all(jnp.isfinite(dec_out)))
    assert bool(jnp.all((seq_sym >= 0) & (seq_sym < VOCAB)))
    print("KERNEL_OK")
</pallas_src>

<mosaic_0001>
module attributes {stable_mosaic.version = 11 : i64} {
  func.func @las_fused_kernel(%arg0: memref<16x8x128xf32, #tpu.memory_space<vmem>>, %arg1: memref<128x128xbf16, #tpu.memory_space<vmem>>, %arg2: memref<128x128xbf16, #tpu.memory_space<vmem>>, %arg3: memref<1x128xf32, #tpu.memory_space<vmem>>, %arg4: memref<128x128xbf16, #tpu.memory_space<vmem>>, %arg5: memref<128x128xbf16, #tpu.memory_space<vmem>>, %arg6: memref<128x128xbf16, #tpu.memory_space<vmem>>, %arg7: memref<1x128xf32, #tpu.memory_space<vmem>>, %arg8: memref<128x128xbf16, #tpu.memory_space<vmem>>, %arg9: memref<128x128xbf16, #tpu.memory_space<vmem>>, %arg10: memref<128x128xbf16, #tpu.memory_space<vmem>>, %arg11: memref<1x128xf32, #tpu.memory_space<vmem>>, %arg12: memref<8x8x128xf32, #tpu.memory_space<vmem>>, %arg13: memref<16x8x128xf32, #tpu.memory_space<vmem>>, %arg14: memref<16x8x128xf32, #tpu.memory_space<vmem>>) attributes {dimension_semantics = [], scalar_prefetch = 0 : i64, scratch_operands = 2 : i64, tpu.core_type = #tpu.core_type<tc>} {
    %c0 = arith.constant 0 : index
    %c0_0 = arith.constant 0 : index
    %c0_1 = arith.constant 0 : index
    %0 = vector.load %arg0[%c0, %c0_0, %c0_1] : memref<16x8x128xf32, #tpu.memory_space<vmem>>, vector<16x8x128xf32>
    %1 = vector.shape_cast %0 : vector<16x8x128xf32> to vector<128x128xf32>
    %2 = arith.truncf %1 : vector<128x128xf32> to vector<128x128xbf16>
    %c0_2 = arith.constant 0 : index
    %c0_3 = arith.constant 0 : index
    %3 = vector.load %arg1[%c0_2, %c0_3] : memref<128x128xbf16, #tpu.memory_space<vmem>>, vector<128x128xbf16>
    %cst = arith.constant dense<0.000000e+00> : vector<128x128xf32>
    %4 = tpu.matmul %2, %3, %cst {dimension_numbers = #tpu.dot_dimension_numbers<[1], [0], [0], [1], [0, 0, 1, 1], [], []>} : vector<128x128xbf16>, vector<128x128xbf16>, vector<128x128xf32> -> vector<128x128xf32>
    %5 = vector.shape_cast %4 : vector<128x128xf32> to vector<16x8x128xf32>
    %c0_4 = arith.constant 0 : index
    %c0_5 = arith.constant 0 : index
    %c0_6 = arith.constant 0 : index
    %6 = vector.load %arg13[%c0_4, %c0_5, %c0_6] : memref<16x8x128xf32, #tpu.memory_space<vmem>>, vector<16x8x128xf32>
    tpu.vector_store %arg13[%c0_4, %c0_5, %c0_6], %5 {strides = array<i32>} : memref<16x8x128xf32, #tpu.memory_space<vmem>>, vector<16x8x128xf32>,
    %c0_7 = arith.constant 0 : index
    %c0_8 = arith.constant 0 : index
    %7 = vector.load %arg2[%c0_7, %c0_8] : memref<128x128xbf16, #tpu.memory_space<vmem>>, vector<128x128xbf16>
    %c0_9 = arith.constant 0 : index
    %c0_10 = arith.constant 0 : index
    %8 = vector.load %arg3[%c0_9, %c0_10] : memref<1x128xf32, #tpu.memory_space<vmem>>, vector<1x128xf32>
    %9 = vector.shape_cast %8 : vector<1x128xf32> to vector<1x128xf32>
    %10 = vector.broadcast %9 : vector<1x128xf32> to vector<8x128xf32>
    %cst_11 = arith.constant 0.000000e+00 : f32
    %11 = vector.broadcast %cst_11 : f32 to vector<8x128xf32>
    %c0_12 = arith.constant 0 : index
    %c0_13 = arith.constant 0 : index
    %c0_14 = arith.constant 0 : index
    %12 = vector.load %arg13[%c0_12, %c0_13, %c0_14] : memref<16x8x128xf32, #tpu.memory_space<vmem>>, vector<1x8x128xf32>
    %13 = vector.shape_cast %12 : vector<1x8x128xf32> to vector<8x128xf32>
    %14 = arith.truncf %11 : vector<8x128xf32> to vector<8x128xbf16>
    %cst_15 = arith.constant dense<0.000000e+00> : vector<8x128xf32>
    %15 = tpu.matmul %14, %7, %cst_15 {dimension_numbers = #tpu.dot_dimension_numbers<[1], [0], [0], [1], [0, 0, 1, 1], [], []>} : vector<8x128xbf16>, vector<128x128xbf16>, vector<8x128xf32> -> vector<8x128xf32>
    %16 = arith.addf %13, %15 : vector<8x128xf32>
    %17 = arith.addf %16, %10 : vector<8x128xf32>
    %18 = math.tanh %17 : vector<8x128xf32>
    %c0_16 = arith.constant 0 : index
    %c0_17 = arith.constant 0 : index
    %c0_18 = arith.constant 0 : index
    %19 = vector.load %arg14[%c0_16, %c0_17, %c0_18] : memref<16x8x128xf32, #tpu.memory_space<vmem>>, vector<1x8x128xf32>
    %20 = vector.shape_cast %19 : vector<1x8x128xf32> to vector<8x128xf32>
    %21 = vector.shape_cast %18 : vector<8x128xf32> to vector<1x8x128xf32>
    tpu.vector_store %arg14[%c0_16, %c0_17, %c0_18], %21 {strides = array<i32>} : memref<16x8x128xf32, #tpu.memory_space<vmem>>, vector<1x8x128xf32>,
    %c1 = arith.constant 1 : index
    %c0_19 = arith.constant 0 : index
    %c0_20 = arith.constant 0 : index
    %22 = vector.load %arg13[%c1, %c0_19, %c0_20] : memref<16x8x128xf32, #tpu.memory_space<vmem>>, vector<1x8x128xf32>
    %23 = vector.shape_cast %22 : vector<1x8x128xf32> to vector<8x128xf32>
    %24 = arith.truncf %18 : vector<8x128xf32> to vector<8x128xbf16>
    %cst_21 = arith.constant dense<0.000000e+00> : vector<8x128xf32>
    %25 = tpu.matmul %24, %7, %cst_21 {dimension_numbers = #tpu.dot_dimension_numbers<[1], [0], [0], [1], [0, 0, 1, 1], [], []>} : vector<8x128xbf16>, vector<128x128xbf16>, vector<8x128xf32> -> vector<8x128xf32>
    %26 = arith.addf %23, %25 : vector<8x128xf32>
    %27 = arith.addf %26, %10 : vector<8x128xf32>
    %28 = math.tanh %27 : vector<8x128xf32>
    %c1_22 = arith.constant 1 : index
    %c0_23 = arith.constant 0 : index
    %c0_24 = arith.constant 0 : index
    %29 = vector.load %arg14[%c1_22, %c0_23, %c0_24] : memref<16x8x128xf32, #tpu.memory_space<vmem>>, vector<1x8x128xf32>
    %30 = vector.shape_cast %29 : vector<1x8x128xf32> to vector<8x128xf32>
    %31 = vector.shape_cast %28 : vector<8x128xf32> to vector<1x8x128xf32>
    tpu.vector_store %arg14[%c1_22, %c0_23, %c0_24], %31 {strides = array<i32>} : memref<16x8x128xf32, #tpu.memory_space<vmem>>, vector<1x8x128xf32>,
    %c2 = arith.constant 2 : index
    %c0_25 = arith.constant 0 : index
    %c0_26 = arith.constant 0 : index
    %32 = vector.load %arg13[%c2, %c0_25, %c0_26] : memref<16x8x128xf32, #tpu.memory_space<vmem>>, vector<1x8x128xf32>
    %33 = vector.shape_cast %32 : vector<1x8x128xf32> to vector<8x128xf32>
    %34 = arith.truncf %28 : vector<8x128xf32> to vector<8x128xbf16>
    %cst_27 = arith.constant dense<0.000000e+00> : vector<8x128xf32>
    %35 = tpu.matmul %34, %7, %cst_27 {dimension_numbers = #tpu.dot_dimension_numbers<[1], [0], [0], [1], [0, 0, 1, 1], [], []>} : vector<8x128xbf16>, vector<128x128xbf16>, vector<8x128xf32> -> vector<8x128xf32>
    %36 = arith.addf %33, %35 : vector<8x128xf32>
    %37 = arith.addf %36, %10 : vector<8x128xf32>
    %38 = math.tanh %37 : vector<8x128xf32>
    %c2_28 = arith.constant 2 : index
    %c0_29 = arith.constant 0 : index
    %c0_30 = arith.constant 0 : index
    %39 = vector.load %arg14[%c2_28, %c0_29, %c0_30] : memref<16x8x128xf32, #tpu.memory_space<vmem>>, vector<1x8x128xf32>
    %40 = vector.shape_cast %39 : vector<1x8x128xf32> to vector<8x128xf32>
    %41 = vector.shape_cast %38 : vector<8x128xf32> to vector<1x8x128xf32>
    tpu.vector_store %arg14[%c2_28, %c0_29, %c0_30], %41 {strides = array<i32>} : memref<16x8x128xf32, #tpu.memory_space<vmem>>, vector<1x8x128xf32>,
    %c3 = arith.constant 3 : index
    %c0_31 = arith.constant 0 : index
    %c0_32 = arith.constant 0 : index
    %42 = vector.load %arg13[%c3, %c0_31, %c0_32] : memref<16x8x128xf32, #tpu.memory_space<vmem>>, vector<1x8x128xf32>
    %43 = vector.shape_cast %42 : vector<1x8x128xf32> to vector<8x128xf32>
    %44 = arith.truncf %38 : vector<8x128xf32> to vector<8x128xbf16>
    %cst_33 = arith.constant dense<0.000000e+00> : vector<8x128xf32>
    %45 = tpu.matmul %44, %7, %cst_33 {dimension_numbers = #tpu.dot_dimension_numbers<[1], [0], [0], [1], [0, 0, 1, 1], [], []>} : vector<8x128xbf16>, vector<128x128xbf16>, vector<8x128xf32> -> vector<8x128xf32>
    %46 = arith.addf %43, %45 : vector<8x128xf32>
    %47 = arith.addf %46, %10 : vector<8x128xf32>
    %48 = math.tanh %47 : vector<8x128xf32>
    %c3_34 = arith.constant 3 : index
    %c0_35 = arith.constant 0 : index
    %c0_36 = arith.constant 0 : index
    %49 = vector.load %arg14[%c3_34, %c0_35, %c0_36] : memref<16x8x128xf32, #tpu.memory_space<vmem>>, vector<1x8x128xf32>
    %50 = vector.shape_cast %49 : vector<1x8x128xf32> to vector<8x128xf32>
    %51 = vector.shape_cast %48 : vector<8x128xf32> to vector<1x8x128xf32>
    tpu.vector_store %arg14[%c3_34, %c0_35, %c0_36], %51 {strides = array<i32>} : memref<16x8x128xf32, #tpu.memory_space<vmem>>, vector<1x8x128xf32>,
    %c4 = arith.constant 4 : index
    %c0_37 = arith.constant 0 : index
    %c0_38 = arith.constant 0 : index
    %52 = vector.load %arg13[%c4, %c0_37, %c0_38] : memref<16x8x128xf32, #tpu.memory_space<vmem>>, vector<1x8x128xf32>
    %53 = vector.shape_cast %52 : vector<1x8x128xf32> to vector<8x128xf32>
    %54 = arith.truncf %48 : vector<8x128xf32> to vector<8x128xbf16>
    %cst_39 = arith.constant dense<0.000000e+00> : vector<8x128xf32>
    %55 = tpu.matmul %54, %7, %cst_39 {dimension_numbers = #tpu.dot_dimension_numbers<[1], [0], [0], [1], [0, 0, 1, 1], [], []>} : vector<8x128xbf16>, vector<128x128xbf16>, vector<8x128xf32> -> vector<8x128xf32>
    %56 = arith.addf %53, %55 : vector<8x128xf32>
    %57 = arith.addf %56, %10 : vector<8x128xf32>
    %58 = math.tanh %57 : vector<8x128xf32>
    %c4_40 = arith.constant 4 : index
    %c0_41 = arith.constant 0 : index
    %c0_42 = arith.constant 0 : index
    %59 = vector.load %arg14[%c4_40, %c0_41, %c0_42] : memref<16x8x128xf32, #tpu.memory_space<vmem>>, vector<1x8x128xf32>
    %60 = vector.shape_cast %59 : vector<1x8x128xf32> to vector<8x128xf32>
    %61 = vector.shape_cast %58 : vector<8x128xf32> to vector<1x8x128xf32>
    tpu.vector_store %arg14[%c4_40, %c0_41, %c0_42], %61 {strides = array<i32>} : memref<16x8x128xf32, #tpu.memory_space<vmem>>, vector<1x8x128xf32>,
    %c5 = arith.constant 5 : index
    %c0_43 = arith.constant 0 : index
    %c0_44 = arith.constant 0 : index
    %62 = vector.load %arg13[%c5, %c0_43, %c0_44] : memref<16x8x128xf32, #tpu.memory_space<vmem>>, vector<1x8x128xf32>
    %63 = vector.shape_cast %62 : vector<1x8x128xf32> to vector<8x128xf32>
    %64 = arith.truncf %58 : vector<8x128xf32> to vector<8x128xbf16>
    %cst_45 = arith.constant dense<0.000000e+00> : vector<8x128xf32>
    %65 = tpu.matmul %64, %7, %cst_45 {dimension_numbers = #tpu.dot_dimension_numbers<[1], [0], [0], [1], [0, 0, 1, 1], [], []>} : vector<8x128xbf16>, vector<128x128xbf16>, vector<8x128xf32> -> vector<8x128xf32>
    %66 = arith.addf %63, %65 : vector<8x128xf32>
    %67 = arith.addf %66, %10 : vector<8x128xf32>
    %68 = math.tanh %67 : vector<8x128xf32>
    %c5_46 = arith.constant 5 : index
    %c0_47 = arith.constant 0 : index
    %c0_48 = arith.constant 0 : index
    %69 = vector.load %arg14[%c5_46, %c0_47, %c0_48] : memref<16x8x128xf32, #tpu.memory_space<vmem>>, vector<1x8x128xf32>
    %70 = vector.shape_cast %69 : vector<1x8x128xf32> to vector<8x128xf32>
    %71 = vector.shape_cast %68 : vector<8x128xf32> to vector<1x8x128xf32>
    tpu.vector_store %arg14[%c5_46, %c0_47, %c0_48], %71 {strides = array<i32>} : memref<16x8x128xf32, #tpu.memory_space<vmem>>, vector<1x8x128xf32>,
    %c6 = arith.constant 6 : index
    %c0_49 = arith.constant 0 : index
    %c0_50 = arith.constant 0 : index
    %72 = vector.load %arg13[%c6, %c0_49, %c0_50] : memref<16x8x128xf32, #tpu.memory_space<vmem>>, vector<1x8x128xf32>
    %73 = vector.shape_cast %72 : vector<1x8x128xf32> to vector<8x128xf32>
    %74 = arith.truncf %68 : vector<8x128xf32> to vector<8x128xbf16>
    %cst_51 = arith.constant dense<0.000000e+00> : vector<8x128xf32>
    %75 = tpu.matmul %74, %7, %cst_51 {dimension_numbers = #tpu.dot_dimension_numbers<[1], [0], [0], [1], [0, 0, 1, 1], [], []>} : vector<8x128xbf16>, vector<128x128xbf16>, vector<8x128xf32> -> vector<8x128xf32>
    %76 = arith.addf %73, %75 : vector<8x128xf32>
    %77 = arith.addf %76, %10 : vector<8x128xf32>
    %78 = math.tanh %77 : vector<8x128xf32>
    %c6_52 = arith.constant 6 : index
    %c0_53 = arith.constant 0 : index
    %c0_54 = arith.constant 0 : index
    %79 = vector.load %arg14[%c6_52, %c0_53, %c0_54] : memref<16x8x128xf32, #tpu.memory_space<vmem>>, vector<1x8x128xf32>
    %80 = vector.shape_cast %79 : vector<1x8x128xf32> to vector<8x128xf32>
    %81 = vector.shape_cast %78 : vector<8x128xf32> to vector<1x8x128xf32>
    tpu.vector_store %arg14[%c6_52, %c0_53, %c0_54], %81 {strides = array<i32>} : memref<16x8x128xf32, #tpu.memory_space<vmem>>, vector<1x8x128xf32>,
    %c7 = arith.constant 7 : index
    %c0_55 = arith.constant 0 : index
    %c0_56 = arith.constant 0 : index
    %82 = vector.load %arg13[%c7, %c0_55, %c0_56] : memref<16x8x128xf32, #tpu.memory_space<vmem>>, vector<1x8x128xf32>
    %83 = vector.shape_cast %82 : vector<1x8x128xf32> to vector<8x128xf32>
    %84 = arith.truncf %78 : vector<8x128xf32> to vector<8x128xbf16>
    %cst_57 = arith.constant dense<0.000000e+00> : vector<8x128xf32>
    %85 = tpu.matmul %84, %7, %cst_57 {dimension_numbers = #tpu.dot_dimension_numbers<[1], [0], [0], [1], [0, 0, 1, 1], [], []>} : vector<8x128xbf16>, vector<128x128xbf16>, vector<8x128xf32> -> vector<8x128xf32>
    %86 = arith.addf %83, %85 : vector<8x128xf32>
    %87 = arith.addf %86, %10 : vector<8x128xf32>
    %88 = math.tanh %87 : vector<8x128xf32>
    %c7_58 = arith.constant 7 : index
    %c0_59 = arith.constant 0 : index
    %c0_60 = arith.constant 0 : index
    %89 = vector.load %arg14[%c7_58, %c0_59, %c0_60] : memref<16x8x128xf32, #tpu.memory_space<vmem>>, vector<1x8x128xf32>
    %90 = vector.shape_cast %89 : vector<1x8x128xf32> to vector<8x128xf32>
    %91 = vector.shape_cast %88 : vector<8x128xf32> to vector<1x8x128xf32>
    tpu.vector_store %arg14[%c7_58, %c0_59, %c0_60], %91 {strides = array<i32>} : memref<16x8x128xf32, #tpu.memory_space<vmem>>, vector<1x8x128xf32>,
    %c8 = arith.constant 8 : index
    %c0_61 = arith.constant 0 : index
    %c0_62 = arith.constant 0 : index
    %92 = vector.load %arg13[%c8, %c0_61, %c0_62] : memref<16x8x128xf32, #tpu.memory_space<vmem>>, vector<1x8x128xf32>
    %93 = vector.shape_cast %92 : vector<1x8x128xf32> to vector<8x128xf32>
    %94 = arith.truncf %88 : vector<8x128xf32> to vector<8x128xbf16>
    %cst_63 = arith.constant dense<0.000000e+00> : vector<8x128xf32>
    %95 = tpu.matmul %94, %7, %cst_63 {dimension_numbers = #tpu.dot_dimension_numbers<[1], [0], [0], [1], [0, 0, 1, 1], [], []>} : vector<8x128xbf16>, vector<128x128xbf16>, vector<8x128xf32> -> vector<8x128xf32>
    %96 = arith.addf %93, %95 : vector<8x128xf32>
    %97 = arith.addf %96, %10 : vector<8x128xf32>
    %98 = math.tanh %97 : vector<8x128xf32>
    %c8_64 = arith.constant 8 : index
    %c0_65 = arith.constant 0 : index
    %c0_66 = arith.constant 0 : index
    %99 = vector.load %arg14[%c8_64, %c0_65, %c0_66] : memref<16x8x128xf32, #tpu.memory_space<vmem>>, vector<1x8x128xf32>
    %100 = vector.shape_cast %99 : vector<1x8x128xf32> to vector<8x128xf32>
    %101 = vector.shape_cast %98 : vector<8x128xf32> to vector<1x8x128xf32>
    tpu.vector_store %arg14[%c8_64, %c0_65, %c0_66], %101 {strides = array<i32>} : memref<16x8x128xf32, #tpu.memory_space<vmem>>, vector<1x8x128xf32>,
    %c9 = arith.constant 9 : index
    %c0_67 = arith.constant 0 : index
    %c0_68 = arith.constant 0 : index
    %102 = vector.load %arg13[%c9, %c0_67, %c0_68] : memref<16x8x128xf32, #tpu.memory_space<vmem>>, vector<1x8x128xf32>
    %103 = vector.shape_cast %102 : vector<1x8x128xf32> to vector<8x128xf32>
    %104 = arith.truncf %98 : vector<8x128xf32> to vector<8x128xbf16>
    %cst_69 = arith.constant dense<0.000000e+00> : vector<8x128xf32>
    %105 = tpu.matmul %104, %7, %cst_69 {dimension_numbers = #tpu.dot_dimension_numbers<[1], [0], [0], [1], [0, 0, 1, 1], [], []>} : vector<8x128xbf16>, vector<128x128xbf16>, vector<8x128xf32> -> vector<8x128xf32>
    %106 = arith.addf %103, %105 : vector<8x128xf32>
    %107 = arith.addf %106, %10 : vector<8x128xf32>
    %108 = math.tanh %107 : vector<8x128xf32>
    %c9_70 = arith.constant 9 : index
    %c0_71 = arith.constant 0 : index
    %c0_72 = arith.constant 0 : index
    %109 = vector.load %arg14[%c9_70, %c0_71, %c0_72] : memref<16x8x128xf32, #tpu.memory_space<vmem>>, vector<1x8x128xf32>
    %110 = vector.shape_cast %109 : vector<1x8x128xf32> to vector<8x128xf32>
    %111 = vector.shape_cast %108 : vector<8x128xf32> to vector<1x8x128xf32>
    tpu.vector_store %arg14[%c9_70, %c0_71, %c0_72], %111 {strides = array<i32>} : memref<16x8x128xf32, #tpu.memory_space<vmem>>, vector<1x8x128xf32>,
    %c10 = arith.constant 10 : index
    %c0_73 = arith.constant 0 : index
    %c0_74 = arith.constant 0 : index
    %112 = vector.load %arg13[%c10, %c0_73, %c0_74] : memref<16x8x128xf32, #tpu.memory_space<vmem>>, vector<1x8x128xf32>
    %113 = vector.shape_cast %112 : vector<1x8x128xf32> to vector<8x128xf32>
    %114 = arith.truncf %108 : vector<8x128xf32> to vector<8x128xbf16>
    %cst_75 = arith.constant dense<0.000000e+00> : vector<8x128xf32>
    %115 = tpu.matmul %114, %7, %cst_75 {dimension_numbers = #tpu.dot_dimension_numbers<[1], [0], [0], [1], [0, 0, 1, 1], [], []>} : vector<8x128xbf16>, vector<128x128xbf16>, vector<8x128xf32> -> vector<8x128xf32>
    %116 = arith.addf %113, %115 : vector<8x128xf32>
    %117 = arith.addf %116, %10 : vector<8x128xf32>
    %118 = math.tanh %117 : vector<8x128xf32>
    %c10_76 = arith.constant 10 : index
    %c0_77 = arith.constant 0 : index
    %c0_78 = arith.constant 0 : index
    %119 = vector.load %arg14[%c10_76, %c0_77, %c0_78] : memref<16x8x128xf32, #tpu.memory_space<vmem>>, vector<1x8x128xf32>
    %120 = vector.shape_cast %119 : vector<1x8x128xf32> to vector<8x128xf32>
    %121 = vector.shape_cast %118 : vector<8x128xf32> to vector<1x8x128xf32>
    tpu.vector_store %arg14[%c10_76, %c0_77, %c0_78], %121 {strides = array<i32>} : memref<16x8x128xf32, #tpu.memory_space<vmem>>, vector<1x8x128xf32>,
    %c11 = arith.constant 11 : index
    %c0_79 = arith.constant 0 : index
    %c0_80 = arith.constant 0 : index
    %122 = vector.load %arg13[%c11, %c0_79, %c0_80] : memref<16x8x128xf32, #tpu.memory_space<vmem>>, vector<1x8x128xf32>
    %123 = vector.shape_cast %122 : vector<1x8x128xf32> to vector<8x128xf32>
    %124 = arith.truncf %118 : vector<8x128xf32> to vector<8x128xbf16>
    %cst_81 = arith.constant dense<0.000000e+00> : vector<8x128xf32>
    %125 = tpu.matmul %124, %7, %cst_81 {dimension_numbers = #tpu.dot_dimension_numbers<[1], [0], [0], [1], [0, 0, 1, 1], [], []>} : vector<8x128xbf16>, vector<128x128xbf16>, vector<8x128xf32> -> vector<8x128xf32>
    %126 = arith.addf %123, %125 : vector<8x128xf32>
    %127 = arith.addf %126, %10 : vector<8x128xf32>
    %128 = math.tanh %127 : vector<8x128xf32>
    %c11_82 = arith.constant 11 : index
    %c0_83 = arith.constant 0 : index
    %c0_84 = arith.constant 0 : index
    %129 = vector.load %arg14[%c11_82, %c0_83, %c0_84] : memref<16x8x128xf32, #tpu.memory_space<vmem>>, vector<1x8x128xf32>
    %130 = vector.shape_cast %129 : vector<1x8x128xf32> to vector<8x128xf32>
    %131 = vector.shape_cast %128 : vector<8x128xf32> to vector<1x8x128xf32>
    tpu.vector_store %arg14[%c11_82, %c0_83, %c0_84], %131 {strides = array<i32>} : memref<16x8x128xf32, #tpu.memory_space<vmem>>, vector<1x8x128xf32>,
    %c12 = arith.constant 12 : index
    %c0_85 = arith.constant 0 : index
    %c0_86 = arith.constant 0 : index
    %132 = vector.load %arg13[%c12, %c0_85, %c0_86] : memref<16x8x128xf32, #tpu.memory_space<vmem>>, vector<1x8x128xf32>
    %133 = vector.shape_cast %132 : vector<1x8x128xf32> to vector<8x128xf32>
    %134 = arith.truncf %128 : vector<8x128xf32> to vector<8x128xbf16>
    %cst_87 = arith.constant dense<0.000000e+00> : vector<8x128xf32>
    %135 = tpu.matmul %134, %7, %cst_87 {dimension_numbers = #tpu.dot_dimension_numbers<[1], [0], [0], [1], [0, 0, 1, 1], [], []>} : vector<8x128xbf16>, vector<128x128xbf16>, vector<8x128xf32> -> vector<8x128xf32>
    %136 = arith.addf %133, %135 : vector<8x128xf32>
    %137 = arith.addf %136, %10 : vector<8x128xf32>
    %138 = math.tanh %137 : vector<8x128xf32>
    %c12_88 = arith.constant 12 : index
    %c0_89 = arith.constant 0 : index
    %c0_90 = arith.constant 0 : index
    %139 = vector.load %arg14[%c12_88, %c0_89, %c0_90] : memref<16x8x128xf32, #tpu.memory_space<vmem>>, vector<1x8x128xf32>
    %140 = vector.shape_cast %139 : vector<1x8x128xf32> to vector<8x128xf32>
    %141 = vector.shape_cast %138 : vector<8x128xf32> to vector<1x8x128xf32>
    tpu.vector_store %arg14[%c12_88, %c0_89, %c0_90], %141 {strides = array<i32>} : memref<16x8x128xf32, #tpu.memory_space<vmem>>, vector<1x8x128xf32>,
    %c13 = arith.constant 13 : index
    %c0_91 = arith.constant 0 : index
    %c0_92 = arith.constant 0 : index
    %142 = vector.load %arg13[%c13, %c0_91, %c0_92] : memref<16x8x128xf32, #tpu.memory_space<vmem>>, vector<1x8x128xf32>
    %143 = vector.shape_cast %142 : vector<1x8x128xf32> to vector<8x128xf32>
    %144 = arith.truncf %138 : vector<8x128xf32> to vector<8x128xbf16>
    %cst_93 = arith.constant dense<0.000000e+00> : vector<8x128xf32>
    %145 = tpu.matmul %144, %7, %cst_93 {dimension_numbers = #tpu.dot_dimension_numbers<[1], [0], [0], [1], [0, 0, 1, 1], [], []>} : vector<8x128xbf16>, vector<128x128xbf16>, vector<8x128xf32> -> vector<8x128xf32>
    %146 = arith.addf %143, %145 : vector<8x128xf32>
    %147 = arith.addf %146, %10 : vector<8x128xf32>
    %148 = math.tanh %147 : vector<8x128xf32>
    %c13_94 = arith.constant 13 : index
    %c0_95 = arith.constant 0 : index
    %c0_96 = arith.constant 0 : index
    %149 = vector.load %arg14[%c13_94, %c0_95, %c0_96] : memref<16x8x128xf32, #tpu.memory_space<vmem>>, vector<1x8x128xf32>
    %150 = vector.shape_cast %149 : vector<1x8x128xf32> to vector<8x128xf32>
    %151 = vector.shape_cast %148 : vector<8x128xf32> to vector<1x8x128xf32>
    tpu.vector_store %arg14[%c13_94, %c0_95, %c0_96], %151 {strides = array<i32>} : memref<16x8x128xf32, #tpu.memory_space<vmem>>, vector<1x8x128xf32>,
    %c14 = arith.constant 14 : index
    %c0_97 = arith.constant 0 : index
    %c0_98 = arith.constant 0 : index
    %152 = vector.load %arg13[%c14, %c0_97, %c0_98] : memref<16x8x128xf32, #tpu.memory_space<vmem>>, vector<1x8x128xf32>
    %153 = vector.shape_cast %152 : vector<1x8x128xf32> to vector<8x128xf32>
    %154 = arith.truncf %148 : vector<8x128xf32> to vector<8x128xbf16>
    %cst_99 = arith.constant dense<0.000000e+00> : vector<8x128xf32>
    %155 = tpu.matmul %154, %7, %cst_99 {dimension_numbers = #tpu.dot_dimension_numbers<[1], [0], [0], [1], [0, 0, 1, 1], [], []>} : vector<8x128xbf16>, vector<128x128xbf16>, vector<8x128xf32> -> vector<8x128xf32>
    %156 = arith.addf %153, %155 : vector<8x128xf32>
    %157 = arith.addf %156, %10 : vector<8x128xf32>
    %158 = math.tanh %157 : vector<8x128xf32>
    %c14_100 = arith.constant 14 : index
    %c0_101 = arith.constant 0 : index
    %c0_102 = arith.constant 0 : index
    %159 = vector.load %arg14[%c14_100, %c0_101, %c0_102] : memref<16x8x128xf32, #tpu.memory_space<vmem>>, vector<1x8x128xf32>
    %160 = vector.shape_cast %159 : vector<1x8x128xf32> to vector<8x128xf32>
    %161 = vector.shape_cast %158 : vector<8x128xf32> to vector<1x8x128xf32>
    tpu.vector_store %arg14[%c14_100, %c0_101, %c0_102], %161 {strides = array<i32>} : memref<16x8x128xf32, #tpu.memory_space<vmem>>, vector<1x8x128xf32>,
    %c15 = arith.constant 15 : index
    %c0_103 = arith.constant 0 : index
    %c0_104 = arith.constant 0 : index
    %162 = vector.load %arg13[%c15, %c0_103, %c0_104] : memref<16x8x128xf32, #tpu.memory_space<vmem>>, vector<1x8x128xf32>
    %163 = vector.shape_cast %162 : vector<1x8x128xf32> to vector<8x128xf32>
    %164 = arith.truncf %158 : vector<8x128xf32> to vector<8x128xbf16>
    %cst_105 = arith.constant dense<0.000000e+00> : vector<8x128xf32>
    %165 = tpu.matmul %164, %7, %cst_105 {dimension_numbers = #tpu.dot_dimension_numbers<[1], [0], [0], [1], [0, 0, 1, 1], [], []>} : vector<8x128xbf16>, vector<128x128xbf16>, vector<8x128xf32> -> vector<8x128xf32>
    %166 = arith.addf %163, %165 : vector<8x128xf32>
    %167 = arith.addf %166, %10 : vector<8x128xf32>
    %168 = math.tanh %167 : vector<8x128xf32>
    %c15_106 = arith.constant 15 : index
    %c0_107 = arith.constant 0 : index
    %c0_108 = arith.constant 0 : index
    %169 = vector.load %arg14[%c15_106, %c0_107, %c0_108] : memref<16x8x128xf32, #tpu.memory_space<vmem>>, vector<1x8x128xf32>
    %170 = vector.shape_cast %169 : vector<1x8x128xf32> to vector<8x128xf32>
    %171 = vector.shape_cast %168 : vector<8x128xf32> to vector<1x8x128xf32>
    tpu.vector_store %arg14[%c15_106, %c0_107, %c0_108], %171 {strides = array<i32>} : memref<16x8x128xf32, #tpu.memory_space<vmem>>, vector<1x8x128xf32>,
    %c0_109 = arith.constant 0 : index
    %c0_110 = arith.constant 0 : index
    %c0_111 = arith.constant 0 : index
    %172 = vector.load %arg14[%c0_109, %c0_110, %c0_111] : memref<16x8x128xf32, #tpu.memory_space<vmem>>, vector<16x8x128xf32>
    %173 = vector.shape_cast %172 : vector<16x8x128xf32> to vector<128x128xf32>
    %174 = arith.truncf %173 : vector<128x128xf32> to vector<128x128xbf16>
    %c0_112 = arith.constant 0 : index
    %c0_113 = arith.constant 0 : index
    %175 = vector.load %arg4[%c0_112, %c0_113] : memref<128x128xbf16, #tpu.memory_space<vmem>>, vector<128x128xbf16>
    %c0_114 = arith.constant 0 : index
    %c0_115 = arith.constant 0 : index
    %176 = vector.load %arg5[%c0_114, %c0_115] : memref<128x128xbf16, #tpu.memory_space<vmem>>, vector<128x128xbf16>
    %cst_116 = arith.constant dense<0.000000e+00> : vector<128x128xf32>
    %177 = tpu.matmul %175, %176, %cst_116 {dimension_numbers = #tpu.dot_dimension_numbers<[1], [0], [0], [1], [0, 0, 1, 1], [], []>} : vector<128x128xbf16>, vector<128x128xbf16>, vector<128x128xf32> -> vector<128x128xf32>
    %c0_117 = arith.constant 0 : index
    %c0_118 = arith.constant 0 : index
    %178 = vector.load %arg7[%c0_117, %c0_118] : memref<1x128xf32, #tpu.memory_space<vmem>>, vector<1x128xf32>
    %179 = vector.shape_cast %178 : vector<1x128xf32> to vector<1x128xf32>
    %180 = vector.broadcast %179 : vector<1x128xf32> to vector<128x128xf32>
    %181 = arith.addf %177, %180 : vector<128x128xf32>
    %182 = arith.truncf %181 : vector<128x128xf32> to vector<128x128xbf16>
    %c0_119 = arith.constant 0 : index
    %c0_120 = arith.constant 0 : index
    %183 = vector.load %arg6[%c0_119, %c0_120] : memref<128x128xbf16, #tpu.memory_space<vmem>>, vector<128x128xbf16>
    %c0_121 = arith.constant 0 : index
    %c0_122 = arith.constant 0 : index
    %184 = vector.load %arg8[%c0_121, %c0_122] : memref<128x128xbf16, #tpu.memory_space<vmem>>, vector<128x128xbf16>
    %c0_123 = arith.constant 0 : index
    %c0_124 = arith.constant 0 : index
    %185 = vector.load %arg9[%c0_123, %c0_124] : memref<128x128xbf16, #tpu.memory_space<vmem>>, vector<128x128xbf16>
    %c0_125 = arith.constant 0 : index
    %c0_126 = arith.constant 0 : index
    %186 = vector.load %arg10[%c0_125, %c0_126] : memref<128x128xbf16, #tpu.memory_space<vmem>>, vector<128x128xbf16>
    %c0_127 = arith.constant 0 : index
    %c0_128 = arith.constant 0 : index
    %187 = vector.load %arg11[%c0_127, %c0_128] : memref<1x128xf32, #tpu.memory_space<vmem>>, vector<1x128xf32>
    %188 = vector.shape_cast %187 : vector<1x128xf32> to vector<1x128xf32>
    %189 = vector.broadcast %188 : vector<1x128xf32> to vector<8x128xf32>
    %190 = tpu.iota {dimensions = array<i32: 1>} : vector<8x128xi32>
    %191 = tpu.iota {dimensions = array<i32: 1>} : vector<8x128xi32>
    %c8_i32 = arith.constant 8 : i32
    %c0_i32 = arith.constant 0 : i32
    %192 = arith.cmpi eq, %c8_i32, %c0_i32 : i32
    %c1_i32 = arith.constant 1 : i32
    %193 = arith.select %192, %c1_i32, %c8_i32 : i32
    %194 = vector.broadcast %193 : i32 to vector<8x128xi32>
    %195 = arith.remsi %191, %194 : vector<8x128xi32>
    %c0_i32_129 = arith.constant 0 : i32
    %196 = vector.broadcast %c0_i32_129 : i32 to vector<8x128xi32>
    %197 = arith.cmpi ne, %195, %196 : vector<8x128xi32>
    %c0_i32_130 = arith.constant 0 : i32
    %198 = vector.broadcast %c0_i32_130 : i32 to vector<8x128xi32>
    %199 = arith.cmpi slt, %195, %198 : vector<8x128xi32>
    %c0_i32_131 = arith.constant 0 : i32
    %200 = arith.cmpi slt, %193, %c0_i32_131 : i32
    %201 = vector.broadcast %200 : i1 to vector<8x128xi1>
    %202 = vector.broadcast %201 : vector<8x128xi1> to vector<8x128xi1>
    %203 = arith.xori %199, %202 : vector<8x128xi1>
    %204 = arith.andi %203, %197 : vector<8x128xi1>
    %205 = vector.broadcast %193 : i32 to vector<8x128xi32>
    %206 = arith.addi %195, %205 : vector<8x128xi32>
    %207 = arith.select %204, %206, %195 : vector<8x128xi1>, vector<8x128xi32>
    %208 = tpu.iota {dimensions = array<i32: 0>} : vector<8x128xi32>
    %209 = arith.cmpi eq, %207, %208 : vector<8x128xi32>
    %c1_i32_132 = arith.constant 1 : i32
    %210 = vector.broadcast %c1_i32_132 : i32 to vector<8x1xi32>
    %211 = vector.broadcast %210 : vector<8x1xi32> to vector<8x128xi32>
    %212 = arith.cmpi eq, %211, %190 : vector<8x128xi32>
    %213 = arith.extui %212 : vector<8x128xi1> to vector<8x128xi32>
    %214 = arith.sitofp %213 : vector<8x128xi32> to vector<8x128xf32>
    %215 = arith.truncf %214 : vector<8x128xf32> to vector<8x128xbf16>
    %cst_133 = arith.constant dense<0.000000e+00> : vector<8x128xf32>
    %216 = tpu.matmul %215, %182, %cst_133 {dimension_numbers = #tpu.dot_dimension_numbers<[1], [0], [0], [1], [0, 0, 1, 1], [], []>} : vector<8x128xbf16>, vector<128x128xbf16>, vector<8x128xf32> -> vector<8x128xf32>
    %217 = arith.truncf %168 : vector<8x128xf32> to vector<8x128xbf16>
    %cst_134 = arith.constant dense<0.000000e+00> : vector<8x128xf32>
    %218 = tpu.matmul %217, %183, %cst_134 {dimension_numbers = #tpu.dot_dimension_numbers<[1], [0], [0], [1], [0, 0, 1, 1], [], []>} : vector<8x128xbf16>, vector<128x128xbf16>, vector<8x128xf32> -> vector<8x128xf32>
    %219 = arith.addf %216, %218 : vector<8x128xf32>
    %220 = math.tanh %219 : vector<8x128xf32>
    %221 = arith.truncf %220 : vector<8x128xf32> to vector<8x128xbf16>
    %cst_135 = arith.constant dense<0.000000e+00> : vector<8x128xf32>
    %222 = tpu.matmul %221, %174, %cst_135 {dimension_numbers = #tpu.dot_dimension_numbers<[1], [1], [0], [0], [0, 0, 1, 0], [], []>} : vector<8x128xbf16>, vector<128x128xbf16>, vector<8x128xf32> -> vector<8x128xf32>
    %cst_136 = arith.constant -1.000000e+30 : f32
    %223 = vector.broadcast %cst_136 : f32 to vector<8x128xf32>
    %224 = arith.select %209, %222, %223 : vector<8x128xi1>, vector<8x128xf32>
    %cst_137 = arith.constant dense<0xFF800000> : vector<8xf32>
    %225 = vector.multi_reduction <maximumf>, %224, %cst_137 [1] : vector<8x128xf32> to vector<8xf32>
    %226 = vector.shape_cast %225 : vector<8xf32> to vector<8x1xf32>
    %227 = vector.broadcast %226 : vector<8x1xf32> to vector<8x128xf32>
    %228 = arith.subf %224, %227 : vector<8x128xf32>
    %229 = math.exp %228 : vector<8x128xf32>
    %cst_138 = arith.constant dense<0.000000e+00> : vector<8xf32>
    %230 = vector.multi_reduction <add>, %229, %cst_138 [1] : vector<8x128xf32> to vector<8xf32>
    %231 = vector.shape_cast %230 : vector<8xf32> to vector<8x1xf32>
    %232 = vector.broadcast %231 : vector<8x1xf32> to vector<8x128xf32>
    %233 = arith.divf %229, %232 : vector<8x128xf32>
    %234 = arith.truncf %233 : vector<8x128xf32> to vector<8x128xbf16>
    %cst_139 = arith.constant dense<0.000000e+00> : vector<8x128xf32>
    %235 = tpu.matmul %234, %174, %cst_139 {dimension_numbers = #tpu.dot_dimension_numbers<[1], [0], [0], [1], [0, 0, 1, 1], [], []>} : vector<8x128xbf16>, vector<128x128xbf16>, vector<8x128xf32> -> vector<8x128xf32>
    %236 = arith.truncf %235 : vector<8x128xf32> to vector<8x128xbf16>
    %cst_140 = arith.constant dense<0.000000e+00> : vector<8x128xf32>
    %237 = tpu.matmul %236, %184, %cst_140 {dimension_numbers = #tpu.dot_dimension_numbers<[1], [0], [0], [1], [0, 0, 1, 1], [], []>} : vector<8x128xbf16>, vector<128x128xbf16>, vector<8x128xf32> -> vector<8x128xf32>
    %cst_141 = arith.constant dense<0.000000e+00> : vector<8x128xf32>
    %238 = tpu.matmul %221, %185, %cst_141 {dimension_numbers = #tpu.dot_dimension_numbers<[1], [0], [0], [1], [0, 0, 1, 1], [], []>} : vector<8x128xbf16>, vector<128x128xbf16>, vector<8x128xf32> -> vector<8x128xf32>
    %239 = arith.addf %237, %238 : vector<8x128xf32>
    %240 = math.tanh %239 : vector<8x128xf32>
    %241 = arith.truncf %240 : vector<8x128xf32> to vector<8x128xbf16>
    %cst_142 = arith.constant dense<0.000000e+00> : vector<8x128xf32>
    %242 = tpu.matmul %241, %186, %cst_142 {dimension_numbers = #tpu.dot_dimension_numbers<[1], [0], [0], [1], [0, 0, 1, 1], [], []>} : vector<8x128xbf16>, vector<128x128xbf16>, vector<8x128xf32> -> vector<8x128xf32>
    %243 = arith.addf %242, %189 : vector<8x128xf32>
    %cst_143 = arith.constant dense<0xFF800000> : vector<8xf32>
    %244 = vector.multi_reduction <maximumf>, %243, %cst_143 [1] : vector<8x128xf32> to vector<8xf32>
    %245 = vector.shape_cast %244 : vector<8xf32> to vector<8x1xf32>
    %246 = vector.broadcast %245 : vector<8x1xf32> to vector<8x128xf32>
    %247 = arith.subf %243, %246 : vector<8x128xf32>
    %248 = math.exp %247 : vector<8x128xf32>
    %cst_144 = arith.constant dense<0.000000e+00> : vector<8xf32>
    %249 = vector.multi_reduction <add>, %248, %cst_144 [1] : vector<8x128xf32> to vector<8xf32>
    %250 = vector.shape_cast %249 : vector<8xf32> to vector<8x1xf32>
    %251 = math.log %250 : vector<8x1xf32>
    %252 = arith.addf %251, %245 : vector<8x1xf32>
    %253 = vector.broadcast %252 : vector<8x1xf32> to vector<8x128xf32>
    %254 = arith.subf %243, %253 : vector<8x128xf32>
    %c0_145 = arith.constant 0 : index
    %c0_146 = arith.constant 0 : index
    %c0_147 = arith.constant 0 : index
    %255 = vector.load %arg12[%c0_145, %c0_146, %c0_147] : memref<8x8x128xf32, #tpu.memory_space<vmem>>, vector<1x8x128xf32>
    %256 = vector.shape_cast %255 : vector<1x8x128xf32> to vector<8x128xf32>
    %257 = vector.shape_cast %254 : vector<8x128xf32> to vector<1x8x128xf32>
    tpu.vector_store %arg12[%c0_145, %c0_146, %c0_147], %257 {strides = array<i32>} : memref<8x8x128xf32, #tpu.memory_space<vmem>>, vector<1x8x128xf32>,
    %258 = vector.broadcast %245 : vector<8x1xf32> to vector<8x128xf32>
    %259 = arith.cmpf oge, %243, %258 : vector<8x128xf32>
    %c128_i32 = arith.constant 128 : i32
    %260 = vector.broadcast %c128_i32 : i32 to vector<8x128xi32>
    %261 = arith.select %259, %190, %260 : vector<8x128xi1>, vector<8x128xi32>
    %cst_148 = arith.constant dense<2147483647> : vector<8xi32>
    %262 = vector.multi_reduction <minsi>, %261, %cst_148 [1] : vector<8x128xi32> to vector<8xi32>
    %263 = vector.shape_cast %262 : vector<8xi32> to vector<8x1xi32>
    %264 = vector.broadcast %263 : vector<8x1xi32> to vector<8x128xi32>
    %265 = arith.cmpi eq, %264, %190 : vector<8x128xi32>
    %266 = arith.extui %265 : vector<8x128xi1> to vector<8x128xi32>
    %267 = arith.sitofp %266 : vector<8x128xi32> to vector<8x128xf32>
    %268 = arith.truncf %267 : vector<8x128xf32> to vector<8x128xbf16>
    %cst_149 = arith.constant dense<0.000000e+00> : vector<8x128xf32>
    %269 = tpu.matmul %268, %182, %cst_149 {dimension_numbers = #tpu.dot_dimension_numbers<[1], [0], [0], [1], [0, 0, 1, 1], [], []>} : vector<8x128xbf16>, vector<128x128xbf16>, vector<8x128xf32> -> vector<8x128xf32>
    %270 = arith.truncf %220 : vector<8x128xf32> to vector<8x128xbf16>
    %cst_150 = arith.constant dense<0.000000e+00> : vector<8x128xf32>
    %271 = tpu.matmul %270, %183, %cst_150 {dimension_numbers = #tpu.dot_dimension_numbers<[1], [0], [0], [1], [0, 0, 1, 1], [], []>} : vector<8x128xbf16>, vector<128x128xbf16>, vector<8x128xf32> -> vector<8x128xf32>
    %272 = arith.addf %269, %271 : vector<8x128xf32>
    %273 = math.tanh %272 : vector<8x128xf32>
    %274 = arith.truncf %273 : vector<8x128xf32> to vector<8x128xbf16>
    %cst_151 = arith.constant dense<0.000000e+00> : vector<8x128xf32>
    %275 = tpu.matmul %274, %174, %cst_151 {dimension_numbers = #tpu.dot_dimension_numbers<[1], [1], [0], [0], [0, 0, 1, 0], [], []>} : vector<8x128xbf16>, vector<128x128xbf16>, vector<8x128xf32> -> vector<8x128xf32>
    %cst_152 = arith.constant -1.000000e+30 : f32
    %276 = vector.broadcast %cst_152 : f32 to vector<8x128xf32>
    %277 = arith.select %209, %275, %276 : vector<8x128xi1>, vector<8x128xf32>
    %cst_153 = arith.constant dense<0xFF800000> : vector<8xf32>
    %278 = vector.multi_reduction <maximumf>, %277, %cst_153 [1] : vector<8x128xf32> to vector<8xf32>
    %279 = vector.shape_cast %278 : vector<8xf32> to vector<8x1xf32>
    %280 = vector.broadcast %279 : vector<8x1xf32> to vector<8x128xf32>
    %281 = arith.subf %277, %280 : vector<8x128xf32>
    %282 = math.exp %281 : vector<8x128xf32>
    %cst_154 = arith.constant dense<0.000000e+00> : vector<8xf32>
    %283 = vector.multi_reduction <add>, %282, %cst_154 [1] : vector<8x128xf32> to vector<8xf32>
    %284 = vector.shape_cast %283 : vector<8xf32> to vector<8x1xf32>
    %285 = vector.broadcast %284 : vector<8x1xf32> to vector<8x128xf32>
    %286 = arith.divf %282, %285 : vector<8x128xf32>
    %287 = arith.truncf %286 : vector<8x128xf32> to vector<8x128xbf16>
    %cst_155 = arith.constant dense<0.000000e+00> : vector<8x128xf32>
    %288 = tpu.matmul %287, %174, %cst_155 {dimension_numbers = #tpu.dot_dimension_numbers<[1], [0], [0], [1], [0, 0, 1, 1], [], []>} : vector<8x128xbf16>, vector<128x128xbf16>, vector<8x128xf32> -> vector<8x128xf32>
    %289 = arith.truncf %288 : vector<8x128xf32> to vector<8x128xbf16>
    %cst_156 = arith.constant dense<0.000000e+00> : vector<8x128xf32>
    %290 = tpu.matmul %289, %184, %cst_156 {dimension_numbers = #tpu.dot_dimension_numbers<[1], [0], [0], [1], [0, 0, 1, 1], [], []>} : vector<8x128xbf16>, vector<128x128xbf16>, vector<8x128xf32> -> vector<8x128xf32>
    %cst_157 = arith.constant dense<0.000000e+00> : vector<8x128xf32>
    %291 = tpu.matmul %274, %185, %cst_157 {dimension_numbers = #tpu.dot_dimension_numbers<[1], [0], [0], [1], [0, 0, 1, 1], [], []>} : vector<8x128xbf16>, vector<128x128xbf16>, vector<8x128xf32> -> vector<8x128xf32>
    %292 = arith.addf %290, %291 : vector<8x128xf32>
    %293 = math.tanh %292 : vector<8x128xf32>
    %294 = arith.truncf %293 : vector<8x128xf32> to vector<8x128xbf16>
    %cst_158 = arith.constant dense<0.000000e+00> : vector<8x128xf32>
    %295 = tpu.matmul %294, %186, %cst_158 {dimension_numbers = #tpu.dot_dimension_numbers<[1], [0], [0], [1], [0, 0, 1, 1], [], []>} : vector<8x128xbf16>, vector<128x128xbf16>, vector<8x128xf32> -> vector<8x128xf32>
    %296 = arith.addf %295, %189 : vector<8x128xf32>
    %cst_159 = arith.constant dense<0xFF800000> : vector<8xf32>
    %297 = vector.multi_reduction <maximumf>, %296, %cst_159 [1] : vector<8x128xf32> to vector<8xf32>
    %298 = vector.shape_cast %297 : vector<8xf32> to vector<8x1xf32>
    %299 = vector.broadcast %298 : vector<8x1xf32> to vector<8x128xf32>
    %300 = arith.subf %296, %299 : vector<8x128xf32>
    %301 = math.exp %300 : vector<8x128xf32>
    %cst_160 = arith.constant dense<0.000000e+00> : vector<8xf32>
    %302 = vector.multi_reduction <add>, %301, %cst_160 [1] : vector<8x128xf32> to vector<8xf32>
    %303 = vector.shape_cast %302 : vector<8xf32> to vector<8x1xf32>
    %304 = math.log %303 : vector<8x1xf32>
    %305 = arith.addf %304, %298 : vector<8x1xf32>
    %306 = vector.broadcast %305 : vector<8x1xf32> to vector<8x128xf32>
    %307 = arith.subf %296, %306 : vector<8x128xf32>
    %c1_161 = arith.constant 1 : index
    %c0_162 = arith.constant 0 : index
    %c0_163 = arith.constant 0 : index
    %308 = vector.load %arg12[%c1_161, %c0_162, %c0_163] : memref<8x8x128xf32, #tpu.memory_space<vmem>>, vector<1x8x128xf32>
    %309 = vector.shape_cast %308 : vector<1x8x128xf32> to vector<8x128xf32>
    %310 = vector.shape_cast %307 : vector<8x128xf32> to vector<1x8x128xf32>
    tpu.vector_store %arg12[%c1_161, %c0_162, %c0_163], %310 {strides = array<i32>} : memref<8x8x128xf32, #tpu.memory_space<vmem>>, vector<1x8x128xf32>,
    %311 = vector.broadcast %298 : vector<8x1xf32> to vector<8x128xf32>
    %312 = arith.cmpf oge, %296, %311 : vector<8x128xf32>
    %c128_i32_164 = arith.constant 128 : i32
    %313 = vector.broadcast %c128_i32_164 : i32 to vector<8x128xi32>
    %314 = arith.select %312, %190, %313 : vector<8x128xi1>, vector<8x128xi32>
    %cst_165 = arith.constant dense<2147483647> : vector<8xi32>
    %315 = vector.multi_reduction <minsi>, %314, %cst_165 [1] : vector<8x128xi32> to vector<8xi32>
    %316 = vector.shape_cast %315 : vector<8xi32> to vector<8x1xi32>
    %317 = vector.broadcast %316 : vector<8x1xi32> to vector<8x128xi32>
    %318 = arith.cmpi eq, %317, %190 : vector<8x128xi32>
    %319 = arith.extui %318 : vector<8x128xi1> to vector<8x128xi32>
    %320 = arith.sitofp %319 : vector<8x128xi32> to vector<8x128xf32>
    %321 = arith.truncf %320 : vector<8x128xf32> to vector<8x128xbf16>
    %cst_166 = arith.constant dense<0.000000e+00> : vector<8x128xf32>
    %322 = tpu.matmul %321, %182, %cst_166 {dimension_numbers = #tpu.dot_dimension_numbers<[1], [0], [0], [1], [0, 0, 1, 1], [], []>} : vector<8x128xbf16>, vector<128x128xbf16>, vector<8x128xf32> -> vector<8x128xf32>
    %323 = arith.truncf %273 : vector<8x128xf32> to vector<8x128xbf16>
    %cst_167 = arith.constant dense<0.000000e+00> : vector<8x128xf32>
    %324 = tpu.matmul %323, %183, %cst_167 {dimension_numbers = #tpu.dot_dimension_numbers<[1], [0], [0], [1], [0, 0, 1, 1], [], []>} : vector<8x128xbf16>, vector<128x128xbf16>, vector<8x128xf32> -> vector<8x128xf32>
    %325 = arith.addf %322, %324 : vector<8x128xf32>
    %326 = math.tanh %325 : vector<8x128xf32>
    %327 = arith.truncf %326 : vector<8x128xf32> to vector<8x128xbf16>
    %cst_168 = arith.constant dense<0.000000e+00> : vector<8x128xf32>
    %328 = tpu.matmul %327, %174, %cst_168 {dimension_numbers = #tpu.dot_dimension_numbers<[1], [1], [0], [0], [0, 0, 1, 0], [], []>} : vector<8x128xbf16>, vector<128x128xbf16>, vector<8x128xf32> -> vector<8x128xf32>
    %cst_169 = arith.constant -1.000000e+30 : f32
    %329 = vector.broadcast %cst_169 : f32 to vector<8x128xf32>
    %330 = arith.select %209, %328, %329 : vector<8x128xi1>, vector<8x128xf32>
    %cst_170 = arith.constant dense<0xFF800000> : vector<8xf32>
    %331 = vector.multi_reduction <maximumf>, %330, %cst_170 [1] : vector<8x128xf32> to vector<8xf32>
    %332 = vector.shape_cast %331 : vector<8xf32> to vector<8x1xf32>
    %333 = vector.broadcast %332 : vector<8x1xf32> to vector<8x128xf32>
    %334 = arith.subf %330, %333 : vector<8x128xf32>
    %335 = math.exp %334 : vector<8x128xf32>
    %cst_171 = arith.constant dense<0.000000e+00> : vector<8xf32>
    %336 = vector.multi_reduction <add>, %335, %cst_171 [1] : vector<8x128xf32> to vector<8xf32>
    %337 = vector.shape_cast %336 : vector<8xf32> to vector<8x1xf32>
    %338 = vector.broadcast %337 : vector<8x1xf32> to vector<8x128xf32>
    %339 = arith.divf %335, %338 : vector<8x128xf32>
    %340 = arith.truncf %339 : vector<8x128xf32> to vector<8x128xbf16>
    %cst_172 = arith.constant dense<0.000000e+00> : vector<8x128xf32>
    %341 = tpu.matmul %340, %174, %cst_172 {dimension_numbers = #tpu.dot_dimension_numbers<[1], [0], [0], [1], [0, 0, 1, 1], [], []>} : vector<8x128xbf16>, vector<128x128xbf16>, vector<8x128xf32> -> vector<8x128xf32>
    %342 = arith.truncf %341 : vector<8x128xf32> to vector<8x128xbf16>
    %cst_173 = arith.constant dense<0.000000e+00> : vector<8x128xf32>
    %343 = tpu.matmul %342, %184, %cst_173 {dimension_numbers = #tpu.dot_dimension_numbers<[1], [0], [0], [1], [0, 0, 1, 1], [], []>} : vector<8x128xbf16>, vector<128x128xbf16>, vector<8x128xf32> -> vector<8x128xf32>
    %cst_174 = arith.constant dense<0.000000e+00> : vector<8x128xf32>
    %344 = tpu.matmul %327, %185, %cst_174 {dimension_numbers = #tpu.dot_dimension_numbers<[1], [0], [0], [1], [0, 0, 1, 1], [], []>} : vector<8x128xbf16>, vector<128x128xbf16>, vector<8x128xf32> -> vector<8x128xf32>
    %345 = arith.addf %343, %344 : vector<8x128xf32>
    %346 = math.tanh %345 : vector<8x128xf32>
    %347 = arith.truncf %346 : vector<8x128xf32> to vector<8x128xbf16>
    %cst_175 = arith.constant dense<0.000000e+00> : vector<8x128xf32>
    %348 = tpu.matmul %347, %186, %cst_175 {dimension_numbers = #tpu.dot_dimension_numbers<[1], [0], [0], [1], [0, 0, 1, 1], [], []>} : vector<8x128xbf16>, vector<128x128xbf16>, vector<8x128xf32> -> vector<8x128xf32>
    %349 = arith.addf %348, %189 : vector<8x128xf32>
    %cst_176 = arith.constant dense<0xFF800000> : vector<8xf32>
    %350 = vector.multi_reduction <maximumf>, %349, %cst_176 [1] : vector<8x128xf32> to vector<8xf32>
    %351 = vector.shape_cast %350 : vector<8xf32> to vector<8x1xf32>
    %352 = vector.broadcast %351 : vector<8x1xf32> to vector<8x128xf32>
    %353 = arith.subf %349, %352 : vector<8x128xf32>
    %354 = math.exp %353 : vector<8x128xf32>
    %cst_177 = arith.constant dense<0.000000e+00> : vector<8xf32>
    %355 = vector.multi_reduction <add>, %354, %cst_177 [1] : vector<8x128xf32> to vector<8xf32>
    %356 = vector.shape_cast %355 : vector<8xf32> to vector<8x1xf32>
    %357 = math.log %356 : vector<8x1xf32>
    %358 = arith.addf %357, %351 : vector<8x1xf32>
    %359 = vector.broadcast %358 : vector<8x1xf32> to vector<8x128xf32>
    %360 = arith.subf %349, %359 : vector<8x128xf32>
    %c2_178 = arith.constant 2 : index
    %c0_179 = arith.constant 0 : index
    %c0_180 = arith.constant 0 : index
    %361 = vector.load %arg12[%c2_178, %c0_179, %c0_180] : memref<8x8x128xf32, #tpu.memory_space<vmem>>, vector<1x8x128xf32>
    %362 = vector.shape_cast %361 : vector<1x8x128xf32> to vector<8x128xf32>
    %363 = vector.shape_cast %360 : vector<8x128xf32> to vector<1x8x128xf32>
    tpu.vector_store %arg12[%c2_178, %c0_179, %c0_180], %363 {strides = array<i32>} : memref<8x8x128xf32, #tpu.memory_space<vmem>>, vector<1x8x128xf32>,
    %364 = vector.broadcast %351 : vector<8x1xf32> to vector<8x128xf32>
    %365 = arith.cmpf oge, %349, %364 : vector<8x128xf32>
    %c128_i32_181 = arith.constant 128 : i32
    %366 = vector.broadcast %c128_i32_181 : i32 to vector<8x128xi32>
    %367 = arith.select %365, %190, %366 : vector<8x128xi1>, vector<8x128xi32>
    %cst_182 = arith.constant dense<2147483647> : vector<8xi32>
    %368 = vector.multi_reduction <minsi>, %367, %cst_182 [1] : vector<8x128xi32> to vector<8xi32>
    %369 = vector.shape_cast %368 : vector<8xi32> to vector<8x1xi32>
    %370 = vector.broadcast %369 : vector<8x1xi32> to vector<8x128xi32>
    %371 = arith.cmpi eq, %370, %190 : vector<8x128xi32>
    %372 = arith.extui %371 : vector<8x128xi1> to vector<8x128xi32>
    %373 = arith.sitofp %372 : vector<8x128xi32> to vector<8x128xf32>
    %374 = arith.truncf %373 : vector<8x128xf32> to vector<8x128xbf16>
    %cst_183 = arith.constant dense<0.000000e+00> : vector<8x128xf32>
    %375 = tpu.matmul %374, %182, %cst_183 {dimension_numbers = #tpu.dot_dimension_numbers<[1], [0], [0], [1], [0, 0, 1, 1], [], []>} : vector<8x128xbf16>, vector<128x128xbf16>, vector<8x128xf32> -> vector<8x128xf32>
    %376 = arith.truncf %326 : vector<8x128xf32> to vector<8x128xbf16>
    %cst_184 = arith.constant dense<0.000000e+00> : vector<8x128xf32>
    %377 = tpu.matmul %376, %183, %cst_184 {dimension_numbers = #tpu.dot_dimension_numbers<[1], [0], [0], [1], [0, 0, 1, 1], [], []>} : vector<8x128xbf16>, vector<128x128xbf16>, vector<8x128xf32> -> vector<8x128xf32>
    %378 = arith.addf %375, %377 : vector<8x128xf32>
    %379 = math.tanh %378 : vector<8x128xf32>
    %380 = arith.truncf %379 : vector<8x128xf32> to vector<8x128xbf16>
    %cst_185 = arith.constant dense<0.000000e+00> : vector<8x128xf32>
    %381 = tpu.matmul %380, %174, %cst_185 {dimension_numbers = #tpu.dot_dimension_numbers<[1], [1], [0], [0], [0, 0, 1, 0], [], []>} : vector<8x128xbf16>, vector<128x128xbf16>, vector<8x128xf32> -> vector<8x128xf32>
    %cst_186 = arith.constant -1.000000e+30 : f32
    %382 = vector.broadcast %cst_186 : f32 to vector<8x128xf32>
    %383 = arith.select %209, %381, %382 : vector<8x128xi1>, vector<8x128xf32>
    %cst_187 = arith.constant dense<0xFF800000> : vector<8xf32>
    %384 = vector.multi_reduction <maximumf>, %383, %cst_187 [1] : vector<8x128xf32> to vector<8xf32>
    %385 = vector.shape_cast %384 : vector<8xf32> to vector<8x1xf32>
    %386 = vector.broadcast %385 : vector<8x1xf32> to vector<8x128xf32>
    %387 = arith.subf %383, %386 : vector<8x128xf32>
    %388 = math.exp %387 : vector<8x128xf32>
    %cst_188 = arith.constant dense<0.000000e+00> : vector<8xf32>
    %389 = vector.multi_reduction <add>, %388, %cst_188 [1] : vector<8x128xf32> to vector<8xf32>
    %390 = vector.shape_cast %389 : vector<8xf32> to vector<8x1xf32>
    %391 = vector.broadcast %390 : vector<8x1xf32> to vector<8x128xf32>
    %392 = arith.divf %388, %391 : vector<8x128xf32>
    %393 = arith.truncf %392 : vector<8x128xf32> to vector<8x128xbf16>
    %cst_189 = arith.constant dense<0.000000e+00> : vector<8x128xf32>
    %394 = tpu.matmul %393, %174, %cst_189 {dimension_numbers = #tpu.dot_dimension_numbers<[1], [0], [0], [1], [0, 0, 1, 1], [], []>} : vector<8x128xbf16>, vector<128x128xbf16>, vector<8x128xf32> -> vector<8x128xf32>
    %395 = arith.truncf %394 : vector<8x128xf32> to vector<8x128xbf16>
    %cst_190 = arith.constant dense<0.000000e+00> : vector<8x128xf32>
    %396 = tpu.matmul %395, %184, %cst_190 {dimension_numbers = #tpu.dot_dimension_numbers<[1], [0], [0], [1], [0, 0, 1, 1], [], []>} : vector<8x128xbf16>, vector<128x128xbf16>, vector<8x128xf32> -> vector<8x128xf32>
    %cst_191 = arith.constant dense<0.000000e+00> : vector<8x128xf32>
    %397 = tpu.matmul %380, %185, %cst_191 {dimension_numbers = #tpu.dot_dimension_numbers<[1], [0], [0], [1], [0, 0, 1, 1], [], []>} : vector<8x128xbf16>, vector<128x128xbf16>, vector<8x128xf32> -> vector<8x128xf32>
    %398 = arith.addf %396, %397 : vector<8x128xf32>
    %399 = math.tanh %398 : vector<8x128xf32>
    %400 = arith.truncf %399 : vector<8x128xf32> to vector<8x128xbf16>
    %cst_192 = arith.constant dense<0.000000e+00> : vector<8x128xf32>
    %401 = tpu.matmul %400, %186, %cst_192 {dimension_numbers = #tpu.dot_dimension_numbers<[1], [0], [0], [1], [0, 0, 1, 1], [], []>} : vector<8x128xbf16>, vector<128x128xbf16>, vector<8x128xf32> -> vector<8x128xf32>
    %402 = arith.addf %401, %189 : vector<8x128xf32>
    %cst_193 = arith.constant dense<0xFF800000> : vector<8xf32>
    %403 = vector.multi_reduction <maximumf>, %402, %cst_193 [1] : vector<8x128xf32> to vector<8xf32>
    %404 = vector.shape_cast %403 : vector<8xf32> to vector<8x1xf32>
    %405 = vector.broadcast %404 : vector<8x1xf32> to vector<8x128xf32>
    %406 = arith.subf %402, %405 : vector<8x128xf32>
    %407 = math.exp %406 : vector<8x128xf32>
    %cst_194 = arith.constant dense<0.000000e+00> : vector<8xf32>
    %408 = vector.multi_reduction <add>, %407, %cst_194 [1] : vector<8x128xf32> to vector<8xf32>
    %409 = vector.shape_cast %408 : vector<8xf32> to vector<8x1xf32>
    %410 = math.log %409 : vector<8x1xf32>
    %411 = arith.addf %410, %404 : vector<8x1xf32>
    %412 = vector.broadcast %411 : vector<8x1xf32> to vector<8x128xf32>
    %413 = arith.subf %402, %412 : vector<8x128xf32>
    %c3_195 = arith.constant 3 : index
    %c0_196 = arith.constant 0 : index
    %c0_197 = arith.constant 0 : index
    %414 = vector.load %arg12[%c3_195, %c0_196, %c0_197] : memref<8x8x128xf32, #tpu.memory_space<vmem>>, vector<1x8x128xf32>
    %415 = vector.shape_cast %414 : vector<1x8x128xf32> to vector<8x128xf32>
    %416 = vector.shape_cast %413 : vector<8x128xf32> to vector<1x8x128xf32>
    tpu.vector_store %arg12[%c3_195, %c0_196, %c0_197], %416 {strides = array<i32>} : memref<8x8x128xf32, #tpu.memory_space<vmem>>, vector<1x8x128xf32>,
    %417 = vector.broadcast %404 : vector<8x1xf32> to vector<8x128xf32>
    %418 = arith.cmpf oge, %402, %417 : vector<8x128xf32>
    %c128_i32_198 = arith.constant 128 : i32
    %419 = vector.broadcast %c128_i32_198 : i32 to vector<8x128xi32>
    %420 = arith.select %418, %190, %419 : vector<8x128xi1>, vector<8x128xi32>
    %cst_199 = arith.constant dense<2147483647> : vector<8xi32>
    %421 = vector.multi_reduction <minsi>, %420, %cst_199 [1] : vector<8x128xi32> to vector<8xi32>
    %422 = vector.shape_cast %421 : vector<8xi32> to vector<8x1xi32>
    %423 = vector.broadcast %422 : vector<8x1xi32> to vector<8x128xi32>
    %424 = arith.cmpi eq, %423, %190 : vector<8x128xi32>
    %425 = arith.extui %424 : vector<8x128xi1> to vector<8x128xi32>
    %426 = arith.sitofp %425 : vector<8x128xi32> to vector<8x128xf32>
    %427 = arith.truncf %426 : vector<8x128xf32> to vector<8x128xbf16>
    %cst_200 = arith.constant dense<0.000000e+00> : vector<8x128xf32>
    %428 = tpu.matmul %427, %182, %cst_200 {dimension_numbers = #tpu.dot_dimension_numbers<[1], [0], [0], [1], [0, 0, 1, 1], [], []>} : vector<8x128xbf16>, vector<128x128xbf16>, vector<8x128xf32> -> vector<8x128xf32>
    %429 = arith.truncf %379 : vector<8x128xf32> to vector<8x128xbf16>
    %cst_201 = arith.constant dense<0.000000e+00> : vector<8x128xf32>
    %430 = tpu.matmul %429, %183, %cst_201 {dimension_numbers = #tpu.dot_dimension_numbers<[1], [0], [0], [1], [0, 0, 1, 1], [], []>} : vector<8x128xbf16>, vector<128x128xbf16>, vector<8x128xf32> -> vector<8x128xf32>
    %431 = arith.addf %428, %430 : vector<8x128xf32>
    %432 = math.tanh %431 : vector<8x128xf32>
    %433 = arith.truncf %432 : vector<8x128xf32> to vector<8x128xbf16>
    %cst_202 = arith.constant dense<0.000000e+00> : vector<8x128xf32>
    %434 = tpu.matmul %433, %174, %cst_202 {dimension_numbers = #tpu.dot_dimension_numbers<[1], [1], [0], [0], [0, 0, 1, 0], [], []>} : vector<8x128xbf16>, vector<128x128xbf16>, vector<8x128xf32> -> vector<8x128xf32>
    %cst_203 = arith.constant -1.000000e+30 : f32
    %435 = vector.broadcast %cst_203 : f32 to vector<8x128xf32>
    %436 = arith.select %209, %434, %435 : vector<8x128xi1>, vector<8x128xf32>
    %cst_204 = arith.constant dense<0xFF800000> : vector<8xf32>
    %437 = vector.multi_reduction <maximumf>, %436, %cst_204 [1] : vector<8x128xf32> to vector<8xf32>
    %438 = vector.shape_cast %437 : vector<8xf32> to vector<8x1xf32>
    %439 = vector.broadcast %438 : vector<8x1xf32> to vector<8x128xf32>
    %440 = arith.subf %436, %439 : vector<8x128xf32>
    %441 = math.exp %440 : vector<8x128xf32>
    %cst_205 = arith.constant dense<0.000000e+00> : vector<8xf32>
    %442 = vector.multi_reduction <add>, %441, %cst_205 [1] : vector<8x128xf32> to vector<8xf32>
    %443 = vector.shape_cast %442 : vector<8xf32> to vector<8x1xf32>
    %444 = vector.broadcast %443 : vector<8x1xf32> to vector<8x128xf32>
    %445 = arith.divf %441, %444 : vector<8x128xf32>
    %446 = arith.truncf %445 : vector<8x128xf32> to vector<8x128xbf16>
    %cst_206 = arith.constant dense<0.000000e+00> : vector<8x128xf32>
    %447 = tpu.matmul %446, %174, %cst_206 {dimension_numbers = #tpu.dot_dimension_numbers<[1], [0], [0], [1], [0, 0, 1, 1], [], []>} : vector<8x128xbf16>, vector<128x128xbf16>, vector<8x128xf32> -> vector<8x128xf32>
    %448 = arith.truncf %447 : vector<8x128xf32> to vector<8x128xbf16>
    %cst_207 = arith.constant dense<0.000000e+00> : vector<8x128xf32>
    %449 = tpu.matmul %448, %184, %cst_207 {dimension_numbers = #tpu.dot_dimension_numbers<[1], [0], [0], [1], [0, 0, 1, 1], [], []>} : vector<8x128xbf16>, vector<128x128xbf16>, vector<8x128xf32> -> vector<8x128xf32>
    %cst_208 = arith.constant dense<0.000000e+00> : vector<8x128xf32>
    %450 = tpu.matmul %433, %185, %cst_208 {dimension_numbers = #tpu.dot_dimension_numbers<[1], [0], [0], [1], [0, 0, 1, 1], [], []>} : vector<8x128xbf16>, vector<128x128xbf16>, vector<8x128xf32> -> vector<8x128xf32>
    %451 = arith.addf %449, %450 : vector<8x128xf32>
    %452 = math.tanh %451 : vector<8x128xf32>
    %453 = arith.truncf %452 : vector<8x128xf32> to vector<8x128xbf16>
    %cst_209 = arith.constant dense<0.000000e+00> : vector<8x128xf32>
    %454 = tpu.matmul %453, %186, %cst_209 {dimension_numbers = #tpu.dot_dimension_numbers<[1], [0], [0], [1], [0, 0, 1, 1], [], []>} : vector<8x128xbf16>, vector<128x128xbf16>, vector<8x128xf32> -> vector<8x128xf32>
    %455 = arith.addf %454, %189 : vector<8x128xf32>
    %cst_210 = arith.constant dense<0xFF800000> : vector<8xf32>
    %456 = vector.multi_reduction <maximumf>, %455, %cst_210 [1] : vector<8x128xf32> to vector<8xf32>
    %457 = vector.shape_cast %456 : vector<8xf32> to vector<8x1xf32>
    %458 = vector.broadcast %457 : vector<8x1xf32> to vector<8x128xf32>
    %459 = arith.subf %455, %458 : vector<8x128xf32>
    %460 = math.exp %459 : vector<8x128xf32>
    %cst_211 = arith.constant dense<0.000000e+00> : vector<8xf32>
    %461 = vector.multi_reduction <add>, %460, %cst_211 [1] : vector<8x128xf32> to vector<8xf32>
    %462 = vector.shape_cast %461 : vector<8xf32> to vector<8x1xf32>
    %463 = math.log %462 : vector<8x1xf32>
    %464 = arith.addf %463, %457 : vector<8x1xf32>
    %465 = vector.broadcast %464 : vector<8x1xf32> to vector<8x128xf32>
    %466 = arith.subf %455, %465 : vector<8x128xf32>
    %c4_212 = arith.constant 4 : index
    %c0_213 = arith.constant 0 : index
    %c0_214 = arith.constant 0 : index
    %467 = vector.load %arg12[%c4_212, %c0_213, %c0_214] : memref<8x8x128xf32, #tpu.memory_space<vmem>>, vector<1x8x128xf32>
    %468 = vector.shape_cast %467 : vector<1x8x128xf32> to vector<8x128xf32>
    %469 = vector.shape_cast %466 : vector<8x128xf32> to vector<1x8x128xf32>
    tpu.vector_store %arg12[%c4_212, %c0_213, %c0_214], %469 {strides = array<i32>} : memref<8x8x128xf32, #tpu.memory_space<vmem>>, vector<1x8x128xf32>,
    %470 = vector.broadcast %457 : vector<8x1xf32> to vector<8x128xf32>
    %471 = arith.cmpf oge, %455, %470 : vector<8x128xf32>
    %c128_i32_215 = arith.constant 128 : i32
    %472 = vector.broadcast %c128_i32_215 : i32 to vector<8x128xi32>
    %473 = arith.select %471, %190, %472 : vector<8x128xi1>, vector<8x128xi32>
    %cst_216 = arith.constant dense<2147483647> : vector<8xi32>
    %474 = vector.multi_reduction <minsi>, %473, %cst_216 [1] : vector<8x128xi32> to vector<8xi32>
    %475 = vector.shape_cast %474 : vector<8xi32> to vector<8x1xi32>
    %476 = vector.broadcast %475 : vector<8x1xi32> to vector<8x128xi32>
    %477 = arith.cmpi eq, %476, %190 : vector<8x128xi32>
    %478 = arith.extui %477 : vector<8x128xi1> to vector<8x128xi32>
    %479 = arith.sitofp %478 : vector<8x128xi32> to vector<8x128xf32>
    %480 = arith.truncf %479 : vector<8x128xf32> to vector<8x128xbf16>
    %cst_217 = arith.constant dense<0.000000e+00> : vector<8x128xf32>
    %481 = tpu.matmul %480, %182, %cst_217 {dimension_numbers = #tpu.dot_dimension_numbers<[1], [0], [0], [1], [0, 0, 1, 1], [], []>} : vector<8x128xbf16>, vector<128x128xbf16>, vector<8x128xf32> -> vector<8x128xf32>
    %482 = arith.truncf %432 : vector<8x128xf32> to vector<8x128xbf16>
    %cst_218 = arith.constant dense<0.000000e+00> : vector<8x128xf32>
    %483 = tpu.matmul %482, %183, %cst_218 {dimension_numbers = #tpu.dot_dimension_numbers<[1], [0], [0], [1], [0, 0, 1, 1], [], []>} : vector<8x128xbf16>, vector<128x128xbf16>, vector<8x128xf32> -> vector<8x128xf32>
    %484 = arith.addf %481, %483 : vector<8x128xf32>
    %485 = math.tanh %484 : vector<8x128xf32>
    %486 = arith.truncf %485 : vector<8x128xf32> to vector<8x128xbf16>
    %cst_219 = arith.constant dense<0.000000e+00> : vector<8x128xf32>
    %487 = tpu.matmul %486, %174, %cst_219 {dimension_numbers = #tpu.dot_dimension_numbers<[1], [1], [0], [0], [0, 0, 1, 0], [], []>} : vector<8x128xbf16>, vector<128x128xbf16>, vector<8x128xf32> -> vector<8x128xf32>
    %cst_220 = arith.constant -1.000000e+30 : f32
    %488 = vector.broadcast %cst_220 : f32 to vector<8x128xf32>
    %489 = arith.select %209, %487, %488 : vector<8x128xi1>, vector<8x128xf32>
    %cst_221 = arith.constant dense<0xFF800000> : vector<8xf32>
    %490 = vector.multi_reduction <maximumf>, %489, %cst_221 [1] : vector<8x128xf32> to vector<8xf32>
    %491 = vector.shape_cast %490 : vector<8xf32> to vector<8x1xf32>
    %492 = vector.broadcast %491 : vector<8x1xf32> to vector<8x128xf32>
    %493 = arith.subf %489, %492 : vector<8x128xf32>
    %494 = math.exp %493 : vector<8x128xf32>
    %cst_222 = arith.constant dense<0.000000e+00> : vector<8xf32>
    %495 = vector.multi_reduction <add>, %494, %cst_222 [1] : vector<8x128xf32> to vector<8xf32>
    %496 = vector.shape_cast %495 : vector<8xf32> to vector<8x1xf32>
    %497 = vector.broadcast %496 : vector<8x1xf32> to vector<8x128xf32>
    %498 = arith.divf %494, %497 : vector<8x128xf32>
    %499 = arith.truncf %498 : vector<8x128xf32> to vector<8x128xbf16>
    %cst_223 = arith.constant dense<0.000000e+00> : vector<8x128xf32>
    %500 = tpu.matmul %499, %174, %cst_223 {dimension_numbers = #tpu.dot_dimension_numbers<[1], [0], [0], [1], [0, 0, 1, 1], [], []>} : vector<8x128xbf16>, vector<128x128xbf16>, vector<8x128xf32> -> vector<8x128xf32>
    %501 = arith.truncf %500 : vector<8x128xf32> to vector<8x128xbf16>
    %cst_224 = arith.constant dense<0.000000e+00> : vector<8x128xf32>
    %502 = tpu.matmul %501, %184, %cst_224 {dimension_numbers = #tpu.dot_dimension_numbers<[1], [0], [0], [1], [0, 0, 1, 1], [], []>} : vector<8x128xbf16>, vector<128x128xbf16>, vector<8x128xf32> -> vector<8x128xf32>
    %cst_225 = arith.constant dense<0.000000e+00> : vector<8x128xf32>
    %503 = tpu.matmul %486, %185, %cst_225 {dimension_numbers = #tpu.dot_dimension_numbers<[1], [0], [0], [1], [0, 0, 1, 1], [], []>} : vector<8x128xbf16>, vector<128x128xbf16>, vector<8x128xf32> -> vector<8x128xf32>
    %504 = arith.addf %502, %503 : vector<8x128xf32>
    %505 = math.tanh %504 : vector<8x128xf32>
    %506 = arith.truncf %505 : vector<8x128xf32> to vector<8x128xbf16>
    %cst_226 = arith.constant dense<0.000000e+00> : vector<8x128xf32>
    %507 = tpu.matmul %506, %186, %cst_226 {dimension_numbers = #tpu.dot_dimension_numbers<[1], [0], [0], [1], [0, 0, 1, 1], [], []>} : vector<8x128xbf16>, vector<128x128xbf16>, vector<8x128xf32> -> vector<8x128xf32>
    %508 = arith.addf %507, %189 : vector<8x128xf32>
    %cst_227 = arith.constant dense<0xFF800000> : vector<8xf32>
    %509 = vector.multi_reduction <maximumf>, %508, %cst_227 [1] : vector<8x128xf32> to vector<8xf32>
    %510 = vector.shape_cast %509 : vector<8xf32> to vector<8x1xf32>
    %511 = vector.broadcast %510 : vector<8x1xf32> to vector<8x128xf32>
    %512 = arith.subf %508, %511 : vector<8x128xf32>
    %513 = math.exp %512 : vector<8x128xf32>
    %cst_228 = arith.constant dense<0.000000e+00> : vector<8xf32>
    %514 = vector.multi_reduction <add>, %513, %cst_228 [1] : vector<8x128xf32> to vector<8xf32>
    %515 = vector.shape_cast %514 : vector<8xf32> to vector<8x1xf32>
    %516 = math.log %515 : vector<8x1xf32>
    %517 = arith.addf %516, %510 : vector<8x1xf32>
    %518 = vector.broadcast %517 : vector<8x1xf32> to vector<8x128xf32>
    %519 = arith.subf %508, %518 : vector<8x128xf32>
    %c5_229 = arith.constant 5 : index
    %c0_230 = arith.constant 0 : index
    %c0_231 = arith.constant 0 : index
    %520 = vector.load %arg12[%c5_229, %c0_230, %c0_231] : memref<8x8x128xf32, #tpu.memory_space<vmem>>, vector<1x8x128xf32>
    %521 = vector.shape_cast %520 : vector<1x8x128xf32> to vector<8x128xf32>
    %522 = vector.shape_cast %519 : vector<8x128xf32> to vector<1x8x128xf32>
    tpu.vector_store %arg12[%c5_229, %c0_230, %c0_231], %522 {strides = array<i32>} : memref<8x8x128xf32, #tpu.memory_space<vmem>>, vector<1x8x128xf32>,
    %523 = vector.broadcast %510 : vector<8x1xf32> to vector<8x128xf32>
    %524 = arith.cmpf oge, %508, %523 : vector<8x128xf32>
    %c128_i32_232 = arith.constant 128 : i32
    %525 = vector.broadcast %c128_i32_232 : i32 to vector<8x128xi32>
    %526 = arith.select %524, %190, %525 : vector<8x128xi1>, vector<8x128xi32>
    %cst_233 = arith.constant dense<2147483647> : vector<8xi32>
    %527 = vector.multi_reduction <minsi>, %526, %cst_233 [1] : vector<8x128xi32> to vector<8xi32>
    %528 = vector.shape_cast %527 : vector<8xi32> to vector<8x1xi32>
    %529 = vector.broadcast %528 : vector<8x1xi32> to vector<8x128xi32>
    %530 = arith.cmpi eq, %529, %190 : vector<8x128xi32>
    %531 = arith.extui %530 : vector<8x128xi1> to vector<8x128xi32>
    %532 = arith.sitofp %531 : vector<8x128xi32> to vector<8x128xf32>
    %533 = arith.truncf %532 : vector<8x128xf32> to vector<8x128xbf16>
    %cst_234 = arith.constant dense<0.000000e+00> : vector<8x128xf32>
    %534 = tpu.matmul %533, %182, %cst_234 {dimension_numbers = #tpu.dot_dimension_numbers<[1], [0], [0], [1], [0, 0, 1, 1], [], []>} : vector<8x128xbf16>, vector<128x128xbf16>, vector<8x128xf32> -> vector<8x128xf32>
    %535 = arith.truncf %485 : vector<8x128xf32> to vector<8x128xbf16>
    %cst_235 = arith.constant dense<0.000000e+00> : vector<8x128xf32>
    %536 = tpu.matmul %535, %183, %cst_235 {dimension_numbers = #tpu.dot_dimension_numbers<[1], [0], [0], [1], [0, 0, 1, 1], [], []>} : vector<8x128xbf16>, vector<128x128xbf16>, vector<8x128xf32> -> vector<8x128xf32>
    %537 = arith.addf %534, %536 : vector<8x128xf32>
    %538 = math.tanh %537 : vector<8x128xf32>
    %539 = arith.truncf %538 : vector<8x128xf32> to vector<8x128xbf16>
    %cst_236 = arith.constant dense<0.000000e+00> : vector<8x128xf32>
    %540 = tpu.matmul %539, %174, %cst_236 {dimension_numbers = #tpu.dot_dimension_numbers<[1], [1], [0], [0], [0, 0, 1, 0], [], []>} : vector<8x128xbf16>, vector<128x128xbf16>, vector<8x128xf32> -> vector<8x128xf32>
    %cst_237 = arith.constant -1.000000e+30 : f32
    %541 = vector.broadcast %cst_237 : f32 to vector<8x128xf32>
    %542 = arith.select %209, %540, %541 : vector<8x128xi1>, vector<8x128xf32>
    %cst_238 = arith.constant dense<0xFF800000> : vector<8xf32>
    %543 = vector.multi_reduction <maximumf>, %542, %cst_238 [1] : vector<8x128xf32> to vector<8xf32>
    %544 = vector.shape_cast %543 : vector<8xf32> to vector<8x1xf32>
    %545 = vector.broadcast %544 : vector<8x1xf32> to vector<8x128xf32>
    %546 = arith.subf %542, %545 : vector<8x128xf32>
    %547 = math.exp %546 : vector<8x128xf32>
    %cst_239 = arith.constant dense<0.000000e+00> : vector<8xf32>
    %548 = vector.multi_reduction <add>, %547, %cst_239 [1] : vector<8x128xf32> to vector<8xf32>
    %549 = vector.shape_cast %548 : vector<8xf32> to vector<8x1xf32>
    %550 = vector.broadcast %549 : vector<8x1xf32> to vector<8x128xf32>
    %551 = arith.divf %547, %550 : vector<8x128xf32>
    %552 = arith.truncf %551 : vector<8x128xf32> to vector<8x128xbf16>
    %cst_240 = arith.constant dense<0.000000e+00> : vector<8x128xf32>
    %553 = tpu.matmul %552, %174, %cst_240 {dimension_numbers = #tpu.dot_dimension_numbers<[1], [0], [0], [1], [0, 0, 1, 1], [], []>} : vector<8x128xbf16>, vector<128x128xbf16>, vector<8x128xf32> -> vector<8x128xf32>
    %554 = arith.truncf %553 : vector<8x128xf32> to vector<8x128xbf16>
    %cst_241 = arith.constant dense<0.000000e+00> : vector<8x128xf32>
    %555 = tpu.matmul %554, %184, %cst_241 {dimension_numbers = #tpu.dot_dimension_numbers<[1], [0], [0], [1], [0, 0, 1, 1], [], []>} : vector<8x128xbf16>, vector<128x128xbf16>, vector<8x128xf32> -> vector<8x128xf32>
    %cst_242 = arith.constant dense<0.000000e+00> : vector<8x128xf32>
    %556 = tpu.matmul %539, %185, %cst_242 {dimension_numbers = #tpu.dot_dimension_numbers<[1], [0], [0], [1], [0, 0, 1, 1], [], []>} : vector<8x128xbf16>, vector<128x128xbf16>, vector<8x128xf32> -> vector<8x128xf32>
    %557 = arith.addf %555, %556 : vector<8x128xf32>
    %558 = math.tanh %557 : vector<8x128xf32>
    %559 = arith.truncf %558 : vector<8x128xf32> to vector<8x128xbf16>
    %cst_243 = arith.constant dense<0.000000e+00> : vector<8x128xf32>
    %560 = tpu.matmul %559, %186, %cst_243 {dimension_numbers = #tpu.dot_dimension_numbers<[1], [0], [0], [1], [0, 0, 1, 1], [], []>} : vector<8x128xbf16>, vector<128x128xbf16>, vector<8x128xf32> -> vector<8x128xf32>
    %561 = arith.addf %560, %189 : vector<8x128xf32>
    %cst_244 = arith.constant dense<0xFF800000> : vector<8xf32>
    %562 = vector.multi_reduction <maximumf>, %561, %cst_244 [1] : vector<8x128xf32> to vector<8xf32>
    %563 = vector.shape_cast %562 : vector<8xf32> to vector<8x1xf32>
    %564 = vector.broadcast %563 : vector<8x1xf32> to vector<8x128xf32>
    %565 = arith.subf %561, %564 : vector<8x128xf32>
    %566 = math.exp %565 : vector<8x128xf32>
    %cst_245 = arith.constant dense<0.000000e+00> : vector<8xf32>
    %567 = vector.multi_reduction <add>, %566, %cst_245 [1] : vector<8x128xf32> to vector<8xf32>
    %568 = vector.shape_cast %567 : vector<8xf32> to vector<8x1xf32>
    %569 = math.log %568 : vector<8x1xf32>
    %570 = arith.addf %569, %563 : vector<8x1xf32>
    %571 = vector.broadcast %570 : vector<8x1xf32> to vector<8x128xf32>
    %572 = arith.subf %561, %571 : vector<8x128xf32>
    %c6_246 = arith.constant 6 : index
    %c0_247 = arith.constant 0 : index
    %c0_248 = arith.constant 0 : index
    %573 = vector.load %arg12[%c6_246, %c0_247, %c0_248] : memref<8x8x128xf32, #tpu.memory_space<vmem>>, vector<1x8x128xf32>
    %574 = vector.shape_cast %573 : vector<1x8x128xf32> to vector<8x128xf32>
    %575 = vector.shape_cast %572 : vector<8x128xf32> to vector<1x8x128xf32>
    tpu.vector_store %arg12[%c6_246, %c0_247, %c0_248], %575 {strides = array<i32>} : memref<8x8x128xf32, #tpu.memory_space<vmem>>, vector<1x8x128xf32>,
    %576 = vector.broadcast %563 : vector<8x1xf32> to vector<8x128xf32>
    %577 = arith.cmpf oge, %561, %576 : vector<8x128xf32>
    %c128_i32_249 = arith.constant 128 : i32
    %578 = vector.broadcast %c128_i32_249 : i32 to vector<8x128xi32>
    %579 = arith.select %577, %190, %578 : vector<8x128xi1>, vector<8x128xi32>
    %cst_250 = arith.constant dense<2147483647> : vector<8xi32>
    %580 = vector.multi_reduction <minsi>, %579, %cst_250 [1] : vector<8x128xi32> to vector<8xi32>
    %581 = vector.shape_cast %580 : vector<8xi32> to vector<8x1xi32>
    %582 = vector.broadcast %581 : vector<8x1xi32> to vector<8x128xi32>
    %583 = arith.cmpi eq, %582, %190 : vector<8x128xi32>
    %584 = arith.extui %583 : vector<8x128xi1> to vector<8x128xi32>
    %585 = arith.sitofp %584 : vector<8x128xi32> to vector<8x128xf32>
    %586 = arith.truncf %585 : vector<8x128xf32> to vector<8x128xbf16>
    %cst_251 = arith.constant dense<0.000000e+00> : vector<8x128xf32>
    %587 = tpu.matmul %586, %182, %cst_251 {dimension_numbers = #tpu.dot_dimension_numbers<[1], [0], [0], [1], [0, 0, 1, 1], [], []>} : vector<8x128xbf16>, vector<128x128xbf16>, vector<8x128xf32> -> vector<8x128xf32>
    %588 = arith.truncf %538 : vector<8x128xf32> to vector<8x128xbf16>
    %cst_252 = arith.constant dense<0.000000e+00> : vector<8x128xf32>
    %589 = tpu.matmul %588, %183, %cst_252 {dimension_numbers = #tpu.dot_dimension_numbers<[1], [0], [0], [1], [0, 0, 1, 1], [], []>} : vector<8x128xbf16>, vector<128x128xbf16>, vector<8x128xf32> -> vector<8x128xf32>
    %590 = arith.addf %587, %589 : vector<8x128xf32>
    %591 = math.tanh %590 : vector<8x128xf32>
    %592 = arith.truncf %591 : vector<8x128xf32> to vector<8x128xbf16>
    %cst_253 = arith.constant dense<0.000000e+00> : vector<8x128xf32>
    %593 = tpu.matmul %592, %174, %cst_253 {dimension_numbers = #tpu.dot_dimension_numbers<[1], [1], [0], [0], [0, 0, 1, 0], [], []>} : vector<8x128xbf16>, vector<128x128xbf16>, vector<8x128xf32> -> vector<8x128xf32>
    %cst_254 = arith.constant -1.000000e+30 : f32
    %594 = vector.broadcast %cst_254 : f32 to vector<8x128xf32>
    %595 = arith.select %209, %593, %594 : vector<8x128xi1>, vector<8x128xf32>
    %cst_255 = arith.constant dense<0xFF800000> : vector<8xf32>
    %596 = vector.multi_reduction <maximumf>, %595, %cst_255 [1] : vector<8x128xf32> to vector<8xf32>
    %597 = vector.shape_cast %596 : vector<8xf32> to vector<8x1xf32>
    %598 = vector.broadcast %597 : vector<8x1xf32> to vector<8x128xf32>
    %599 = arith.subf %595, %598 : vector<8x128xf32>
    %600 = math.exp %599 : vector<8x128xf32>
    %cst_256 = arith.constant dense<0.000000e+00> : vector<8xf32>
    %601 = vector.multi_reduction <add>, %600, %cst_256 [1] : vector<8x128xf32> to vector<8xf32>
    %602 = vector.shape_cast %601 : vector<8xf32> to vector<8x1xf32>
    %603 = vector.broadcast %602 : vector<8x1xf32> to vector<8x128xf32>
    %604 = arith.divf %600, %603 : vector<8x128xf32>
    %605 = arith.truncf %604 : vector<8x128xf32> to vector<8x128xbf16>
    %cst_257 = arith.constant dense<0.000000e+00> : vector<8x128xf32>
    %606 = tpu.matmul %605, %174, %cst_257 {dimension_numbers = #tpu.dot_dimension_numbers<[1], [0], [0], [1], [0, 0, 1, 1], [], []>} : vector<8x128xbf16>, vector<128x128xbf16>, vector<8x128xf32> -> vector<8x128xf32>
    %607 = arith.truncf %606 : vector<8x128xf32> to vector<8x128xbf16>
    %cst_258 = arith.constant dense<0.000000e+00> : vector<8x128xf32>
    %608 = tpu.matmul %607, %184, %cst_258 {dimension_numbers = #tpu.dot_dimension_numbers<[1], [0], [0], [1], [0, 0, 1, 1], [], []>} : vector<8x128xbf16>, vector<128x128xbf16>, vector<8x128xf32> -> vector<8x128xf32>
    %cst_259 = arith.constant dense<0.000000e+00> : vector<8x128xf32>
    %609 = tpu.matmul %592, %185, %cst_259 {dimension_numbers = #tpu.dot_dimension_numbers<[1], [0], [0], [1], [0, 0, 1, 1], [], []>} : vector<8x128xbf16>, vector<128x128xbf16>, vector<8x128xf32> -> vector<8x128xf32>
    %610 = arith.addf %608, %609 : vector<8x128xf32>
    %611 = math.tanh %610 : vector<8x128xf32>
    %612 = arith.truncf %611 : vector<8x128xf32> to vector<8x128xbf16>
    %cst_260 = arith.constant dense<0.000000e+00> : vector<8x128xf32>
    %613 = tpu.matmul %612, %186, %cst_260 {dimension_numbers = #tpu.dot_dimension_numbers<[1], [0], [0], [1], [0, 0, 1, 1], [], []>} : vector<8x128xbf16>, vector<128x128xbf16>, vector<8x128xf32> -> vector<8x128xf32>
    %614 = arith.addf %613, %189 : vector<8x128xf32>
    %cst_261 = arith.constant dense<0xFF800000> : vector<8xf32>
    %615 = vector.multi_reduction <maximumf>, %614, %cst_261 [1] : vector<8x128xf32> to vector<8xf32>
    %616 = vector.shape_cast %615 : vector<8xf32> to vector<8x1xf32>
    %617 = vector.broadcast %616 : vector<8x1xf32> to vector<8x128xf32>
    %618 = arith.subf %614, %617 : vector<8x128xf32>
    %619 = math.exp %618 : vector<8x128xf32>
    %cst_262 = arith.constant dense<0.000000e+00> : vector<8xf32>
    %620 = vector.multi_reduction <add>, %619, %cst_262 [1] : vector<8x128xf32> to vector<8xf32>
    %621 = vector.shape_cast %620 : vector<8xf32> to vector<8x1xf32>
    %622 = math.log %621 : vector<8x1xf32>
    %623 = arith.addf %622, %616 : vector<8x1xf32>
    %624 = vector.broadcast %623 : vector<8x1xf32> to vector<8x128xf32>
    %625 = arith.subf %614, %624 : vector<8x128xf32>
    %c7_263 = arith.constant 7 : index
    %c0_264 = arith.constant 0 : index
    %c0_265 = arith.constant 0 : index
    %626 = vector.load %arg12[%c7_263, %c0_264, %c0_265] : memref<8x8x128xf32, #tpu.memory_space<vmem>>, vector<1x8x128xf32>
    %627 = vector.shape_cast %626 : vector<1x8x128xf32> to vector<8x128xf32>
    %628 = vector.shape_cast %625 : vector<8x128xf32> to vector<1x8x128xf32>
    tpu.vector_store %arg12[%c7_263, %c0_264, %c0_265], %628 {strides = array<i32>} : memref<8x8x128xf32, #tpu.memory_space<vmem>>, vector<1x8x128xf32>,
    return
  }
}

</mosaic_0001>

<bundles_post_ra>
// kernel: tpu_custom_call.1
= control target key start
LH: loop header
LB: loop body
LE: loop exit
PB: predicated region body
PF: predicated region fallthrough
CT: control target
= control target key end

     0   :  { %17 = vsyncpa [#allocation5], 0  ;;  %s9312_s0 = inlined_call_operand.hbm [shape: f32[16,8,128], index: 0, kind: input, shape index: {}]   ;;  %s9313_s1 = inlined_call_operand.hbm [shape: bf16[128,128], index: 1, kind: input, shape index: {}]   ;;  %s9314_s2 = inlined_call_operand.hbm [shape: bf16[128,128], index: 2, kind: input, shape index: {}]   ;;  %s9315_s3 = inlined_call_operand.vmem [shape: f32[1,128], index: 3, kind: input, shape index: {}]   ;;  %s9316_s4 = inlined_call_operand.hbm [shape: bf16[128,128], index: 4, kind: input, shape index: {}]   ;;  %s9317_s5 = inlined_call_operand.hbm [shape: bf16[128,128], index: 5, kind: input, shape index: {}]   ;;  %s9318_s6 = inlined_call_operand.hbm [shape: bf16[128,128], index: 6, kind: input, shape index: {}]   ;;  %s9319_s7 = inlined_call_operand.vmem [shape: f32[1,128], index: 7, kind: input, shape index: {}]   ;;  %s9320_s8 = inlined_call_operand.hbm [shape: bf16[128,128], index: 8, kind: input, shape index: {}]   ;;  %s9321_s9 = inlined_call_operand.hbm [shape: bf16[128,128], index: 9, kind: input, shape index: {}]   ;;  %s9322_s10 = inlined_call_operand.hbm [shape: bf16[128,128], index: 10, kind: input, shape index: {}]   ;;  %s9323_s11 = inlined_call_operand.vmem [shape: f32[1,128], index: 11, kind: input, shape index: {}]   ;;  %s9324_s12 = inlined_call_operand.hbm [shape: f32[8,8,128], index: 12, kind: output, shape index: {}]  }
   0x1   :  { %18 = vsyncpa [#allocation8], 0 }
   0x2   :  { %19 = vsyncpa [#allocation11], 0 }
   0x3   :  { %20 = vsyncpa [#allocation14], 0 }
   0x4   :  { %21 = vsyncpa [#allocation17], 0 }
   0x5   :  { %22 = vsyncpa [#allocation6], 0  ;;  %s7239_s21 = smov [#allocation7]   ;;  %s7007_s25 = scalar_lea.hbm %s9313_s1, 1024 }
   0x6   :  { %s40_s22 = sshll.u32 %s7239_s21, 4  ;;  %p7008_p0 = scmp.ne.s32.totalorder %s9313_s1, %s7007_s25  ;;  %s41_s22 = int_to_ptr.vmem [resolvable:$true] %s40_s22 }
   0x7   :  { %p7011_p1 = scmp.lt.u32.totalorder %s7007_s25, %s9313_s1 }
   0x9   :  { %p7013_p2 = pnand %p7011_p1, %p7008_p0 }
   0xb   :  { %7016 = shalt.err (!%p7013_p2)
}
   0xc   :  { %s7017_s30 = scalar_lea.vmem %s41_s22, 1024  ;;  %p7022_p4 = scmp.lt.s32.totalorder %s41_s22, %s41_s22 }
   0xd   :  { %p7018_p3 = scmp.ne.s32.totalorder %s41_s22, %s7017_s30  ;;  %p7023_p5 = scmp.lt.s32.totalorder %s7017_s30, %s7017_s30 }
   0xf   :  { %p7024_p6 = por %p7023_p5, %p7022_p4 }
  0x11   :  { %p7025_p7 = pnand %p7024_p6, %p7018_p3 }
  0x13   :  { %7028 = shalt.err (!%p7025_p7)
}
  0x14   :  { %s7240_s13 = smov 64   ;;  %s7241_s14 = smov 4  }
  0x15   :  { %46 = dma.hbm_to_vmem [thread:$0]  %s9313_s1, 1024, %s41_s22, [#allocation8], %s7240_s13, %s7240_s13, %s7241_s14  }
  0x16   :  { %s7242_s17 = smov [#allocation10]   ;;  %s7243_s19 = smov [#allocation13]  }
  0x17   :  { %s66_s18 = sshll.u32 %s7242_s17, 4  ;;  %s90_s20 = sshll.u32 %s7243_s19, 4  ;;  %s67_s18 = int_to_ptr.vmem [resolvable:$true] %s66_s18  ;;  %s91_s20 = int_to_ptr.vmem [resolvable:$true] %s90_s20 }
  0x18   :  { %s7029_s24 = scalar_lea.hbm %s9316_s4, 1024 }
  0x19   :  { %p7030_p8 = scmp.ne.s32.totalorder %s9316_s4, %s7029_s24  ;;  %p7033_p9 = scmp.lt.u32.totalorder %s7029_s24, %s9316_s4 }
  0x1b   :  { %p7035_p10 = pnand %p7033_p9, %p7030_p8 }
  0x1d   :  { %7038 = shalt.err (!%p7035_p10)
}
  0x1e   :  { %s7039_s1 = scalar_lea.vmem %s67_s18, 1024  ;;  %p7044_p12 = scmp.lt.s32.totalorder %s67_s18, %s67_s18 }
  0x1f   :  { %p7040_p11 = scmp.ne.s32.totalorder %s67_s18, %s7039_s1  ;;  %p7045_p13 = scmp.lt.s32.totalorder %s7039_s1, %s7039_s1 }
  0x21   :  { %p7046_p0 = por %p7045_p13, %p7044_p12 }
  0x23   :  { %p7047_p1 = pnand %p7046_p0, %p7040_p11 }
  0x25   :  { %7050 = shalt.err (!%p7047_p1)
}
  0x26   :  { %72 = dma.hbm_to_vmem [thread:$0]  %s9316_s4, 1024, %s67_s18, [#allocation11], %s7240_s13, %s7240_s13, %s7241_s14  }
  0x27   :  { %s7051_s16 = scalar_lea.hbm %s9318_s6, 1024 }
  0x28   :  { %p7052_p2 = scmp.ne.s32.totalorder %s9318_s6, %s7051_s16  ;;  %p7055_p3 = scmp.lt.u32.totalorder %s7051_s16, %s9318_s6 }
  0x2a   :  { %p7057_p4 = pnand %p7055_p3, %p7052_p2 }
  0x2c   :  { %7060 = shalt.err (!%p7057_p4)
}
  0x2d   :  { %s7061_s24 = scalar_lea.vmem %s91_s20, 1024  ;;  %p7066_p6 = scmp.lt.s32.totalorder %s91_s20, %s91_s20 }
  0x2e   :  { %p7062_p5 = scmp.ne.s32.totalorder %s91_s20, %s7061_s24  ;;  %p7067_p7 = scmp.lt.s32.totalorder %s7061_s24, %s7061_s24 }
  0x30   :  { %p7068_p8 = por %p7067_p7, %p7066_p6 }
  0x32   :  { %p7069_p9 = pnand %p7068_p8, %p7062_p5 }
  0x34   :  { %7072 = shalt.err (!%p7069_p9)
}
  0x35   :  { %96 = dma.hbm_to_vmem [thread:$0]  %s9318_s6, 1024, %s91_s20, [#allocation14], %s7240_s13, %s7240_s13, %s7241_s14  }
  0x36   :  { %s7244_s25 = smov [#allocation16]   ;;  %s7245_s27 = smov [#allocation4]  }
  0x37   :  { %s116_s26 = sshll.u32 %s7244_s25, 4  ;;  %s28_s28 = sshll.u32 %s7245_s27, 4  ;;  %s117_s26 = int_to_ptr.vmem [resolvable:$true] %s116_s26  ;;  %s29_s28 = int_to_ptr.vmem [resolvable:$true] %s28_s28 }
  0x38   :  { %s7073_s29 = scalar_lea.hbm %s9321_s9, 1024 }
  0x39   :  { %p7074_p10 = scmp.ne.s32.totalorder %s9321_s9, %s7073_s29  ;;  %p7077_p11 = scmp.lt.u32.totalorder %s7073_s29, %s9321_s9 }
  0x3b   :  { %p7079_p12 = pnand %p7077_p11, %p7074_p10 }
  0x3d   :  { %7082 = shalt.err (!%p7079_p12)
}
  0x3e   :  { %s7083_s6 = scalar_lea.vmem %s117_s26, 1024  ;;  %p7088_p0 = scmp.lt.s32.totalorder %s117_s26, %s117_s26 }
  0x3f   :  { %p7084_p13 = scmp.ne.s32.totalorder %s117_s26, %s7083_s6  ;;  %p7089_p1 = scmp.lt.s32.totalorder %s7083_s6, %s7083_s6 }
  0x41   :  { %p7090_p2 = por %p7089_p1, %p7088_p0 }
  0x43   :  { %p7091_p3 = pnand %p7090_p2, %p7084_p13 }
  0x45   :  { %7094 = shalt.err (!%p7091_p3)
}
  0x46   :  { %122 = dma.hbm_to_vmem [thread:$0]  %s9321_s9, 1024, %s117_s26, [#allocation17], %s7240_s13, %s7240_s13, %s7241_s14  }
  0x47   :  { %s7095_s24 = scalar_lea.hbm %s9312_s0, 2048 }
  0x48   :  { %p7096_p4 = scmp.ne.s32.totalorder %s9312_s0, %s7095_s24  ;;  %p7099_p5 = scmp.lt.u32.totalorder %s7095_s24, %s9312_s0 }
  0x4a   :  { %p7101_p6 = pnand %p7099_p5, %p7096_p4 }
  0x4c   :  { %7104 = shalt.err (!%p7101_p6)
}
  0x4d   :  { %s7105_s1 = scalar_lea.vmem %s29_s28, 2048  ;;  %p7110_p8 = scmp.lt.s32.totalorder %s29_s28, %s29_s28 }
  0x4e   :  { %p7106_p7 = scmp.ne.s32.totalorder %s29_s28, %s7105_s1  ;;  %p7111_p9 = scmp.lt.s32.totalorder %s7105_s1, %s7105_s1 }
  0x50   :  { %p7112_p10 = por %p7111_p9, %p7110_p8 }
  0x52   :  { %p7113_p11 = pnand %p7112_p10, %p7106_p7 }
  0x54   :  { %7116 = shalt.err (!%p7113_p11)
}
  0x55   :  { %s7246_s9 = smov 128   ;;  %s7247_s26 = smov 8  }
  0x56   :  { %34 = dma.hbm_to_vmem [thread:$0]  %s9312_s0, 2048, %s29_s28, [#allocation5], %s7246_s9, %s7246_s9, %s7247_s26  }
  0x57   :  { %s7248_s30 = smov [#allocation9]   ;;  %s7249_s16 = smov [#allocation12]  }
  0x58   :  { %s52_s15 = sshll.u32 %s7248_s30, 4  ;;  %s78_s17 = sshll.u32 %s7249_s16, 4  ;;  %s53_s15 = int_to_ptr.vmem [resolvable:$true] %s52_s15  ;;  %s79_s17 = int_to_ptr.vmem [resolvable:$true] %s78_s17 }
  0x59   :  { %s7117_s19 = scalar_lea.hbm %s9314_s2, 1024 }
  0x5a   :  { %p7118_p12 = scmp.ne.s32.totalorder %s9314_s2, %s7117_s19  ;;  %p7121_p13 = scmp.lt.u32.totalorder %s7117_s19, %s9314_s2 }
  0x5c   :  { %p7123_p0 = pnand %p7121_p13, %p7118_p12 }
  0x5e   :  { %7126 = shalt.err (!%p7123_p0)
}
  0x5f   :  { %s7127_s0 = scalar_lea.vmem %s53_s15, 1024  ;;  %p7132_p2 = scmp.lt.s32.totalorder %s53_s15, %s53_s15 }
  0x60   :  { %p7128_p1 = scmp.ne.s32.totalorder %s53_s15, %s7127_s0  ;;  %p7133_p3 = scmp.lt.s32.totalorder %s7127_s0, %s7127_s0 }
  0x62   :  { %p7134_p4 = por %p7133_p3, %p7132_p2 }
  0x64   :  { %p7135_p5 = pnand %p7134_p4, %p7128_p1 }
  0x66   :  { %7138 = shalt.err (!%p7135_p5)
}
  0x67   :  { %58 = dma.hbm_to_vmem [thread:$0]  %s9314_s2, 1024, %s53_s15, [#allocation8], %s7240_s13, %s7240_s13, %s7241_s14  }
  0x68   :  { %s7139_s1 = scalar_lea.hbm %s9317_s5, 1024 }
  0x69   :  { %p7140_p6 = scmp.ne.s32.totalorder %s9317_s5, %s7139_s1  ;;  %p7143_p7 = scmp.lt.u32.totalorder %s7139_s1, %s9317_s5 }
  0x6b   :  { %p7145_p8 = pnand %p7143_p7, %p7140_p6 }
  0x6d   :  { %7148 = shalt.err (!%p7145_p8)
}
  0x6e   :  { %s7149_s6 = scalar_lea.vmem %s79_s17, 1024  ;;  %p7154_p10 = scmp.lt.s32.totalorder %s79_s17, %s79_s17 }
  0x6f   :  { %p7150_p9 = scmp.ne.s32.totalorder %s79_s17, %s7149_s6  ;;  %p7155_p11 = scmp.lt.s32.totalorder %s7149_s6, %s7149_s6 }
  0x71   :  { %p7156_p12 = por %p7155_p11, %p7154_p10 }
  0x73   :  { %p7157_p13 = pnand %p7156_p12, %p7150_p9 }
  0x75   :  { %7160 = shalt.err (!%p7157_p13)
}
  0x76   :  { %84 = dma.hbm_to_vmem [thread:$0]  %s9317_s5, 1024, %s79_s17, [#allocation11], %s7240_s13, %s7240_s13, %s7241_s14  }
  0x77   :  { %s7250_s20 = smov [#allocation15]   ;;  %s7251_s21 = smov [#allocation18]  }
  0x78   :  { %s104_s19 = sshll.u32 %s7250_s20, 4  ;;  %s128_s23 = sshll.u32 %s7251_s21, 4  ;;  %s105_s19 = int_to_ptr.vmem [resolvable:$true] %s104_s19  ;;  %s129_s23 = int_to_ptr.vmem [resolvable:$true] %s128_s23 }
  0x79   :  { %s7161_s0 = scalar_lea.hbm %s9320_s8, 1024 }
  0x7a   :  { %p7162_p0 = scmp.ne.s32.totalorder %s9320_s8, %s7161_s0  ;;  %p7165_p1 = scmp.lt.u32.totalorder %s7161_s0, %s9320_s8 }
  0x7c   :  { %p7167_p2 = pnand %p7165_p1, %p7162_p0 }
  0x7e   :  { %7170 = shalt.err (!%p7167_p2)
}
  0x7f   :  { %s7171_s5 = scalar_lea.vmem %s105_s19, 1024  ;;  %p7176_p4 = scmp.lt.s32.totalorder %s105_s19, %s105_s19 }
  0x80   :  { %p7172_p3 = scmp.ne.s32.totalorder %s105_s19, %s7171_s5  ;;  %p7177_p5 = scmp.lt.s32.totalorder %s7171_s5, %s7171_s5 }
  0x82   :  { %p7178_p6 = por %p7177_p5, %p7176_p4 }
  0x84   :  { %p7179_p7 = pnand %p7178_p6, %p7172_p3 }
  0x86   :  { %7182 = shalt.err (!%p7179_p7)
}
  0x87   :  { %110 = dma.hbm_to_vmem [thread:$0]  %s9320_s8, 1024, %s105_s19, [#allocation14], %s7240_s13, %s7240_s13, %s7241_s14  }
  0x88   :  { %s7183_s30 = scalar_lea.hbm %s9322_s10, 1024 }
  0x89   :  { %p7184_p8 = scmp.ne.s32.totalorder %s9322_s10, %s7183_s30  ;;  %p7187_p9 = scmp.lt.u32.totalorder %s7183_s30, %s9322_s10 }
  0x8b   :  { %p7189_p10 = pnand %p7187_p9, %p7184_p8 }
  0x8d   :  { %7192 = shalt.err (!%p7189_p10)
}
  0x8e   :  { %s7193_s20 = scalar_lea.vmem %s129_s23, 1024  ;;  %p7198_p12 = scmp.lt.s32.totalorder %s129_s23, %s129_s23 }
  0x8f   :  { %p7194_p11 = scmp.ne.s32.totalorder %s129_s23, %s7193_s20  ;;  %p7199_p13 = scmp.lt.s32.totalorder %s7193_s20, %s7193_s20 }
  0x91   :  { %p7200_p0 = por %p7199_p13, %p7198_p12 }
  0x93   :  { %p7201_p1 = pnand %p7200_p0, %p7194_p11 }
  0x95   :  { %7204 = shalt.err (!%p7201_p1)
}
  0x96   :  { %134 = dma.hbm_to_vmem [thread:$0]  %s9322_s10, 1024, %s129_s23, [#allocation17], %s7240_s13, %s7240_s13, %s7241_s14  }
  0x97   :  { %7227 = dma.done.wait [#allocation5], 2048  }
  0x98   :  { %7228 = vsyncadd [#allocation5], 4294965248 }
  0x99   :  { %7229 = dma.done.wait [#allocation8], 2048  }
  0x9a   :  { %7230 = vsyncadd [#allocation8], 4294965248 }
  0x9b   :  { %7231 = dma.done.wait [#allocation11], 2048  }
  0x9c   :  { %7232 = vsyncadd [#allocation11], 4294965248 }
  0x9d   :  { %7233 = dma.done.wait [#allocation14], 2048  }
  0x9e   :  { %7234 = vsyncadd [#allocation14], 4294965248 }
  0x9f   :  { %7235 = dma.done.wait [#allocation17], 2048  }
  0xa0   :  { %7236 = vsyncadd [#allocation17], 4294965248  ;;  %v9325_v0 = vmov 0.0   ;;  %vm7253_vm0 = vmmov 0   ;;  %v6740_v1 = vld [vmem:[#allocation7] sm:$0xff]   ;;  %v6742_v3 = vld [vmem:[#allocation7 + $0x8] sm:$0xff]  }
  0xa1   :  { %5186 = vmatprep.subr.bf16.mxu1 %v9325_v0  ;;  %5202 = vmatprep.mubr.msk.bf16.mxu1 %vm7253_vm0, %v9325_v0  ;;  %v7460_v2 = vld [vmem:[#allocation9] sm:$0xff]   ;;  %v7463_v4 = vld [vmem:[#allocation9 + $0x8] sm:$0xff]   ;;  %v6744_v5 = vld [vmem:[#allocation7 + $0x10] sm:$0xff]   ;;  %v7254_v28 = vmov 0  }
  0xa2   :  { %5154 = vmatprep.subr.bf16.mxu0 %v6740_v1  ;;  %5187 = vmatpush3.bf16.msra.mxu1 %v7460_v2  ;;  %v7467_v6 = vld [vmem:[#allocation9 + $0x10] sm:$0xff]   ;;  %v6746_v7 = vld [vmem:[#allocation7 + $0x18] sm:$0xff]   ;;  %v6748_v9 = vld [vmem:[#allocation7 + $0x20] sm:$0xff]  }
  0xa3   :  { %5155 = vmatpush3.bf16.msra.mxu0 %v6740_v1  ;;  %5188 = vmatprep.subr.bf16.mxu1 %v9325_v0  ;;  %v7471_v8 = vld [vmem:[#allocation9 + $0x18] sm:$0xff]   ;;  %v7475_v10 = vld [vmem:[#allocation9 + $0x20] sm:$0xff]   ;;  %v6750_v11 = vld [vmem:[#allocation7 + $0x28] sm:$0xff]  }
  0xa4   :  { %5156 = vmatprep.subr.bf16.mxu0 %v6742_v3  ;;  %v165_v12 = vld [vmem:[#allocation4] sm:$0xff]  ;;  %v166_v13 = vld [vmem:[#allocation4 + $0x8] sm:$0xff]  ;;  %v6752_v16 = vld [vmem:[#allocation7 + $0x30] sm:$0xff]  }
  0xa5   :  { %v181_v14 = vpack.c.bf16 %v166_v13, %v165_v12  ;;  %v7478_v15 = vld [vmem:[#allocation9 + $0x28] sm:$0xff]   ;;  %v7482_v17 = vld [vmem:[#allocation9 + $0x30] sm:$0xff]   ;;  %v6754_v18 = vld [vmem:[#allocation7 + $0x38] sm:$0xff]  }
  0xa6   :  { %5189 = vmatpush3.bf16.msra.mxu1 %v7463_v4  ;;  %v7486_v19 = vld [vmem:[#allocation9 + $0x38] sm:$0xff]   ;;  %v167_v20 = vld [vmem:[#allocation4 + $0x10] sm:$0xff]  ;;  %v169_v22 = vld [vmem:[#allocation4 + $0x20] sm:$0xff] }
  0xa7   :  { %5157 = vmatpush3.bf16.msra.mxu0 %v6742_v3  ;;  %5190 = vmatprep.subr.bf16.mxu1 %v9325_v0  ;;  %v168_v21 = vld [vmem:[#allocation4 + $0x18] sm:$0xff]  ;;  %v170_v23 = vld [vmem:[#allocation4 + $0x28] sm:$0xff]  ;;  %v171_v26 = vld [vmem:[#allocation4 + $0x30] sm:$0xff] }
  0xa8   :  { %5158 = vmatprep.subr.bf16.mxu0 %v6744_v5  ;;  %5170 = vmatprep.mubr.bf16.mxu0 %v181_v14  ;;  %v182_v24 = vpack.c.bf16 %v168_v21, %v167_v20  ;;  %v183_v25 = vpack.c.bf16 %v170_v23, %v169_v22  ;;  %v172_v27 = vld [vmem:[#allocation4 + $0x38] sm:$0xff]  ;;  %v173_v29 = vld [vmem:[#allocation4 + $0x40] sm:$0xff]  ;;  %v174_v30 = vld [vmem:[#allocation4 + $0x48] sm:$0xff] }
  0xa9   :  { %v184_v31 = vpack.c.bf16 %v172_v27, %v171_v26  ;;  %v185_v32 = vpack.c.bf16 %v174_v30, %v173_v29  ;;  %v175_v33 = vld [vmem:[#allocation4 + $0x50] sm:$0xff]  ;;  %v176_v34 = vld [vmem:[#allocation4 + $0x58] sm:$0xff]  ;;  %v177_v36 = vld [vmem:[#allocation4 + $0x60] sm:$0xff] }
  0xaa   :  { %5191 = vmatpush3.bf16.msra.mxu1 %v7467_v6  ;;  %v186_v35 = vpack.c.bf16 %v176_v34, %v175_v33  ;;  %v178_v37 = vld [vmem:[#allocation4 + $0x68] sm:$0xff]  ;;  %v179_v39 = vld [vmem:[#allocation4 + $0x70] sm:$0xff]  ;;  %v180_v40 = vld [vmem:[#allocation4 + $0x78] sm:$0xff] }
  0xab   :  { %5159 = vmatpush3.bf16.msra.mxu0 %v6744_v5  ;;  %5192 = vmatprep.subr.bf16.mxu1 %v9325_v0  ;;  %v187_v38 = vpack.c.bf16 %v178_v37, %v177_v36  ;;  %v188_v41 = vpack.c.bf16 %v180_v40, %v179_v39  ;;  %v7534_v46 = vld [vmem:[%s9315_s3] ss:$0 sm:$0xff] }
  0xac   :  { %5160 = vmatprep.subr.bf16.mxu0 %v6746_v7 }
  0xae   :  { %5193 = vmatpush3.bf16.msra.mxu1 %v7471_v8 }
  0xaf   :  { %5161 = vmatpush3.bf16.msra.mxu0 %v6746_v7  ;;  %5194 = vmatprep.subr.bf16.mxu1 %v9325_v0 }
  0xb0   :  { %5162 = vmatprep.subr.bf16.mxu0 %v6748_v9 }
  0xb2   :  { %5195 = vmatpush3.bf16.msra.mxu1 %v7475_v10 }
  0xb3   :  { %5163 = vmatpush3.bf16.msra.mxu0 %v6748_v9  ;;  %5196 = vmatprep.subr.bf16.mxu1 %v9325_v0 }
  0xb4   :  { %5164 = vmatprep.subr.bf16.mxu0 %v6750_v11 }
  0xb6   :  { %5197 = vmatpush3.bf16.msra.mxu1 %v7478_v15 }
  0xb7   :  { %5165 = vmatpush3.bf16.msra.mxu0 %v6750_v11  ;;  %5198 = vmatprep.subr.bf16.mxu1 %v9325_v0 }
  0xb8   :  { %5166 = vmatprep.subr.bf16.mxu0 %v6752_v16 }
  0xba   :  { %5199 = vmatpush3.bf16.msra.mxu1 %v7482_v17 }
  0xbb   :  { %5167 = vmatpush3.bf16.msra.mxu0 %v6752_v16  ;;  %5200 = vmatprep.subr.bf16.mxu1 %v9325_v0 }
  0xbc   :  { %5168 = vmatprep.subr.bf16.mxu0 %v6754_v18 }
  0xbe   :  { %5201 = vmatpush3.bf16.msra.mxu1 %v7486_v19 }
  0xbf   :  { %5169 = vmatpush3.bf16.msra.mxu0 %v6754_v18  ;;  %5226 = vmatprep.subr.bf16.mxu1 %v9325_v0 }
  0xc0   :  { %5206 = vmatprep.subr.bf16.mxu0 %v9325_v0 }
  0xc1   :  { %5203 = vmatmul.mubr.bf16.vlgmr.msra.gmra.mrb[0].mxu1 %v7254_v28 }
  0xc2   :  { %5171 = vmatmul.mubr.bf16.vlgmr.msra.gmra.mrb[0].mxu0 %v182_v24  ;;  %5227 = vmatpush3.bf16.msra.mxu1 %v7460_v2 }
  0xc3   :  { %5207 = vmatpush3.bf16.msra.mxu0 %v7460_v2  ;;  %5174 = vmatprep.mubr.bf16.mxu0 %v183_v25 }
  0xc4   :  { %5208 = vmatprep.subr.bf16.mxu0 %v9325_v0  ;;  %5228 = vmatprep.subr.bf16.mxu1 %v9325_v0 }
  0xc5   :  { %5242 = vmatprep.mubr.msk.bf16.mxu1 %vm7253_vm0, %v9325_v0 }
  0xc6   :  { %5229 = vmatpush3.bf16.msra.mxu1 %v7463_v4 }
  0xc7   :  { %5209 = vmatpush3.bf16.msra.mxu0 %v7463_v4  ;;  %5230 = vmatprep.subr.bf16.mxu1 %v9325_v0 }
  0xc8   :  { %5210 = vmatprep.subr.bf16.mxu0 %v9325_v0 }
  0xca   :  { %5175 = vmatmul.mubr.bf16.gmra.mrb[4].mxu0 %v184_v31  ;;  %5231 = vmatpush3.bf16.msra.mxu1 %v7467_v6 }
  0xcb   :  { %5211 = vmatpush3.bf16.msra.mxu0 %v7467_v6  ;;  %5178 = vmatprep.mubr.bf16.mxu0 %v185_v32 }
  0xcc   :  { %5212 = vmatprep.subr.bf16.mxu0 %v9325_v0  ;;  %5232 = vmatprep.subr.bf16.mxu1 %v9325_v0 }
  0xce   :  { %5233 = vmatpush3.bf16.msra.mxu1 %v7471_v8 }
  0xcf   :  { %5213 = vmatpush3.bf16.msra.mxu0 %v7471_v8  ;;  %5234 = vmatprep.subr.bf16.mxu1 %v9325_v0 }
  0xd0   :  { %5214 = vmatprep.subr.bf16.mxu0 %v9325_v0 }
  0xd2   :  { %5235 = vmatpush3.bf16.msra.mxu1 %v7475_v10  ;;  %5179 = vmatmul.mubr.bf16.gmra.mrb[8].mxu0 %v186_v35 }
  0xd3   :  { %5215 = vmatpush3.bf16.msra.mxu0 %v7475_v10  ;;  %5236 = vmatprep.subr.bf16.mxu1 %v9325_v0 }
  0xd4   :  { %5216 = vmatprep.subr.bf16.mxu0 %v9325_v0  ;;  %5182 = vmatprep.mubr.bf16.mxu0 %v187_v38 }
  0xd6   :  { %5237 = vmatpush3.bf16.msra.mxu1 %v7478_v15 }
  0xd7   :  { %5217 = vmatpush3.bf16.msra.mxu0 %v7478_v15  ;;  %5238 = vmatprep.subr.bf16.mxu1 %v9325_v0 }
  0xd8   :  { %5218 = vmatprep.subr.bf16.mxu0 %v9325_v0 }
  0xda   :  { %5239 = vmatpush3.bf16.msra.mxu1 %v7482_v17  ;;  %5183 = vmatmul.mubr.bf16.gmra.mrb[12].mxu0 %v188_v41 }
  0xdb   :  { %5219 = vmatpush3.bf16.msra.mxu0 %v7482_v17  ;;  %5240 = vmatprep.subr.bf16.mxu1 %v9325_v0 }
  0xdc   :  { %5220 = vmatprep.subr.bf16.mxu0 %v9325_v0  ;;  %5222 = vmatprep.mubr.msk.bf16.mxu0 %vm7253_vm0, %v9325_v0 }
  0xde   :  { %5241 = vmatpush3.bf16.msra.mxu1 %v7486_v19 }
  0xdf   :  { %5221 = vmatpush3.bf16.msra.mxu0 %v7486_v19  ;;  %5266 = vmatprep.subr.bf16.mxu1 %v9325_v0 }
  0xe0   :  { %5246 = vmatprep.subr.bf16.mxu0 %v9325_v0 }
 0x194   :  { %v472_v42 = vpop.f32.mrb[0].mxu1 }
 0x195   :  { %v7529_v43 = vpop.f32.mrb[0].mxu0  ;;  %v5204_v44 = vpop.f32.mrb[1].mxu1 }
 0x196   :  { %v287_v45 = vpop.f32.mrb[1].mxu0  ;;  %v475_v48 = vpop.f32.mrb[2].mxu1 }
 0x197   :  { %v478_v47 = vadd.f32 %v472_v42, %v287_v45  ;;  %v7536_v49 = vpop.f32.mrb[2].mxu0  ;;  %v5205_v50 = vpop.f32.mrb[3].mxu1 }
 0x198   :  { %v290_v51 = vpop.f32.mrb[3].mxu0 }
 0x199   :  { %v479_v52 = vadd.f32 %v7534_v46, %v478_v47 }
 0x19b   :  { %6804 = vtanh.f32 %v479_v52 }
 0x19d   :  { %v7539_v53 = vpop.f32.mrb[4].mxu0 }
 0x19e   :  { %v7541_v54 = vpop.f32.mrb[5].mxu0 }
 0x19f   :  { %v7543_v55 = vpop.f32.mrb[6].mxu0 }
 0x1a0   :  { %v7545_v56 = vpop.f32.mrb[7].mxu0 }
 0x1a5   :  { %v7547_v57 = vpop.eup %6804  ;;  %v7569_v59 = vpop.f32.mrb[8].mxu0 }
 0x1a6   :  { %v484_v58 = vpack.c.bf16 %v7547_v57, %v7547_v57  ;;  %v7571_v60 = vpop.f32.mrb[9].mxu0 }
 0x1a7   :  { %v7573_v61 = vpop.f32.mrb[10].mxu0 }
 0x1a8   :  { %5223 = vmatmul.mubr.bf16.vlgmr.msra.gmra.mrb[16].mxu0 %v484_v58  ;;  %v7575_v62 = vpop.f32.mrb[11].mxu0 }
 0x1a9   :  { %5247 = vmatpush3.bf16.msra.mxu0 %v7460_v2  ;;  %5262 = vmatprep.mubr.msk.bf16.mxu0 %vm7253_vm0, %v9325_v0 }
 0x1aa   :  { %5248 = vmatprep.subr.bf16.mxu0 %v9325_v0 }
 0x1ad   :  { %5249 = vmatpush3.bf16.msra.mxu0 %v7463_v4  ;;  %v7577_v63 = vpop.f32.mrb[12].mxu0 }
 0x1ae   :  { %5250 = vmatprep.subr.bf16.mxu0 %v9325_v0  ;;  %v7579_v1 = vpop.f32.mrb[13].mxu0 }
 0x1af   :  { %v7581_v3 = vpop.f32.mrb[14].mxu0 }
 0x1b0   :  { %v7583_v5 = vpop.f32.mrb[15].mxu0 }
 0x1b1   :  { %5251 = vmatpush3.bf16.msra.mxu0 %v7467_v6 }
 0x1b2   :  { %5252 = vmatprep.subr.bf16.mxu0 %v9325_v0 }
 0x1b5   :  { %5253 = vmatpush3.bf16.msra.mxu0 %v7471_v8 }
 0x1b6   :  { %5254 = vmatprep.subr.bf16.mxu0 %v9325_v0 }
 0x1b9   :  { %5255 = vmatpush3.bf16.msra.mxu0 %v7475_v10 }
 0x1ba   :  { %5256 = vmatprep.subr.bf16.mxu0 %v9325_v0 }
 0x1bd   :  { %5257 = vmatpush3.bf16.msra.mxu0 %v7478_v15 }
 0x1be   :  { %5258 = vmatprep.subr.bf16.mxu0 %v9325_v0 }
 0x1c1   :  { %5259 = vmatpush3.bf16.msra.mxu0 %v7482_v17 }
 0x1c2   :  { %5260 = vmatprep.subr.bf16.mxu0 %v9325_v0 }
 0x1c5   :  { %5261 = vmatpush3.bf16.msra.mxu0 %v7486_v19 }
 0x1c6   :  { %5286 = vmatprep.subr.bf16.mxu0 %v9325_v0 }
 0x27b   :  { %v519_v7 = vpop.f32.mrb[16].mxu0 }
 0x27c   :  { %v525_v9 = vadd.f32 %v519_v7, %v290_v51  ;;  %v5224_v11 = vpop.f32.mrb[17].mxu0 }
 0x27d   :  { %v522_v12 = vpop.f32.mrb[18].mxu0 }
 0x27e   :  { %v526_v13 = vadd.f32 %v7534_v46, %v525_v9  ;;  %v5225_v14 = vpop.f32.mrb[19].mxu0 }
 0x280   :  { %6806 = vtanh.f32 %v526_v13 }
 0x28a   :  { %v7586_v16 = vpop.eup %6806 }
 0x28b   :  { %v532_v18 = vpack.c.bf16 %v7586_v16, %v7586_v16 }
 0x28d   :  { %5243 = vmatmul.mubr.bf16.vlgmr.msra.gmra.mrb[4].mxu1 %v532_v18 }
 0x28e   :  { %5267 = vmatpush3.bf16.msra.mxu1 %v7460_v2  ;;  %5282 = vmatprep.mubr.msk.bf16.mxu1 %vm7253_vm0, %v9325_v0 }
 0x28f   :  { %5268 = vmatprep.subr.bf16.mxu1 %v9325_v0 }
 0x292   :  { %5269 = vmatpush3.bf16.msra.mxu1 %v7463_v4 }
 0x293   :  { %5270 = vmatprep.subr.bf16.mxu1 %v9325_v0 }
 0x296   :  { %5271 = vmatpush3.bf16.msra.mxu1 %v7467_v6 }
 0x297   :  { %5272 = vmatprep.subr.bf16.mxu1 %v9325_v0 }
 0x29a   :  { %5273 = vmatpush3.bf16.msra.mxu1 %v7471_v8 }
 0x29b   :  { %5274 = vmatprep.subr.bf16.mxu1 %v9325_v0 }
 0x29e   :  { %5275 = vmatpush3.bf16.msra.mxu1 %v7475_v10 }
 0x29f   :  { %5276 = vmatprep.subr.bf16.mxu1 %v9325_v0 }
 0x2a2   :  { %5277 = vmatpush3.bf16.msra.mxu1 %v7478_v15 }
 0x2a3   :  { %5278 = vmatprep.subr.bf16.mxu1 %v9325_v0 }
 0x2a6   :  { %5279 = vmatpush3.bf16.msra.mxu1 %v7482_v17 }
 0x2a7   :  { %5280 = vmatprep.subr.bf16.mxu1 %v9325_v0 }
 0x2aa   :  { %5281 = vmatpush3.bf16.msra.mxu1 %v7486_v19 }
 0x2ab   :  { %5306 = vmatprep.subr.bf16.mxu1 %v9325_v0 }
 0x360   :  { %v567_v20 = vpop.f32.mrb[4].mxu1 }
 0x361   :  { %v573_v21 = vadd.f32 %v7529_v43, %v567_v20  ;;  %v5244_v22 = vpop.f32.mrb[5].mxu1 }
 0x362   :  { %v570_v23 = vpop.f32.mrb[6].mxu1 }
 0x363   :  { %v574_v24 = vadd.f32 %v7534_v46, %v573_v21  ;;  %v5245_v25 = vpop.f32.mrb[7].mxu1 }
 0x365   :  { %6808 = vtanh.f32 %v574_v24 }
 0x36f   :  { %v7610_v26 = vpop.eup %6808 }
 0x370   :  { %v580_v27 = vpack.c.bf16 %v7610_v26, %v7610_v26 }
 0x372   :  { %5263 = vmatmul.mubr.bf16.vlgmr.msra.gmra.mrb[20].mxu0 %v580_v27 }
 0x373   :  { %5287 = vmatpush3.bf16.msra.mxu0 %v7460_v2  ;;  %5302 = vmatprep.mubr.msk.bf16.mxu0 %vm7253_vm0, %v9325_v0 }
 0x374   :  { %5288 = vmatprep.subr.bf16.mxu0 %v9325_v0 }
 0x377   :  { %5289 = vmatpush3.bf16.msra.mxu0 %v7463_v4 }
 0x378   :  { %5290 = vmatprep.subr.bf16.mxu0 %v9325_v0 }
 0x37b   :  { %5291 = vmatpush3.bf16.msra.mxu0 %v7467_v6 }
 0x37c   :  { %5292 = vmatprep.subr.bf16.mxu0 %v9325_v0 }
 0x37f   :  { %5293 = vmatpush3.bf16.msra.mxu0 %v7471_v8 }
 0x380   :  { %5294 = vmatprep.subr.bf16.mxu0 %v9325_v0 }
 0x383   :  { %5295 = vmatpush3.bf16.msra.mxu0 %v7475_v10 }
 0x384   :  { %5296 = vmatprep.subr.bf16.mxu0 %v9325_v0 }
 0x387   :  { %5297 = vmatpush3.bf16.msra.mxu0 %v7478_v15 }
 0x388   :  { %5298 = vmatprep.subr.bf16.mxu0 %v9325_v0 }
 0x38b   :  { %5299 = vmatpush3.bf16.msra.mxu0 %v7482_v17 }
 0x38c   :  { %5300 = vmatprep.subr.bf16.mxu0 %v9325_v0 }
 0x38f   :  { %5301 = vmatpush3.bf16.msra.mxu0 %v7486_v19 }
 0x390   :  { %5326 = vmatprep.subr.bf16.mxu0 %v9325_v0 }
 0x445   :  { %v615_v28 = vpop.f32.mrb[20].mxu0 }
 0x446   :  { %v621_v29 = vadd.f32 %v7536_v49, %v615_v28  ;;  %v5264_v30 = vpop.f32.mrb[21].mxu0 }
 0x447   :  { %v618_v31 = vpop.f32.mrb[22].mxu0 }
 0x448   :  { %v622_v32 = vadd.f32 %v7534_v46, %v621_v29  ;;  %v5265_v33 = vpop.f32.mrb[23].mxu0 }
 0x44a   :  { %6810 = vtanh.f32 %v622_v32 }
 0x454   :  { %v7634_v34 = vpop.eup %6810 }
 0x455   :  { %v628_v35 = vpack.c.bf16 %v7634_v34, %v7634_v34 }
 0x457   :  { %5283 = vmatmul.mubr.bf16.vlgmr.msra.gmra.mrb[8].mxu1 %v628_v35 }
 0x458   :  { %5307 = vmatpush3.bf16.msra.mxu1 %v7460_v2  ;;  %5322 = vmatprep.mubr.msk.bf16.mxu1 %vm7253_vm0, %v9325_v0 }
 0x459   :  { %5308 = vmatprep.subr.bf16.mxu1 %v9325_v0 }
 0x45c   :  { %5309 = vmatpush3.bf16.msra.mxu1 %v7463_v4 }
 0x45d   :  { %5310 = vmatprep.subr.bf16.mxu1 %v9325_v0 }
 0x460   :  { %5311 = vmatpush3.bf16.msra.mxu1 %v7467_v6 }
 0x461   :  { %5312 = vmatprep.subr.bf16.mxu1 %v9325_v0 }
 0x464   :  { %5313 = vmatpush3.bf16.msra.mxu1 %v7471_v8 }
 0x465   :  { %5314 = vmatprep.subr.bf16.mxu1 %v9325_v0 }
 0x468   :  { %5315 = vmatpush3.bf16.msra.mxu1 %v7475_v10 }
 0x469   :  { %5316 = vmatprep.subr.bf16.mxu1 %v9325_v0 }
 0x46c   :  { %5317 = vmatpush3.bf16.msra.mxu1 %v7478_v15 }
 0x46d   :  { %5318 = vmatprep.subr.bf16.mxu1 %v9325_v0 }
 0x470   :  { %5319 = vmatpush3.bf16.msra.mxu1 %v7482_v17 }
 0x471   :  { %5320 = vmatprep.subr.bf16.mxu1 %v9325_v0 }
 0x474   :  { %5321 = vmatpush3.bf16.msra.mxu1 %v7486_v19 }
 0x475   :  { %5346 = vmatprep.subr.bf16.mxu1 %v9325_v0 }
 0x52a   :  { %v663_v36 = vpop.f32.mrb[8].mxu1 }
 0x52b   :  { %v669_v37 = vadd.f32 %v663_v36, %v7541_v54  ;;  %v5284_v38 = vpop.f32.mrb[9].mxu1 }
 0x52c   :  { %v666_v39 = vpop.f32.mrb[10].mxu1 }
 0x52d   :  { %v670_v40 = vadd.f32 %v7534_v46, %v669_v37  ;;  %v5285_v41 = vpop.f32.mrb[11].mxu1 }
 0x52f   :  { %6812 = vtanh.f32 %v670_v40 }
 0x539   :  { %v7658_v42 = vpop.eup %6812 }
 0x53a   :  { %v676_v43 = vpack.c.bf16 %v7658_v42, %v7658_v42 }
 0x53c   :  { %5303 = vmatmul.mubr.bf16.vlgmr.msra.gmra.mrb[24].mxu0 %v676_v43 }
 0x53d   :  { %5327 = vmatpush3.bf16.msra.mxu0 %v7460_v2  ;;  %5342 = vmatprep.mubr.msk.bf16.mxu0 %vm7253_vm0, %v9325_v0 }
 0x53e   :  { %5328 = vmatprep.subr.bf16.mxu0 %v9325_v0 }
 0x541   :  { %5329 = vmatpush3.bf16.msra.mxu0 %v7463_v4 }
 0x542   :  { %5330 = vmatprep.subr.bf16.mxu0 %v9325_v0 }
 0x545   :  { %5331 = vmatpush3.bf16.msra.mxu0 %v7467_v6 }
 0x546   :  { %5332 = vmatprep.subr.bf16.mxu0 %v9325_v0 }
 0x549   :  { %5333 = vmatpush3.bf16.msra.mxu0 %v7471_v8 }
 0x54a   :  { %5334 = vmatprep.subr.bf16.mxu0 %v9325_v0 }
 0x54d   :  { %5335 = vmatpush3.bf16.msra.mxu0 %v7475_v10 }
 0x54e   :  { %5336 = vmatprep.subr.bf16.mxu0 %v9325_v0 }
 0x551   :  { %5337 = vmatpush3.bf16.msra.mxu0 %v7478_v15 }
 0x552   :  { %5338 = vmatprep.subr.bf16.mxu0 %v9325_v0 }
 0x555   :  { %5339 = vmatpush3.bf16.msra.mxu0 %v7482_v17 }
 0x556   :  { %5340 = vmatprep.subr.bf16.mxu0 %v9325_v0 }
 0x559   :  { %5341 = vmatpush3.bf16.msra.mxu0 %v7486_v19 }
 0x55a   :  { %5366 = vmatprep.subr.bf16.mxu0 %v9325_v0 }
 0x60f   :  { %v711_v44 = vpop.f32.mrb[24].mxu0 }
 0x610   :  { %v717_v45 = vadd.f32 %v711_v44, %v7545_v56  ;;  %v5304_v47 = vpop.f32.mrb[25].mxu0 }
 0x611   :  { %v714_v48 = vpop.f32.mrb[26].mxu0  ;;  %v6932_v47 = vld [vmem:[#allocation9] sm:$0xff]  }
 0x612   :  { %v718_v49 = vadd.f32 %v7534_v46, %v717_v45  ;;  %v5305_v50 = vpop.f32.mrb[27].mxu0  ;;  %v6934_v48 = vld [vmem:[#allocation9 + $0x10] sm:$0xff]  }
 0x614   :  { %6814 = vtanh.f32 %v718_v49 }
 0x61e   :  { %v7682_v51 = vpop.eup %6814 }
 0x61f   :  { %v724_v52 = vpack.c.bf16 %v7682_v51, %v7682_v51 }
 0x621   :  { %5323 = vmatmul.mubr.bf16.vlgmr.msra.gmra.mrb[12].mxu1 %v724_v52 }
 0x622   :  { %5347 = vmatpush3.bf16.msra.mxu1 %v7460_v2  ;;  %5362 = vmatprep.mubr.msk.bf16.mxu1 %vm7253_vm0, %v9325_v0 }
 0x623   :  { %5348 = vmatprep.subr.bf16.mxu1 %v9325_v0 }
 0x626   :  { %5349 = vmatpush3.bf16.msra.mxu1 %v7463_v4 }
 0x627   :  { %5350 = vmatprep.subr.bf16.mxu1 %v9325_v0 }
 0x62a   :  { %5351 = vmatpush3.bf16.msra.mxu1 %v7467_v6 }
 0x62b   :  { %5352 = vmatprep.subr.bf16.mxu1 %v9325_v0 }
 0x62e   :  { %5353 = vmatpush3.bf16.msra.mxu1 %v7471_v8 }
 0x62f   :  { %5354 = vmatprep.subr.bf16.mxu1 %v9325_v0 }
 0x632   :  { %5355 = vmatpush3.bf16.msra.mxu1 %v7475_v10 }
 0x633   :  { %5356 = vmatprep.subr.bf16.mxu1 %v9325_v0 }
 0x636   :  { %5357 = vmatpush3.bf16.msra.mxu1 %v7478_v15 }
 0x637   :  { %5358 = vmatprep.subr.bf16.mxu1 %v9325_v0 }
 0x63a   :  { %5359 = vmatpush3.bf16.msra.mxu1 %v7482_v17 }
 0x63b   :  { %5360 = vmatprep.subr.bf16.mxu1 %v9325_v0 }
 0x63e   :  { %5361 = vmatpush3.bf16.msra.mxu1 %v7486_v19 }
 0x63f   :  { %5386 = vmatprep.subr.bf16.mxu1 %v9325_v0 }
 0x6f4   :  { %v759_v54 = vpop.f32.mrb[12].mxu1 }
 0x6f5   :  { %v765_v56 = vadd.f32 %v7539_v53, %v759_v54  ;;  %v5324_v58 = vpop.f32.mrb[13].mxu1 }
 0x6f6   :  { %v762_v7 = vpop.f32.mrb[14].mxu1  ;;  %v6936_v58 = vld [vmem:[#allocation9 + $0x20] sm:$0xff]  }
 0x6f7   :  { %v766_v9 = vadd.f32 %v7534_v46, %v765_v56  ;;  %v5325_v11 = vpop.f32.mrb[15].mxu1  ;;  %v6937_v7 = vld [vmem:[#allocation9 + $0x28] sm:$0xff]  }
 0x6f9   :  { %6816 = vtanh.f32 %v766_v9 }
 0x703   :  { %v7706_v12 = vpop.eup %6816 }
 0x704   :  { %v772_v13 = vpack.c.bf16 %v7706_v12, %v7706_v12 }
 0x706   :  { %5343 = vmatmul.mubr.bf16.vlgmr.msra.gmra.mrb[28].mxu0 %v772_v13 }
 0x707   :  { %5367 = vmatpush3.bf16.msra.mxu0 %v7460_v2  ;;  %5382 = vmatprep.mubr.msk.bf16.mxu0 %vm7253_vm0, %v9325_v0 }
 0x708   :  { %5368 = vmatprep.subr.bf16.mxu0 %v9325_v0 }
 0x70b   :  { %5369 = vmatpush3.bf16.msra.mxu0 %v7463_v4 }
 0x70c   :  { %5370 = vmatprep.subr.bf16.mxu0 %v9325_v0 }
 0x70f   :  { %5371 = vmatpush3.bf16.msra.mxu0 %v7467_v6 }
 0x710   :  { %5372 = vmatprep.subr.bf16.mxu0 %v9325_v0 }
 0x713   :  { %5373 = vmatpush3.bf16.msra.mxu0 %v7471_v8 }
 0x714   :  { %5374 = vmatprep.subr.bf16.mxu0 %v9325_v0 }
 0x717   :  { %5375 = vmatpush3.bf16.msra.mxu0 %v7475_v10 }
 0x718   :  { %5376 = vmatprep.subr.bf16.mxu0 %v9325_v0 }
 0x71b   :  { %5377 = vmatpush3.bf16.msra.mxu0 %v7478_v15 }
 0x71c   :  { %5378 = vmatprep.subr.bf16.mxu0 %v9325_v0 }
 0x71f   :  { %5379 = vmatpush3.bf16.msra.mxu0 %v7482_v17 }
 0x720   :  { %5380 = vmatprep.subr.bf16.mxu0 %v9325_v0 }
 0x723   :  { %5381 = vmatpush3.bf16.msra.mxu0 %v7486_v19 }
 0x724   :  { %5406 = vmatprep.subr.bf16.mxu0 %v9325_v0 }
 0x7d9   :  { %v807_v53 = vpop.f32.mrb[28].mxu0 }
 0x7da   :  { %v813_v14 = vadd.f32 %v7543_v55, %v807_v53  ;;  %v5344_v18 = vpop.f32.mrb[29].mxu0 }
 0x7db   :  { %v810_v20 = vpop.f32.mrb[30].mxu0 }
 0x7dc   :  { %v814_v21 = vadd.f32 %v7534_v46, %v813_v14  ;;  %v5345_v22 = vpop.f32.mrb[31].mxu0 }
 0x7de   :  { %6818 = vtanh.f32 %v814_v21 }
 0x7e8   :  { %v7730_v23 = vpop.eup %6818 }
 0x7e9   :  { %v820_v24 = vpack.c.bf16 %v7730_v23, %v7730_v23 }
 0x7eb   :  { %5363 = vmatmul.mubr.bf16.vlgmr.msra.gmra.mrb[16].mxu1 %v820_v24 }
 0x7ec   :  { %5387 = vmatpush3.bf16.msra.mxu1 %v7460_v2  ;;  %5402 = vmatprep.mubr.msk.bf16.mxu1 %vm7253_vm0, %v9325_v0 }
 0x7ed   :  { %5388 = vmatprep.subr.bf16.mxu1 %v9325_v0 }
 0x7f0   :  { %5389 = vmatpush3.bf16.msra.mxu1 %v7463_v4 }
 0x7f1   :  { %5390 = vmatprep.subr.bf16.mxu1 %v9325_v0 }
 0x7f4   :  { %5391 = vmatpush3.bf16.msra.mxu1 %v7467_v6 }
 0x7f5   :  { %5392 = vmatprep.subr.bf16.mxu1 %v9325_v0 }
 0x7f8   :  { %5393 = vmatpush3.bf16.msra.mxu1 %v7471_v8 }
 0x7f9   :  { %5394 = vmatprep.subr.bf16.mxu1 %v9325_v0 }
 0x7fc   :  { %5395 = vmatpush3.bf16.msra.mxu1 %v7475_v10 }
 0x7fd   :  { %5396 = vmatprep.subr.bf16.mxu1 %v9325_v0 }
 0x800   :  { %5397 = vmatpush3.bf16.msra.mxu1 %v7478_v15 }
 0x801   :  { %5398 = vmatprep.subr.bf16.mxu1 %v9325_v0 }
 0x804   :  { %5399 = vmatpush3.bf16.msra.mxu1 %v7482_v17 }
 0x805   :  { %5400 = vmatprep.subr.bf16.mxu1 %v9325_v0 }
 0x808   :  { %5401 = vmatpush3.bf16.msra.mxu1 %v7486_v19 }
 0x809   :  { %5426 = vmatprep.subr.bf16.mxu1 %v9325_v0 }
 0x8be   :  { %v855_v55 = vpop.f32.mrb[16].mxu1 }
 0x8bf   :  { %v861_v25 = vadd.f32 %v855_v55, %v7571_v60  ;;  %v5364_v27 = vpop.f32.mrb[17].mxu1 }
 0x8c0   :  { %v858_v28 = vpop.f32.mrb[18].mxu1 }
 0x8c1   :  { %v862_v29 = vadd.f32 %v7534_v46, %v861_v25  ;;  %v5365_v30 = vpop.f32.mrb[19].mxu1 }
 0x8c2   :  { %v6764_v30 = vld [vmem:[#allocation10] sm:$0xff]  }
 0x8c3   :  { %6820 = vtanh.f32 %v862_v29 }
 0x8cd   :  { %v7754_v31 = vpop.eup %6820 }
 0x8ce   :  { %v868_v32 = vpack.c.bf16 %v7754_v31, %v7754_v31 }
 0x8d0   :  { %5383 = vmatmul.mubr.bf16.vlgmr.msra.gmra.mrb[32].mxu0 %v868_v32 }
 0x8d1   :  { %5407 = vmatpush3.bf16.msra.mxu0 %v7460_v2  ;;  %5422 = vmatprep.mubr.msk.bf16.mxu0 %vm7253_vm0, %v9325_v0 }
 0x8d2   :  { %5408 = vmatprep.subr.bf16.mxu0 %v9325_v0 }
 0x8d5   :  { %5409 = vmatpush3.bf16.msra.mxu0 %v7463_v4 }
 0x8d6   :  { %5410 = vmatprep.subr.bf16.mxu0 %v9325_v0 }
 0x8d9   :  { %5411 = vmatpush3.bf16.msra.mxu0 %v7467_v6 }
 0x8da   :  { %5412 = vmatprep.subr.bf16.mxu0 %v9325_v0 }
 0x8dd   :  { %5413 = vmatpush3.bf16.msra.mxu0 %v7471_v8 }
 0x8de   :  { %5414 = vmatprep.subr.bf16.mxu0 %v9325_v0 }
 0x8e1   :  { %5415 = vmatpush3.bf16.msra.mxu0 %v7475_v10 }
 0x8e2   :  { %5416 = vmatprep.subr.bf16.mxu0 %v9325_v0 }
 0x8e5   :  { %5417 = vmatpush3.bf16.msra.mxu0 %v7478_v15 }
 0x8e6   :  { %5418 = vmatprep.subr.bf16.mxu0 %v9325_v0 }
 0x8e9   :  { %5419 = vmatpush3.bf16.msra.mxu0 %v7482_v17 }
 0x8ea   :  { %5420 = vmatprep.subr.bf16.mxu0 %v9325_v0 }
 0x8ed   :  { %5421 = vmatpush3.bf16.msra.mxu0 %v7486_v19 }
 0x8ee   :  { %5446 = vmatprep.subr.bf16.mxu0 %v9325_v0 }
 0x9a3   :  { %v903_v60 = vpop.f32.mrb[32].mxu0 }
 0x9a4   :  { %v909_v33 = vadd.f32 %v903_v60, %v7575_v62  ;;  %v5384_v35 = vpop.f32.mrb[33].mxu0  ;;  %v6757_v60 = vld [vmem:[#allocation12 + $0x8] sm:$0xff]  }
 0x9a5   :  { %v906_v36 = vpop.f32.mrb[34].mxu0  ;;  %v6759_v35 = vld [vmem:[#allocation12 + $0x18] sm:$0xff]  }
 0x9a6   :  { %v910_v37 = vadd.f32 %v7534_v46, %v909_v33  ;;  %v5385_v38 = vpop.f32.mrb[35].mxu0  ;;  %v6758_v33 = vld [vmem:[#allocation12 + $0x10] sm:$0xff]   ;;  %v6761_v36 = vld [vmem:[#allocation12 + $0x28] sm:$0xff]  }
 0x9a7   :  { %v6763_v38 = vld [vmem:[#allocation12 + $0x38] sm:$0xff]  }
 0x9a8   :  { %6822 = vtanh.f32 %v910_v37  ;;  %v6762_v37 = vld [vmem:[#allocation12 + $0x30] sm:$0xff]  }
 0x9b2   :  { %v7778_v39 = vpop.eup %6822 }
 0x9b3   :  { %v916_v40 = vpack.c.bf16 %v7778_v39, %v7778_v39 }
 0x9b5   :  { %5403 = vmatmul.mubr.bf16.vlgmr.msra.gmra.mrb[20].mxu1 %v916_v40  ;;  %v6765_v40 = vld [vmem:[#allocation10 + $0x8] sm:$0xff]  }
 0x9b6   :  { %5427 = vmatpush3.bf16.msra.mxu1 %v7460_v2  ;;  %5442 = vmatprep.mubr.msk.bf16.mxu1 %vm7253_vm0, %v9325_v0 }
 0x9b7   :  { %5428 = vmatprep.subr.bf16.mxu1 %v9325_v0 }
 0x9ba   :  { %5429 = vmatpush3.bf16.msra.mxu1 %v7463_v4 }
 0x9bb   :  { %5430 = vmatprep.subr.bf16.mxu1 %v9325_v0 }
 0x9be   :  { %5431 = vmatpush3.bf16.msra.mxu1 %v7467_v6 }
 0x9bf   :  { %5432 = vmatprep.subr.bf16.mxu1 %v9325_v0 }
 0x9c2   :  { %5433 = vmatpush3.bf16.msra.mxu1 %v7471_v8 }
 0x9c3   :  { %5434 = vmatprep.subr.bf16.mxu1 %v9325_v0 }
 0x9c6   :  { %5435 = vmatpush3.bf16.msra.mxu1 %v7475_v10 }
 0x9c7   :  { %5436 = vmatprep.subr.bf16.mxu1 %v9325_v0 }
 0x9ca   :  { %5437 = vmatpush3.bf16.msra.mxu1 %v7478_v15 }
 0x9cb   :  { %5438 = vmatprep.subr.bf16.mxu1 %v9325_v0 }
 0x9ce   :  { %5439 = vmatpush3.bf16.msra.mxu1 %v7482_v17 }
 0x9cf   :  { %5440 = vmatprep.subr.bf16.mxu1 %v9325_v0 }
 0x9d2   :  { %5441 = vmatpush3.bf16.msra.mxu1 %v7486_v19 }
 0x9d3   :  { %5466 = vmatprep.subr.bf16.mxu1 %v9325_v0 }
 0xa88   :  { %v951_v2 = vpop.f32.mrb[20].mxu1 }
 0xa89   :  { %v957_v4 = vadd.f32 %v7569_v59, %v951_v2  ;;  %v5404_v6 = vpop.f32.mrb[21].mxu1  ;;  %v6933_v59 = vld [vmem:[#allocation9 + $0x8] sm:$0xff]   ;;  %v7859_v2 = vpack.c.bf16 %v7586_v16, %v7547_v57  ;;  %v7877_v57 = vpack.c.bf16 %v7730_v23, %v7706_v12  ;;  %v7883_v16 = vpack.c.bf16 %v7778_v39, %v7754_v31  ;;  %v6768_v12 = vld [vmem:[#allocation10 + $0x20] sm:$0xff]   ;;  %v6770_v31 = vld [vmem:[#allocation10 + $0x30] sm:$0xff]  }
 0xa8a   :  { %v954_v62 = vpop.f32.mrb[22].mxu1  ;;  %v7871_v6 = vpack.c.bf16 %v7682_v51, %v7658_v42  ;;  %v6766_v42 = vld [vmem:[#allocation10 + $0x10] sm:$0xff]   ;;  %v6767_v51 = vld [vmem:[#allocation10 + $0x18] sm:$0xff]   ;;  %v6769_v23 = vld [vmem:[#allocation10 + $0x28] sm:$0xff]  }
 0xa8b   :  { %v958_v41 = vadd.f32 %v7534_v46, %v957_v4  ;;  %v5405_v43 = vpop.f32.mrb[23].mxu1  ;;  %v7865_v4 = vpack.c.bf16 %v7634_v34, %v7610_v26  ;;  %v6771_v39 = vld [vmem:[#allocation10 + $0x38] sm:$0xff]  }
 0xa8d   :  { %6824 = vtanh.f32 %v958_v41 }
 0xa97   :  { %v7802_v44 = vpop.eup %6824 }
 0xa98   :  { %v964_v45 = vpack.c.bf16 %v7802_v44, %v7802_v44 }
 0xa9a   :  { %5423 = vmatmul.mubr.bf16.vlgmr.msra.gmra.mrb[36].mxu0 %v964_v45 }
 0xa9b   :  { %5447 = vmatpush3.bf16.msra.mxu0 %v6932_v47  ;;  %5462 = vmatprep.mubr.msk.bf16.mxu0 %vm7253_vm0, %v9325_v0 }
 0xa9c   :  { %5448 = vmatprep.subr.bf16.mxu0 %v9325_v0 }
 0xa9f   :  { %5449 = vmatpush3.bf16.msra.mxu0 %v6933_v59 }
 0xaa0   :  { %5450 = vmatprep.subr.bf16.mxu0 %v9325_v0 }
 0xaa3   :  { %5451 = vmatpush3.bf16.msra.mxu0 %v6934_v48 }
 0xaa4   :  { %5452 = vmatprep.subr.bf16.mxu0 %v9325_v0 }
 0xaa7   :  { %5453 = vmatpush3.bf16.msra.mxu0 %v7471_v8 }
 0xaa8   :  { %5454 = vmatprep.subr.bf16.mxu0 %v9325_v0 }
 0xaab   :  { %5455 = vmatpush3.bf16.msra.mxu0 %v7475_v10 }
 0xaac   :  { %5456 = vmatprep.subr.bf16.mxu0 %v9325_v0 }
 0xaaf   :  { %5457 = vmatpush3.bf16.msra.mxu0 %v7478_v15 }
 0xab0   :  { %5458 = vmatprep.subr.bf16.mxu0 %v9325_v0 }
 0xab3   :  { %5459 = vmatpush3.bf16.msra.mxu0 %v7482_v17 }
 0xab4   :  { %5460 = vmatprep.subr.bf16.mxu0 %v9325_v0 }
 0xab7   :  { %5461 = vmatpush3.bf16.msra.mxu0 %v7486_v19 }
 0xab8   :  { %5486 = vmatprep.subr.bf16.mxu0 %v9325_v0 }
 0xb6d   :  { %v999_v49 = vpop.f32.mrb[36].mxu0 }
 0xb6e   :  { %v1005_v8 = vadd.f32 %v7573_v61, %v999_v49  ;;  %v5424_v50 = vpop.f32.mrb[37].mxu0  ;;  %v6935_v61 = vld [vmem:[#allocation9 + $0x18] sm:$0xff]  }
 0xb6f   :  { %v1002_v52 = vpop.f32.mrb[38].mxu0  ;;  %v7924_v50 = vld [vmem:[#allocation13 + $0x20] sm:$0xff]  }
 0xb70   :  { %v1006_v10 = vadd.f32 %v7534_v46, %v1005_v8  ;;  %v5425_v54 = vpop.f32.mrb[39].mxu0  ;;  %v7909_v8 = vld [vmem:[#allocation13 + $0x8] sm:$0xff]  }
 0xb71   :  { %v7928_v52 = vld [vmem:[#allocation13 + $0x28] sm:$0xff]  }
 0xb72   :  { %6826 = vtanh.f32 %v1006_v10 }
 0xb7c   :  { %v7823_v15 = vpop.eup %6826 }
 0xb7d   :  { %v1012_v56 = vpack.c.bf16 %v7823_v15, %v7823_v15  ;;  %v7889_v26 = vpack.c.bf16 %v7823_v15, %v7802_v44  ;;  %v7932_v15 = vld [vmem:[#allocation13 + $0x30] sm:$0xff]  }
 0xb7f   :  { %5443 = vmatmul.mubr.bf16.vlgmr.msra.gmra.mrb[24].mxu1 %v1012_v56 }
 0xb80   :  { %5467 = vmatpush3.bf16.msra.mxu1 %v6932_v47  ;;  %5482 = vmatprep.mubr.msk.bf16.mxu1 %vm7253_vm0, %v9325_v0 }
 0xb81   :  { %5468 = vmatprep.subr.bf16.mxu1 %v9325_v0 }
 0xb84   :  { %5469 = vmatpush3.bf16.msra.mxu1 %v6933_v59 }
 0xb85   :  { %5470 = vmatprep.subr.bf16.mxu1 %v9325_v0 }
 0xb88   :  { %5471 = vmatpush3.bf16.msra.mxu1 %v6934_v48 }
 0xb89   :  { %5472 = vmatprep.subr.bf16.mxu1 %v9325_v0 }
 0xb8c   :  { %5473 = vmatpush3.bf16.msra.mxu1 %v6935_v61 }
 0xb8d   :  { %5474 = vmatprep.subr.bf16.mxu1 %v9325_v0 }
 0xb90   :  { %5475 = vmatpush3.bf16.msra.mxu1 %v6936_v58 }
 0xb91   :  { %5476 = vmatprep.subr.bf16.mxu1 %v9325_v0 }
 0xb94   :  { %5477 = vmatpush3.bf16.msra.mxu1 %v6937_v7 }
 0xb95   :  { %5478 = vmatprep.subr.bf16.mxu1 %v9325_v0 }
 0xb98   :  { %5479 = vmatpush3.bf16.msra.mxu1 %v7482_v17  ;;  %v6938_v17 = vld [vmem:[#allocation9 + $0x30] sm:$0xff]  }
 0xb99   :  { %5480 = vmatprep.subr.bf16.mxu1 %v9325_v0 }
 0xb9c   :  { %5481 = vmatpush3.bf16.msra.mxu1 %v7486_v19  ;;  %v6939_v19 = vld [vmem:[#allocation9 + $0x38] sm:$0xff]  }
 0xc52   :  { %v1047_v9 = vpop.f32.mrb[24].mxu1 }
 0xc53   :  { %v1053_v11 = vadd.f32 %v1047_v9, %v7579_v1  ;;  %v5444_v13 = vpop.f32.mrb[25].mxu1  ;;  %v6756_v1 = vld [vmem:[#allocation12] sm:$0xff]  }
 0xc54   :  { %v1050_v53 = vpop.f32.mrb[26].mxu1  ;;  %5506 = vmatprep.subr.bf16.mxu1 %v6756_v1 }
 0xc55   :  { %v1054_v14 = vadd.f32 %v7534_v46, %v1053_v11  ;;  %v5445_v18 = vpop.f32.mrb[27].mxu1  ;;  %v7939_v53 = vld [vmem:[#allocation13 + $0x38] sm:$0xff]  }
 0xc57   :  { %6828 = vtanh.f32 %v1054_v14 }
 0xc61   :  { %v7840_v20 = vpop.eup %6828 }
 0xc62   :  { %v1060_v21 = vpack.c.bf16 %v7840_v20, %v7840_v20 }
 0xc64   :  { %5463 = vmatmul.mubr.bf16.vlgmr.msra.gmra.mrb[40].mxu0 %v1060_v21 }
 0xc65   :  { %5487 = vmatpush3.bf16.msra.mxu0 %v6932_v47  ;;  %5502 = vmatprep.mubr.msk.bf16.mxu0 %vm7253_vm0, %v9325_v0 }
 0xc66   :  { %5488 = vmatprep.subr.bf16.mxu0 %v9325_v0 }
 0xc69   :  { %5489 = vmatpush3.bf16.msra.mxu0 %v6933_v59 }
 0xc6a   :  { %5490 = vmatprep.subr.bf16.mxu0 %v9325_v0 }
 0xc6d   :  { %5491 = vmatpush3.bf16.msra.mxu0 %v6934_v48  ;;  %v7904_v48 = vld [vmem:[#allocation13] sm:$0xff]  }
 0xc6e   :  { %5492 = vmatprep.subr.bf16.mxu0 %v9325_v0 }
 0xc71   :  { %5493 = vmatpush3.bf16.msra.mxu0 %v6935_v61  ;;  %v4400_v61 = vld [vmem:[%s9319_s7] ss:$0 sm:$0xff] }
 0xc72   :  { %5494 = vmatprep.subr.bf16.mxu0 %v9325_v0 }
 0xc75   :  { %5495 = vmatpush3.bf16.msra.mxu0 %v6936_v58 }
 0xc76   :  { %5496 = vmatprep.subr.bf16.mxu0 %v9325_v0 }
 0xc79   :  { %5497 = vmatpush3.bf16.msra.mxu0 %v6937_v7 }
 0xc7a   :  { %5498 = vmatprep.subr.bf16.mxu0 %v9325_v0 }
 0xc7d   :  { %5499 = vmatpush3.bf16.msra.mxu0 %v6938_v17 }
 0xc7e   :  { %5500 = vmatprep.subr.bf16.mxu0 %v9325_v0 }
 0xc81   :  { %5501 = vmatpush3.bf16.msra.mxu0 %v6939_v19 }
 0xc82   :  { %5538 = vmatprep.subr.bf16.mxu0 %v9325_v0 }
 0xd37   :  { %v1095_v22 = vpop.f32.mrb[40].mxu0 }
 0xd38   :  { %v1101_v24 = vadd.f32 %v1095_v22, %v7583_v5  ;;  %v5464_v55 = vpop.f32.mrb[41].mxu0  ;;  %v6760_v5 = vld [vmem:[#allocation12 + $0x20] sm:$0xff]  }
 0xd39   :  { %v1098_v25 = vpop.f32.mrb[42].mxu0 }
 0xd3a   :  { %v1102_v27 = vadd.f32 %v7534_v46, %v1101_v24  ;;  %v5465_v28 = vpop.f32.mrb[43].mxu0 }
 0xd3c   :  { %6830 = vtanh.f32 %v1102_v27 }
 0xd46   :  { %v6831_v29 = vpop.eup %6830 }
 0xd47   :  { %v1108_v32 = vpack.c.bf16 %v6831_v29, %v6831_v29  ;;  %v7894_v34 = vpack.c.bf16 %v6831_v29, %v7840_v20 }
 0xd49   :  { %5483 = vmatmul.mubr.bf16.vlgmr.msra.gmra.mrb[28].mxu1 %v1108_v32 }
 0xd4a   :  { %5507 = vmatpush3.bf16.msra.mxu1 %v6756_v1  ;;  %5522 = vmatprep.mubr.bf16.mxu1 %v6764_v30 }
 0xd4b   :  { %5508 = vmatprep.subr.bf16.mxu1 %v6757_v60 }
 0xd4e   :  { %5509 = vmatpush3.bf16.msra.mxu1 %v6757_v60 }
 0xd4f   :  { %5510 = vmatprep.subr.bf16.mxu1 %v6758_v33 }
 0xd52   :  { %5511 = vmatpush3.bf16.msra.mxu1 %v6758_v33 }
 0xd53   :  { %5512 = vmatprep.subr.bf16.mxu1 %v6759_v35 }
 0xd56   :  { %5513 = vmatpush3.bf16.msra.mxu1 %v6759_v35 }
 0xd57   :  { %5514 = vmatprep.subr.bf16.mxu1 %v6760_v5 }
 0xd5a   :  { %5515 = vmatpush3.bf16.msra.mxu1 %v6760_v5 }
 0xd5b   :  { %5516 = vmatprep.subr.bf16.mxu1 %v6761_v36 }
 0xd5e   :  { %5517 = vmatpush3.bf16.msra.mxu1 %v6761_v36 }
 0xd5f   :  { %5518 = vmatprep.subr.bf16.mxu1 %v6762_v37 }
 0xd62   :  { %5519 = vmatpush3.bf16.msra.mxu1 %v6762_v37 }
 0xd63   :  { %5520 = vmatprep.subr.bf16.mxu1 %v6763_v38 }
 0xd66   :  { %5521 = vmatpush3.bf16.msra.mxu1 %v6763_v38 }
 0xd67   :  { %5578 = vmatprep.subr.bf16.mxu1 %v9325_v0 }
 0xd69   :  { %5523 = vmatmul.mubr.bf16.vlgmr.msra.gmra.mrb[32].mxu1 %v6765_v40 }
 0xd6a   :  { %5526 = vmatprep.mubr.bf16.mxu1 %v6766_v42 }
 0xd6f   :  { %5579 = vmatpush3.bf16.xpose.msra.mxu1 %v7859_v2 }
 0xd70   :  { %5580 = vmatprep.subr.bf16.mxu1 %v9325_v0 }
 0xd71   :  { %5527 = vmatmul.mubr.bf16.gmra.mrb[36].mxu1 %v6767_v51 }
 0xd72   :  { %5530 = vmatprep.mubr.bf16.mxu1 %v6768_v12 }
 0xd77   :  { %5581 = vmatpush3.bf16.xpose.msra.mxu1 %v7865_v4 }
 0xd78   :  { %5582 = vmatprep.subr.bf16.mxu1 %v9325_v0 }
 0xd79   :  { %5531 = vmatmul.mubr.bf16.gmra.mrb[40].mxu1 %v6769_v23 }
 0xd7a   :  { %5534 = vmatprep.mubr.bf16.mxu1 %v6770_v31 }
 0xd7f   :  { %5583 = vmatpush3.bf16.xpose.msra.mxu1 %v7871_v6 }
 0xd80   :  { %5584 = vmatprep.subr.bf16.mxu1 %v9325_v0 }
 0xd81   :  { %5535 = vmatmul.mubr.bf16.gmra.mrb[44].mxu1 %v6771_v39 }
 0xd82   :  { %5594 = vmatprep.mubr.msk.bf16.mxu1 %vm7253_vm0, %v9325_v0 }
 0xd87   :  { %5585 = vmatpush3.bf16.xpose.msra.mxu1 %v7877_v57 }
 0xd88   :  { %5586 = vmatprep.subr.bf16.mxu1 %v9325_v0 }
 0xd8f   :  { %5587 = vmatpush3.bf16.xpose.msra.mxu1 %v7883_v16 }
 0xd90   :  { %5588 = vmatprep.subr.bf16.mxu1 %v9325_v0 }
 0xd97   :  { %5589 = vmatpush3.bf16.xpose.msra.mxu1 %v7889_v26 }
 0xd98   :  { %5590 = vmatprep.subr.bf16.mxu1 %v9325_v0 }
 0xd9f   :  { %5591 = vmatpush3.bf16.xpose.msra.mxu1 %v7894_v34 }
 0xda0   :  { %5592 = vmatprep.subr.bf16.mxu1 %v9325_v0 }
 0xe1c   :  { %v1143_v62 = vpop.f32.mrb[28].mxu1 }
 0xe1d   :  { %v1149_v41 = vadd.f32 %v7577_v63, %v1143_v62  ;;  %v5484_v43 = vpop.f32.mrb[29].mxu1  ;;  %v7919_v63 = vld [vmem:[#allocation13 + $0x18] sm:$0xff]  }
 0xe1e   :  { %v1146_v44 = vpop.f32.mrb[30].mxu1 }
 0xe1f   :  { %v1150_v45 = vadd.f32 %v7534_v46, %v1149_v41  ;;  %v5485_v47 = vpop.f32.mrb[31].mxu1  ;;  %v7915_v46 = vld [vmem:[#allocation13 + $0x10] sm:$0xff]  }
 0xe21   :  { %6832 = vtanh.f32 %v1150_v45 }
 0xe2b   :  { %v7902_v59 = vpop.eup %6832 }
 0xe2c   :  { %v1156_v49 = vpack.c.bf16 %v7902_v59, %v7902_v59 }
 0xe2e   :  { %5503 = vmatmul.mubr.bf16.vlgmr.msra.gmra.mrb[44].mxu0 %v1156_v49  ;;  %v6940_v49 = vld [vmem:[%s9315_s3] ss:$0 sm:$0xff] }
 0xe2f   :  { %5539 = vmatpush3.bf16.msra.mxu0 %v7904_v48  ;;  %5554 = vmatprep.mubr.msk.bf16.mxu0 %vm7253_vm0, %v9325_v0 }
 0xe30   :  { %5540 = vmatprep.subr.bf16.mxu0 %v9325_v0 }
 0xe33   :  { %5541 = vmatpush3.bf16.msra.mxu0 %v7909_v8 }
 0xe34   :  { %5542 = vmatprep.subr.bf16.mxu0 %v9325_v0 }
 0xe37   :  { %5543 = vmatpush3.bf16.msra.mxu0 %v7915_v46 }
 0xe38   :  { %5544 = vmatprep.subr.bf16.mxu0 %v9325_v0 }
 0xe3b   :  { %5545 = vmatpush3.bf16.msra.mxu0 %v7919_v63 }
 0xe3c   :  { %5546 = vmatprep.subr.bf16.mxu0 %v9325_v0  ;;  %v5524_v10 = vpop.f32.mrb[32].mxu1 }
 0xe3d   :  { %v1395_v54 = vpop.f32.mrb[33].mxu1  ;;  %v1404_v7 = vadd.f32 %v5524_v10, %v4400_v61 }
 0xe3e   :  { %v5525_v56 = vpop.f32.mrb[34].mxu1  ;;  %v1396_v9 = vadd.f32 %v4400_v61, %v1395_v54 }
 0xe3f   :  { %5547 = vmatpush3.bf16.msra.mxu0 %v7924_v50  ;;  %v1398_v58 = vpop.f32.mrb[35].mxu1  ;;  %v1407_v11 = vadd.f32 %v5525_v56, %v4400_v61 }
 0xe40   :  { %5548 = vmatprep.subr.bf16.mxu0 %v9325_v0  ;;  %v1399_v13 = vadd.f32 %v4400_v61, %v1398_v58 }
 0xe41   :  { %v7941_v14 = vpack.c.bf16 %v1407_v11, %v1404_v7  ;;  %v9327_v7 = vmov 1.0|1.0  }
 0xe42   :  { %v7943_v18 = vpack.c.bf16 %v1399_v13, %v1396_v9 }
 0xe43   :  { %5549 = vmatpush3.bf16.msra.mxu0 %v7928_v52 }
 0xe44   :  { %5550 = vmatprep.subr.bf16.mxu0 %v9325_v0  ;;  %v5528_v20 = vpop.f32.mrb[36].mxu1 }
 0xe45   :  { %v1420_v21 = vadd.f32 %v5528_v20, %v4400_v61  ;;  %v1411_v17 = vpop.f32.mrb[37].mxu1 }
 0xe46   :  { %v1412_v19 = vadd.f32 %v4400_v61, %v1411_v17  ;;  %v5529_v1 = vpop.f32.mrb[38].mxu1  ;;  %v8009_v17 = vld [vmem:[#allocation16] sm:$0xff]  }
 0xe47   :  { %5551 = vmatpush3.bf16.msra.mxu0 %v7932_v15  ;;  %v1423_v22 = vadd.f32 %v5529_v1, %v4400_v61  ;;  %v1414_v24 = vpop.f32.mrb[39].mxu1  ;;  %v8015_v1 = vld [vmem:[#allocation16 + $0x8] sm:$0xff]  }
 0xe48   :  { %5552 = vmatprep.subr.bf16.mxu0 %v9325_v0  ;;  %v1415_v55 = vadd.f32 %v4400_v61, %v1414_v24  ;;  %v8025_v24 = vld [vmem:[#allocation16 + $0x18] sm:$0xff]  }
 0xe49   :  { %v7947_v25 = vpack.c.bf16 %v1423_v22, %v1420_v21  ;;  %v8021_v22 = vld [vmem:[#allocation16 + $0x10] sm:$0xff]  }
 0xe4a   :  { %v7949_v27 = vpack.c.bf16 %v1415_v55, %v1412_v19  ;;  %v8029_v55 = vld [vmem:[#allocation16 + $0x20] sm:$0xff]  }
 0xe4b   :  { %5553 = vmatpush3.bf16.msra.mxu0 %v7939_v53 }
 0xe4c   :  { %5558 = vmatprep.subr.bf16.mxu0 %v9325_v0  ;;  %v5532_v28 = vpop.f32.mrb[40].mxu1 }
 0xe4d   :  { %v1436_v29 = vadd.f32 %v5532_v28, %v4400_v61  ;;  %v1427_v30 = vpop.f32.mrb[41].mxu1  ;;  %v8033_v28 = vld [vmem:[#allocation16 + $0x28] sm:$0xff]  }
 0xe4e   :  { %v1428_v32 = vadd.f32 %v4400_v61, %v1427_v30  ;;  %v5533_v60 = vpop.f32.mrb[42].mxu1  ;;  %v8041_v30 = vld [vmem:[#allocation16 + $0x38] sm:$0xff]  }
 0xe4f   :  { %v1439_v33 = vadd.f32 %v5533_v60, %v4400_v61  ;;  %v1430_v35 = vpop.f32.mrb[43].mxu1 }
 0xe50   :  { %v1431_v5 = vadd.f32 %v4400_v61, %v1430_v35 }
 0xe51   :  { %v7951_v36 = vpack.c.bf16 %v1439_v33, %v1436_v29  ;;  %v8037_v29 = vld [vmem:[#allocation16 + $0x30] sm:$0xff]  }
 0xe52   :  { %v7953_v37 = vpack.c.bf16 %v1431_v5, %v1428_v32 }
 0xe54   :  { %v5536_v38 = vpop.f32.mrb[44].mxu1 }
 0xe55   :  { %v1452_v40 = vadd.f32 %v5536_v38, %v4400_v61  ;;  %v1443_v42 = vpop.f32.mrb[45].mxu1 }
 0xe56   :  { %v1444_v51 = vadd.f32 %v4400_v61, %v1443_v42  ;;  %v5537_v12 = vpop.f32.mrb[46].mxu1 }
 0xe57   :  { %v1455_v23 = vadd.f32 %v5537_v12, %v4400_v61  ;;  %v1446_v31 = vpop.f32.mrb[47].mxu1 }
 0xe58   :  { %v1447_v39 = vadd.f32 %v4400_v61, %v1446_v31 }
 0xe59   :  { %v7955_v62 = vpack.c.bf16 %v1455_v23, %v1452_v40 }
 0xe5a   :  { %v7957_v41 = vpack.c.bf16 %v1447_v39, %v1444_v51  ;;  %v8057_v39 = vld [vmem:[#allocation15] sm:$0xff]  }
 0xe5b   :  { %9355 = vst [vmem:[#allocation26_spill] sm:$0xff] %v7955_v62 }
 0xe5c   :  { %9356 = vst [vmem:[#allocation27_spill] sm:$0xff] %v7957_v41 }
 0xf01   :  { %v1191_v43 = vpop.f32.mrb[44].mxu0 }
 0xf02   :  { %v1197_v44 = vadd.f32 %v7581_v3, %v1191_v43  ;;  %v5504_v45 = vpop.f32.mrb[45].mxu0  ;;  %v1537_v3 = vlaneseq  ;;  %v8060_v43 = vld [vmem:[#allocation15 + $0x8] sm:$0xff]  }
 0xf03   :  { %v1194_v47 = vpop.f32.mrb[46].mxu0  ;;  %v8068_v45 = vld [vmem:[#allocation15 + $0x18] sm:$0xff]  }
 0xf04   :  { %v1198_v10 = vadd.f32 %v6940_v49, %v1197_v44  ;;  %v5505_v54 = vpop.f32.mrb[47].mxu0  ;;  %v1552_v60 = vshrl.u32 %v1537_v3, 7  ;;  %v8064_v44 = vld [vmem:[#allocation15 + $0x10] sm:$0xff]   ;;  %v8072_v47 = vld [vmem:[#allocation15 + $0x20] sm:$0xff]   ;;  %v8076_v49 = vld [vmem:[#allocation15 + $0x28] sm:$0xff]  }
 0xf05   :  { %v8084_v54 = vld [vmem:[#allocation15 + $0x38] sm:$0xff]  }
 0xf06   :  { %6834 = vtanh.f32 %v1198_v10  ;;  %v8080_v10 = vld [vmem:[#allocation15 + $0x30] sm:$0xff]   ;;  %9360 = vst [vmem:[#allocation29_spill] sm:$0xff] %v8084_v54 }
 0xf07   :  { %9359 = vst [vmem:[#allocation28_spill] sm:$0xff] %v8080_v10 }
 0xf10   :  { %v6835_v56 = vpop.eup %6834 }
 0xf11   :  { %v7964_v58 = vpack.c.bf16 %v6835_v56, %v7902_v59  ;;  %v1558_v61 = vpack.c.bf16 %v6835_v56, %v6835_v56  ;;  %v7983_v59 = vand.u32 127, %v1537_v3 }
 0xf13   :  { %5555 = vmatmul.mubr.bf16.vlgmr.msra.gmra.mrb[48].mxu0 %v1558_v61  ;;  %5593 = vmatpush3.bf16.xpose.msra.mxu1 %v7964_v58  ;;  %vm1554_vm1 = vcmp.eq.s32.totalorder %v7983_v59, 1  ;;  %v1543_v32 = vand.u32 7, %v7983_v59 }
 0xf14   :  { %5559 = vmatpush3.bf16.msra.mxu0 %v7943_v18  ;;  %5574 = vmatprep.mubr.msk.bf16.mxu0 %vm7253_vm0, %v9325_v0  ;;  %vm4427_vm2 = vmpackc.low %vm1554_vm1, %vm1554_vm1 }
 0xf15   :  { %5560 = vmatprep.subr.bf16.mxu0 %v9325_v0  ;;  %5618 = vmatprep.subr.bf16.mxu1 %v9325_v0  ;;  %vm8051_vm3 = vcmp.eq.s32.totalorder %v1543_v32, %v1552_v60  ;;  %v8106_v32 = vld [vmem:[#allocation18 + $0x20] sm:$0xff]  }
 0xf18   :  { %5561 = vmatpush3.bf16.msra.mxu0 %v7941_v14 }
 0xf19   :  { %5562 = vmatprep.subr.bf16.mxu0 %v9325_v0 }
 0xf1c   :  { %5563 = vmatpush3.bf16.msra.mxu0 %v7949_v27 }
 0xf1d   :  { %5564 = vmatprep.subr.bf16.mxu0 %v9325_v0 }
 0xf20   :  { %5565 = vmatpush3.bf16.msra.mxu0 %v7947_v25 }
 0xf21   :  { %5566 = vmatprep.subr.bf16.mxu0 %v9325_v0 }
 0xf24   :  { %5567 = vmatpush3.bf16.msra.mxu0 %v7953_v37 }
 0xf25   :  { %5568 = vmatprep.subr.bf16.mxu0 %v9325_v0 }
 0xf28   :  { %5569 = vmatpush3.bf16.msra.mxu0 %v7951_v36 }
 0xf29   :  { %5570 = vmatprep.subr.bf16.mxu0 %v9325_v0 }
 0xf2c   :  { %5571 = vmatpush3.bf16.msra.mxu0 %v7957_v41 }
 0xf2d   :  { %5572 = vmatprep.subr.bf16.mxu0 %v9325_v0 }
 0xf30   :  { %5573 = vmatpush3.bf16.msra.mxu0 %v7955_v62 }
 0xf31   :  { %5598 = vmatprep.subr.bf16.mxu0 %v9325_v0 }
 0xf33   :  { %5575 = vmatmul.mubr.msk.bf16.vlgmr.msra.gmra.mrb[48].mxu0 %vm4427_vm2, %v9327_v7 }
 0xf34   :  { %5599 = vmatpush3.bf16.msra.mxu0 %v7859_v2  ;;  %5614 = vmatprep.mubr.msk.bf16.mxu0 %vm7253_vm0, %v9325_v0 }
 0xf35   :  { %5600 = vmatprep.subr.bf16.mxu0 %v9325_v0 }
 0xf38   :  { %5601 = vmatpush3.bf16.msra.mxu0 %v7865_v4 }
 0xf39   :  { %5602 = vmatprep.subr.bf16.mxu0 %v9325_v0 }
 0xf3c   :  { %5603 = vmatpush3.bf16.msra.mxu0 %v7871_v6 }
 0xf3d   :  { %5604 = vmatprep.subr.bf16.mxu0 %v9325_v0 }
 0xf40   :  { %5605 = vmatpush3.bf16.msra.mxu0 %v7877_v57 }
 0xf41   :  { %5606 = vmatprep.subr.bf16.mxu0 %v9325_v0 }
 0xf44   :  { %5607 = vmatpush3.bf16.msra.mxu0 %v7883_v16 }
 0xf45   :  { %5608 = vmatprep.subr.bf16.mxu0 %v9325_v0 }
 0xf48   :  { %5609 = vmatpush3.bf16.msra.mxu0 %v7889_v26 }
 0xf49   :  { %5610 = vmatprep.subr.bf16.mxu0 %v9325_v0 }
 0xf4c   :  { %5611 = vmatpush3.bf16.msra.mxu0 %v7894_v34 }
 0xf4d   :  { %5612 = vmatprep.subr.bf16.mxu0 %v9325_v0 }
 0xf50   :  { %5613 = vmatpush3.bf16.msra.mxu0 %v7964_v58 }
 0xf51   :  { %5658 = vmatprep.subr.bf16.mxu0 %v9325_v0 }
0x1006   :  { %v1681_v9 = vpop.f32.mrb[48].mxu0 }
0x1007   :  { %6836 = vtanh.f32 %v1681_v9  ;;  %v5576_v11 = vpop.f32.mrb[49].mxu0 }
0x1008   :  { %v1684_v13 = vpop.f32.mrb[50].mxu0  ;;  %v8091_v11 = vld [vmem:[#allocation18] sm:$0xff]  }
0x1009   :  { %v5577_v20 = vpop.f32.mrb[51].mxu0  ;;  %v8094_v13 = vld [vmem:[#allocation18 + $0x8] sm:$0xff]  }
0x100a   :  { %v8098_v20 = vld [vmem:[#allocation18 + $0x10] sm:$0xff]  }
0x1011   :  { %v6837_v21 = vpop.eup %6836 }
0x1012   :  { %v8011_v19 = vpack.c.bf16 %v6837_v21, %v6837_v21  ;;  %v8102_v21 = vld [vmem:[#allocation18 + $0x18] sm:$0xff]  }
0x1014   :  { %5595 = vmatmul.mubr.bf16.vlgmr.msra.gmra.mrb[48].mxu1 %v8011_v19 }
0x1015   :  { %5619 = vmatpush3.bf16.msra.mxu1 %v8009_v17  ;;  %5634 = vmatprep.mubr.msk.bf16.mxu1 %vm7253_vm0, %v9325_v0 }
0x1016   :  { %5620 = vmatprep.subr.bf16.mxu1 %v9325_v0 }
0x1019   :  { %5621 = vmatpush3.bf16.msra.mxu1 %v8015_v1 }
0x101a   :  { %5622 = vmatprep.subr.bf16.mxu1 %v9325_v0 }
0x101d   :  { %5623 = vmatpush3.bf16.msra.mxu1 %v8021_v22 }
0x101e   :  { %5624 = vmatprep.subr.bf16.mxu1 %v9325_v0 }
0x1021   :  { %5625 = vmatpush3.bf16.msra.mxu1 %v8025_v24 }
0x1022   :  { %5626 = vmatprep.subr.bf16.mxu1 %v9325_v0 }
0x1025   :  { %5627 = vmatpush3.bf16.msra.mxu1 %v8029_v55 }
0x1026   :  { %5628 = vmatprep.subr.bf16.mxu1 %v9325_v0 }
0x1029   :  { %5629 = vmatpush3.bf16.msra.mxu1 %v8033_v28 }
0x102a   :  { %5630 = vmatprep.subr.bf16.mxu1 %v9325_v0 }
0x102d   :  { %5631 = vmatpush3.bf16.msra.mxu1 %v8037_v29 }
0x102e   :  { %5632 = vmatprep.subr.bf16.mxu1 %v9325_v0 }
0x1031   :  { %5633 = vmatpush3.bf16.msra.mxu1 %v8041_v30 }
0x1032   :  { %5638 = vmatprep.subr.bf16.mxu1 %v9325_v0 }
0x1034   :  { %5635 = vmatmul.mubr.bf16.vlgmr.msra.gmra.mrb[52].mxu1 %v8011_v19 }
0x1035   :  { %5654 = vmatprep.mubr.msk.bf16.mxu1 %vm7253_vm0, %v9325_v0  ;;  %5639 = vmatpush3.bf16.msra.mxu1 %v8057_v39 }
0x1036   :  { %5640 = vmatprep.subr.bf16.mxu1 %v9325_v0 }
0x1039   :  { %5641 = vmatpush3.bf16.msra.mxu1 %v8060_v43 }
0x103a   :  { %5642 = vmatprep.subr.bf16.mxu1 %v9325_v0 }
0x103d   :  { %5643 = vmatpush3.bf16.msra.mxu1 %v8064_v44 }
0x103e   :  { %5644 = vmatprep.subr.bf16.mxu1 %v9325_v0 }
0x1041   :  { %5645 = vmatpush3.bf16.msra.mxu1 %v8068_v45 }
0x1042   :  { %5646 = vmatprep.subr.bf16.mxu1 %v9325_v0 }
0x1045   :  { %5647 = vmatpush3.bf16.msra.mxu1 %v8072_v47 }
0x1046   :  { %5648 = vmatprep.subr.bf16.mxu1 %v9325_v0 }
0x1049   :  { %5649 = vmatpush3.bf16.msra.mxu1 %v8076_v49 }
0x104a   :  { %5650 = vmatprep.subr.bf16.mxu1 %v9325_v0 }
0x104d   :  { %5651 = vmatpush3.bf16.msra.mxu1 %v8080_v10 }
0x104e   :  { %5652 = vmatprep.subr.bf16.mxu1 %v9325_v0 }
0x1051   :  { %5653 = vmatpush3.bf16.msra.mxu1 %v8084_v54 }
0x1052   :  { %5718 = vmatprep.subr.bf16.mxu1 %v9325_v0 }
0x10e7   :  { %v1723_v35 = vpop.f32.mrb[48].mxu1 }
0x10e8   :  { %v5596_v5 = vpop.f32.mrb[49].mxu1  ;;  %v1729_v38 = vsel %vm8051_vm3, %v1723_v35, -1e+30 }
0x10e9   :  { %1730 = vmax.xlane.f32.xlu0 %v1729_v38  ;;  %v1726_v40 = vpop.f32.mrb[50].mxu1 }
0x10ea   :  { %v5597_v42 = vpop.f32.mrb[51].mxu1 }
0x10eb   :  { %v8129_v42 = vld [vmem:[#allocation18 + $0x28] sm:$0xff]  }
0x1176   :  { %v1731_v51 = vpop.xlane.xlu0 %1730 }
0x1177   :  { %v1732_v12 = vsub.f32 %v1729_v38, %v1731_v51  ;;  %v8133_v51 = vld [vmem:[#allocation18 + $0x30] sm:$0xff]  }
0x1179   :  { %v1733_v23 = vmul.f32 1.442695, %v1732_v12  ;;  %v8137_v12 = vld [vmem:[#allocation18 + $0x38] sm:$0xff]  }
0x117b   :  { %6838 = vpow2.f32 %v1733_v23 }
0x1185   :  { %v6839_v31 = vpop.eup %6838 }
0x1186   :  { %1735 = vadd.xlane.f32.xlu0 %v6839_v31 }
0x1213   :  { %v1736_v56 = vpop.xlane.xlu0 %1735 }
0x1214   :  { %6840 = vrcp.f32 %v1736_v56 }
0x121e   :  { %v6841_v61 = vpop.eup %6840 }
0x121f   :  { %v1738_v3 = vmul.f32 %v6841_v61, %v6839_v31 }
0x1221   :  { %v1739_v9 = vpack.c.bf16 %v1738_v3, %v1738_v3 }
0x1223   :  { %5615 = vmatmul.mubr.bf16.vlgmr.msra.gmra.mrb[52].mxu0 %v1739_v9 }
0x1224   :  { %5674 = vmatprep.mubr.msk.bf16.mxu0 %vm7253_vm0, %v9325_v0  ;;  %5659 = vmatpush3.bf16.msra.mxu0 %v8091_v11 }
0x1225   :  { %5660 = vmatprep.subr.bf16.mxu0 %v9325_v0 }
0x1228   :  { %5661 = vmatpush3.bf16.msra.mxu0 %v8094_v13 }
0x1229   :  { %5662 = vmatprep.subr.bf16.mxu0 %v9325_v0 }
0x122c   :  { %5663 = vmatpush3.bf16.msra.mxu0 %v8098_v20 }
0x122d   :  { %5664 = vmatprep.subr.bf16.mxu0 %v9325_v0 }
0x1230   :  { %5665 = vmatpush3.bf16.msra.mxu0 %v8102_v21 }
0x1231   :  { %5666 = vmatprep.subr.bf16.mxu0 %v9325_v0 }
0x1234   :  { %5667 = vmatpush3.bf16.msra.mxu0 %v8106_v32 }
0x1235   :  { %5668 = vmatprep.subr.bf16.mxu0 %v9325_v0 }
0x1238   :  { %5669 = vmatpush3.bf16.msra.mxu0 %v8129_v42 }
0x1239   :  { %5670 = vmatprep.subr.bf16.mxu0 %v9325_v0 }
0x123c   :  { %5671 = vmatpush3.bf16.msra.mxu0 %v8133_v51 }
0x123d   :  { %5672 = vmatprep.subr.bf16.mxu0 %v9325_v0 }
0x1240   :  { %5673 = vmatpush3.bf16.msra.mxu0 %v8137_v12 }
0x1241   :  { %5678 = vmatprep.subr.bf16.mxu0 %v9325_v0 }
0x12f6   :  { %v1774_v60 = vpop.f32.mrb[52].mxu0 }
0x12f7   :  { %v1780_v35 = vpack.c.bf16 %v1774_v60, %v1774_v60  ;;  %v5616_v5 = vpop.f32.mrb[53].mxu0 }
0x12f8   :  { %v1777_v38 = vpop.f32.mrb[54].mxu0 }
0x12f9   :  { %v5617_v40 = vpop.f32.mrb[55].mxu0  ;;  %5655 = vmatmul.mubr.bf16.vlgmr.msra.gmra.mrb[52].mxu1 %v1780_v35 }
0x12fa   :  { %5719 = vmatpush3.bf16.xpose.msra.mxu1 %v7859_v2  ;;  %5734 = vmatprep.mubr.msk.bf16.mxu1 %vm7253_vm0, %v9325_v0 }
0x12fb   :  { %5720 = vmatprep.subr.bf16.mxu1 %v9325_v0 }
0x1302   :  { %5721 = vmatpush3.bf16.xpose.msra.mxu1 %v7865_v4 }
0x1303   :  { %5722 = vmatprep.subr.bf16.mxu1 %v9325_v0 }
0x130a   :  { %5723 = vmatpush3.bf16.xpose.msra.mxu1 %v7871_v6 }
0x130b   :  { %5724 = vmatprep.subr.bf16.mxu1 %v9325_v0 }
0x1312   :  { %5725 = vmatpush3.bf16.xpose.msra.mxu1 %v7877_v57 }
0x1313   :  { %5726 = vmatprep.subr.bf16.mxu1 %v9325_v0 }
0x131a   :  { %5727 = vmatpush3.bf16.xpose.msra.mxu1 %v7883_v16 }
0x131b   :  { %5728 = vmatprep.subr.bf16.mxu1 %v9325_v0 }
0x1322   :  { %5729 = vmatpush3.bf16.xpose.msra.mxu1 %v7889_v26 }
0x1323   :  { %5730 = vmatprep.subr.bf16.mxu1 %v9325_v0 }
0x132a   :  { %5731 = vmatpush3.bf16.xpose.msra.mxu1 %v7894_v34 }
0x132b   :  { %5732 = vmatprep.subr.bf16.mxu1 %v9325_v0 }
0x1332   :  { %5733 = vmatpush3.bf16.xpose.msra.mxu1 %v7964_v58 }
0x1333   :  { %5758 = vmatprep.subr.bf16.mxu1 %v9325_v0 }
0x13cc   :  { %v1951_v23 = vpop.f32.mrb[52].mxu1 }
0x13cd   :  { %6842 = vtanh.f32 %v1951_v23  ;;  %v5656_v31 = vpop.f32.mrb[53].mxu1 }
0x13ce   :  { %v1954_v56 = vpop.f32.mrb[54].mxu1 }
0x13cf   :  { %v5657_v61 = vpop.f32.mrb[55].mxu1 }
0x13d7   :  { %v6843_v3 = vpop.eup %6842 }
0x13d8   :  { %v1958_v9 = vpack.c.bf16 %v6843_v3, %v6843_v3 }
0x13da   :  { %5675 = vmatmul.mubr.bf16.vlgmr.msra.gmra.mrb[56].mxu0 %v1958_v9 }
0x13db   :  { %5679 = vmatpush3.bf16.msra.mxu0 %v7904_v48  ;;  %5694 = vmatprep.mubr.msk.bf16.mxu0 %vm7253_vm0, %v9325_v0 }
0x13dc   :  { %5680 = vmatprep.subr.bf16.mxu0 %v9325_v0 }
0x13df   :  { %5681 = vmatpush3.bf16.msra.mxu0 %v7909_v8 }
0x13e0   :  { %5682 = vmatprep.subr.bf16.mxu0 %v9325_v0 }
0x13e3   :  { %5683 = vmatpush3.bf16.msra.mxu0 %v7915_v46 }
0x13e4   :  { %5684 = vmatprep.subr.bf16.mxu0 %v9325_v0 }
0x13e7   :  { %5685 = vmatpush3.bf16.msra.mxu0 %v7919_v63 }
0x13e8   :  { %5686 = vmatprep.subr.bf16.mxu0 %v9325_v0 }
0x13eb   :  { %5687 = vmatpush3.bf16.msra.mxu0 %v7924_v50 }
0x13ec   :  { %5688 = vmatprep.subr.bf16.mxu0 %v9325_v0 }
0x13ef   :  { %5689 = vmatpush3.bf16.msra.mxu0 %v7928_v52 }
0x13f0   :  { %5690 = vmatprep.subr.bf16.mxu0 %v9325_v0 }
0x13f3   :  { %5691 = vmatpush3.bf16.msra.mxu0 %v7932_v15 }
0x13f4   :  { %5692 = vmatprep.subr.bf16.mxu0 %v9325_v0 }
0x13f7   :  { %5693 = vmatpush3.bf16.msra.mxu0 %v7939_v53 }
0x13f8   :  { %5698 = vmatprep.subr.bf16.mxu0 %v9325_v0 }
0x13fa   :  { %5695 = vmatmul.mubr.bf16.vlgmr.msra.gmra.mrb[60].mxu0 %v8011_v19  ;;  %v8181_v19 = vld [vmem:[%s9323_s11] ss:$0 sm:$0xff] }
0x13fb   :  { %5699 = vmatpush3.bf16.msra.mxu0 %v7943_v18  ;;  %5714 = vmatprep.mubr.msk.bf16.mxu0 %vm7253_vm0, %v9325_v0  ;;  %9361 = vst [vmem:[#allocation30_spill] sm:$0xff] %v8181_v19 }
0x13fc   :  { %5700 = vmatprep.subr.bf16.mxu0 %v9325_v0 }
0x13ff   :  { %5701 = vmatpush3.bf16.msra.mxu0 %v7941_v14 }
0x1400   :  { %5702 = vmatprep.subr.bf16.mxu0 %v9325_v0 }
0x1403   :  { %5703 = vmatpush3.bf16.msra.mxu0 %v7949_v27 }
0x1404   :  { %5704 = vmatprep.subr.bf16.mxu0 %v9325_v0 }
0x1407   :  { %5705 = vmatpush3.bf16.msra.mxu0 %v7947_v25 }
0x1408   :  { %5706 = vmatprep.subr.bf16.mxu0 %v9325_v0 }
0x140b   :  { %5707 = vmatpush3.bf16.msra.mxu0 %v7953_v37 }
0x140c   :  { %5708 = vmatprep.subr.bf16.mxu0 %v9325_v0 }
0x140f   :  { %5709 = vmatpush3.bf16.msra.mxu0 %v7951_v36 }
0x1410   :  { %5710 = vmatprep.subr.bf16.mxu0 %v9325_v0 }
0x1413   :  { %5711 = vmatpush3.bf16.msra.mxu0 %v7957_v41 }
0x1414   :  { %5712 = vmatprep.subr.bf16.mxu0 %v9325_v0 }
0x1417   :  { %5713 = vmatpush3.bf16.msra.mxu0 %v7955_v62 }
0x1418   :  { %5738 = vmatprep.subr.bf16.mxu0 %v9325_v0 }
0x14ad   :  { %v2041_v60 = vpop.f32.mrb[56].mxu0 }
0x14ae   :  { %v8184_v35 = vadd.f32 %v8181_v19, %v2041_v60  ;;  %v5676_v5 = vpop.f32.mrb[57].mxu0 }
0x14af   :  { %v2044_v38 = vpop.f32.mrb[58].mxu0 }
0x14b0   :  { %9362 = vst [vmem:[#allocation31_spill] sm:$0xff] %v8184_v35  ;;  %2047 = vmax.xlane.f32.xlu1 %v8184_v35  ;;  %v5677_v40 = vpop.f32.mrb[59].mxu0 }
0x153d   :  { %v8187_v23 = vpop.xlane.xlu1 %2047 }
0x153e   :  { %9363 = vst [vmem:[#allocation32_spill] sm:$0xff] %v8187_v23  ;;  %vm2059_vm4 = vcmp.ge.f32.partialorder %v8184_v35, %v8187_v23  ;;  %v9364_v35 = vmov 1.0|1.0  }
0x153f   :  { %v2060_v31 = vsel %vm2059_vm4, %v7983_v59, 128 }
0x1540   :  { %v2062_v56 = vshra.s32 %v2060_v31, 16  ;;  %v2061_v3 = vand.u32 65535, %v2060_v31 }
0x1542   :  { %v2064_v61 = vcvt.s32.f32 %v2062_v56  ;;  %v2063_v0 = vcvt.s32.f32 %v2061_v3  ;;  %v9365_v56 = vmov 0.0  }
0x1544   :  { %2065 = vmin.xlane.f32.xlu1 %v2064_v61 }
0x15d1   :  { %v2066_v9 = vpop.xlane.xlu1 %2065 }
0x15d2   :  { %vm2067_vm5 = vcmp.eq.f32.partialorder %v2064_v61, %v2066_v9  ;;  %v2072_v5 = vcvt.f32.s32 %v2066_v9 }
0x15d3   :  { %v2068_v60 = vsel %vm2067_vm5, %v2063_v0, inf }
0x15d4   :  { %2069 = vmin.xlane.f32.xlu0 %v2068_v60  ;;  %v2073_v7 = vshll.u32 %v2072_v5, 16 }
0x1661   :  { %v2070_v38 = vpop.xlane.xlu0 %2069 }
0x1662   :  { %v2071_v40 = vcvt.f32.s32 %v2070_v38 }
0x1664   :  { %v2074_v19 = vadd.s32 %v2073_v7, %v2071_v40 }
0x1666   :  { %vm2075_vm6 = vcmp.eq.s32.totalorder %v2074_v19, %v7983_v59 }
0x1667   :  { %vm4454_vm7 = vmpackc.low %vm2075_vm6, %vm2075_vm6 }
0x1668   :  { %5715 = vmatmul.mubr.msk.bf16.vlgmr.msra.gmra.mrb[60].mxu0 %vm4454_vm7, %v9364_v35 }
0x1669   :  { %5739 = vmatpush3.bf16.msra.mxu0 %v7859_v2  ;;  %5754 = vmatprep.mubr.msk.bf16.mxu0 %vm7253_vm0, %v9365_v56 }
0x166a   :  { %5740 = vmatprep.subr.bf16.mxu0 %v9365_v56 }
0x166d   :  { %5741 = vmatpush3.bf16.msra.mxu0 %v7865_v4 }
0x166e   :  { %5742 = vmatprep.subr.bf16.mxu0 %v9365_v56 }
0x1671   :  { %5743 = vmatpush3.bf16.msra.mxu0 %v7871_v6 }
0x1672   :  { %5744 = vmatprep.subr.bf16.mxu0 %v9365_v56 }
0x1675   :  { %5745 = vmatpush3.bf16.msra.mxu0 %v7877_v57 }
0x1676   :  { %5746 = vmatprep.subr.bf16.mxu0 %v9365_v56 }
0x1679   :  { %5747 = vmatpush3.bf16.msra.mxu0 %v7883_v16 }
0x167a   :  { %5748 = vmatprep.subr.bf16.mxu0 %v9365_v56 }
0x167d   :  { %5749 = vmatpush3.bf16.msra.mxu0 %v7889_v26 }
0x167e   :  { %5750 = vmatprep.subr.bf16.mxu0 %v9365_v56 }
0x1681   :  { %5751 = vmatpush3.bf16.msra.mxu0 %v7894_v34 }
0x1682   :  { %5752 = vmatprep.subr.bf16.mxu0 %v9365_v56 }
0x1685   :  { %5753 = vmatpush3.bf16.msra.mxu0 %v7964_v58 }
0x1686   :  { %5798 = vmatprep.subr.bf16.mxu0 %v9365_v56 }
0x173b   :  { %v2153_v0 = vpop.f32.mrb[60].mxu0 }
0x173c   :  { %6844 = vtanh.f32 %v2153_v0  ;;  %v5716_v7 = vpop.f32.mrb[61].mxu0 }
0x173d   :  { %v2156_v19 = vpop.f32.mrb[62].mxu0 }
0x173e   :  { %v5717_v31 = vpop.f32.mrb[63].mxu0 }
0x1746   :  { %v6845_v61 = vpop.eup %6844 }
0x1747   :  { %v8212_v3 = vpack.c.bf16 %v6845_v61, %v6845_v61 }
0x1749   :  { %5735 = vmatmul.mubr.bf16.vlgmr.msra.gmra.mrb[56].mxu1 %v8212_v3 }
0x174a   :  { %5759 = vmatpush3.bf16.msra.mxu1 %v8009_v17  ;;  %5774 = vmatprep.mubr.msk.bf16.mxu1 %vm7253_vm0, %v9365_v56 }
0x174b   :  { %5760 = vmatprep.subr.bf16.mxu1 %v9365_v56 }
0x174e   :  { %5761 = vmatpush3.bf16.msra.mxu1 %v8015_v1 }
0x174f   :  { %5762 = vmatprep.subr.bf16.mxu1 %v9365_v56 }
0x1752   :  { %5763 = vmatpush3.bf16.msra.mxu1 %v8021_v22 }
0x1753   :  { %5764 = vmatprep.subr.bf16.mxu1 %v9365_v56 }
0x1756   :  { %5765 = vmatpush3.bf16.msra.mxu1 %v8025_v24 }
0x1757   :  { %5766 = vmatprep.subr.bf16.mxu1 %v9365_v56 }
0x175a   :  { %5767 = vmatpush3.bf16.msra.mxu1 %v8029_v55 }
0x175b   :  { %5768 = vmatprep.subr.bf16.mxu1 %v9365_v56 }
0x175e   :  { %5769 = vmatpush3.bf16.msra.mxu1 %v8033_v28 }
0x175f   :  { %5770 = vmatprep.subr.bf16.mxu1 %v9365_v56 }
0x1762   :  { %5771 = vmatpush3.bf16.msra.mxu1 %v8037_v29 }
0x1763   :  { %5772 = vmatprep.subr.bf16.mxu1 %v9365_v56 }
0x1766   :  { %5773 = vmatpush3.bf16.msra.mxu1 %v8041_v30 }
0x1767   :  { %5778 = vmatprep.subr.bf16.mxu1 %v9365_v56 }
0x1769   :  { %5775 = vmatmul.mubr.bf16.vlgmr.msra.gmra.mrb[60].mxu1 %v8212_v3 }
0x176a   :  { %5779 = vmatpush3.bf16.msra.mxu1 %v8057_v39  ;;  %5794 = vmatprep.mubr.msk.bf16.mxu1 %vm7253_vm0, %v9365_v56 }
0x176b   :  { %5780 = vmatprep.subr.bf16.mxu1 %v9365_v56 }
0x176e   :  { %5781 = vmatpush3.bf16.msra.mxu1 %v8060_v43 }
0x176f   :  { %5782 = vmatprep.subr.bf16.mxu1 %v9365_v56 }
0x1772   :  { %5783 = vmatpush3.bf16.msra.mxu1 %v8064_v44 }
0x1773   :  { %5784 = vmatprep.subr.bf16.mxu1 %v9365_v56 }
0x1776   :  { %5785 = vmatpush3.bf16.msra.mxu1 %v8068_v45 }
0x1777   :  { %5786 = vmatprep.subr.bf16.mxu1 %v9365_v56 }
0x177a   :  { %5787 = vmatpush3.bf16.msra.mxu1 %v8072_v47 }
0x177b   :  { %5788 = vmatprep.subr.bf16.mxu1 %v9365_v56 }
0x177e   :  { %5789 = vmatpush3.bf16.msra.mxu1 %v8076_v49 }
0x177f   :  { %5790 = vmatprep.subr.bf16.mxu1 %v9365_v56 }
0x1782   :  { %5791 = vmatpush3.bf16.msra.mxu1 %v8080_v10 }
0x1783   :  { %5792 = vmatprep.subr.bf16.mxu1 %v9365_v56 }
0x1786   :  { %5793 = vmatpush3.bf16.msra.mxu1 %v8084_v54 }
0x1787   :  { %5858 = vmatprep.subr.bf16.mxu1 %v9365_v56 }
0x181c   :  { %v2195_v9 = vpop.f32.mrb[56].mxu1 }
0x181d   :  { %v5736_v60 = vpop.f32.mrb[57].mxu1  ;;  %v2201_v5 = vsel %vm8051_vm3, %v2195_v9, -1e+30 }
0x181e   :  { %2202 = vmax.xlane.f32.xlu1 %v2201_v5  ;;  %v2198_v38 = vpop.f32.mrb[58].mxu1 }
0x181f   :  { %v5737_v40 = vpop.f32.mrb[59].mxu1 }
0x18ab   :  { %v2203_v0 = vpop.xlane.xlu1 %2202 }
0x18ac   :  { %v2204_v7 = vsub.f32 %v2201_v5, %v2203_v0 }
0x18ae   :  { %v2205_v19 = vmul.f32 1.442695, %v2204_v7 }
0x18b0   :  { %6846 = vpow2.f32 %v2205_v19 }
0x18ba   :  { %v6847_v31 = vpop.eup %6846 }
0x18bb   :  { %2207 = vadd.xlane.f32.xlu0 %v6847_v31 }
0x1948   :  { %v2208_v61 = vpop.xlane.xlu0 %2207 }
0x1949   :  { %6848 = vrcp.f32 %v2208_v61 }
0x1953   :  { %v6849_v23 = vpop.eup %6848 }
0x1954   :  { %v2210_v54 = vmul.f32 %v6849_v23, %v6847_v31 }
0x1956   :  { %v2211_v10 = vpack.c.bf16 %v2210_v54, %v2210_v54 }
0x1958   :  { %5755 = vmatmul.mubr.bf16.vlgmr.msra.gmra.mrb[64].mxu0 %v2211_v10 }
0x1959   :  { %5799 = vmatpush3.bf16.msra.mxu0 %v8091_v11  ;;  %5814 = vmatprep.mubr.msk.bf16.mxu0 %vm7253_vm0, %v9365_v56 }
0x195a   :  { %5800 = vmatprep.subr.bf16.mxu0 %v9365_v56 }
0x195d   :  { %5801 = vmatpush3.bf16.msra.mxu0 %v8094_v13 }
0x195e   :  { %5802 = vmatprep.subr.bf16.mxu0 %v9365_v56 }
0x1961   :  { %5803 = vmatpush3.bf16.msra.mxu0 %v8098_v20 }
0x1962   :  { %5804 = vmatprep.subr.bf16.mxu0 %v9365_v56 }
0x1965   :  { %5805 = vmatpush3.bf16.msra.mxu0 %v8102_v21 }
0x1966   :  { %5806 = vmatprep.subr.bf16.mxu0 %v9365_v56 }
0x1969   :  { %5807 = vmatpush3.bf16.msra.mxu0 %v8106_v32 }
0x196a   :  { %5808 = vmatprep.subr.bf16.mxu0 %v9365_v56 }
0x196d   :  { %5809 = vmatpush3.bf16.msra.mxu0 %v8129_v42 }
0x196e   :  { %5810 = vmatprep.subr.bf16.mxu0 %v9365_v56 }
0x1971   :  { %5811 = vmatpush3.bf16.msra.mxu0 %v8133_v51 }
0x1972   :  { %5812 = vmatprep.subr.bf16.mxu0 %v9365_v56 }
0x1975   :  { %5813 = vmatpush3.bf16.msra.mxu0 %v8137_v12 }
0x1976   :  { %5818 = vmatprep.subr.bf16.mxu0 %v9365_v56 }
0x1a2b   :  { %v2246_v10 = vpop.f32.mrb[64].mxu0 }
0x1a2c   :  { %v2252_v54 = vpack.c.bf16 %v2246_v10, %v2246_v10  ;;  %v5756_v23 = vpop.f32.mrb[65].mxu0 }
0x1a2d   :  { %v2249_v9 = vpop.f32.mrb[66].mxu0 }
0x1a2e   :  { %v5757_v60 = vpop.f32.mrb[67].mxu0  ;;  %5795 = vmatmul.mubr.bf16.vlgmr.msra.gmra.mrb[60].mxu1 %v2252_v54 }
0x1a2f   :  { %5859 = vmatpush3.bf16.xpose.msra.mxu1 %v7859_v2  ;;  %5874 = vmatprep.mubr.msk.bf16.mxu1 %vm7253_vm0, %v9365_v56 }
0x1a30   :  { %5860 = vmatprep.subr.bf16.mxu1 %v9365_v56 }
0x1a37   :  { %5861 = vmatpush3.bf16.xpose.msra.mxu1 %v7865_v4 }
0x1a38   :  { %5862 = vmatprep.subr.bf16.mxu1 %v9365_v56 }
0x1a3f   :  { %5863 = vmatpush3.bf16.xpose.msra.mxu1 %v7871_v6 }
0x1a40   :  { %5864 = vmatprep.subr.bf16.mxu1 %v9365_v56 }
0x1a47   :  { %5865 = vmatpush3.bf16.xpose.msra.mxu1 %v7877_v57 }
0x1a48   :  { %5866 = vmatprep.subr.bf16.mxu1 %v9365_v56 }
0x1a4f   :  { %5867 = vmatpush3.bf16.xpose.msra.mxu1 %v7883_v16 }
0x1a50   :  { %5868 = vmatprep.subr.bf16.mxu1 %v9365_v56 }
0x1a57   :  { %5869 = vmatpush3.bf16.xpose.msra.mxu1 %v7889_v26 }
0x1a58   :  { %5870 = vmatprep.subr.bf16.mxu1 %v9365_v56 }
0x1a5f   :  { %5871 = vmatpush3.bf16.xpose.msra.mxu1 %v7894_v34 }
0x1a60   :  { %5872 = vmatprep.subr.bf16.mxu1 %v9365_v56 }
0x1a67   :  { %5873 = vmatpush3.bf16.xpose.msra.mxu1 %v7964_v58 }
0x1a68   :  { %5898 = vmatprep.subr.bf16.mxu1 %v9365_v56 }
0x1b01   :  { %v2327_v5 = vpop.f32.mrb[60].mxu1 }
0x1b02   :  { %6850 = vtanh.f32 %v2327_v5  ;;  %v5796_v38 = vpop.f32.mrb[61].mxu1 }
0x1b03   :  { %v2330_v40 = vpop.f32.mrb[62].mxu1 }
0x1b04   :  { %v5797_v0 = vpop.f32.mrb[63].mxu1 }
0x1b0c   :  { %v6851_v7 = vpop.eup %6850 }
0x1b0d   :  { %v2334_v19 = vpack.c.bf16 %v6851_v7, %v6851_v7 }
0x1b0f   :  { %5815 = vmatmul.mubr.bf16.vlgmr.msra.gmra.mrb[68].mxu0 %v2334_v19 }
0x1b10   :  { %5819 = vmatpush3.bf16.msra.mxu0 %v7904_v48  ;;  %5834 = vmatprep.mubr.msk.bf16.mxu0 %vm7253_vm0, %v9365_v56 }
0x1b11   :  { %5820 = vmatprep.subr.bf16.mxu0 %v9365_v56 }
0x1b14   :  { %5821 = vmatpush3.bf16.msra.mxu0 %v7909_v8  ;;  %v9366_v8 = vld [vmem:[#allocation30_spill] sm:$0xff] }
0x1b15   :  { %5822 = vmatprep.subr.bf16.mxu0 %v9365_v56 }
0x1b18   :  { %5823 = vmatpush3.bf16.msra.mxu0 %v7915_v46 }
0x1b19   :  { %5824 = vmatprep.subr.bf16.mxu0 %v9365_v56 }
0x1b1c   :  { %5825 = vmatpush3.bf16.msra.mxu0 %v7919_v63 }
0x1b1d   :  { %5826 = vmatprep.subr.bf16.mxu0 %v9365_v56 }
0x1b20   :  { %5827 = vmatpush3.bf16.msra.mxu0 %v7924_v50 }
0x1b21   :  { %5828 = vmatprep.subr.bf16.mxu0 %v9365_v56 }
0x1b24   :  { %5829 = vmatpush3.bf16.msra.mxu0 %v7928_v52 }
0x1b25   :  { %5830 = vmatprep.subr.bf16.mxu0 %v9365_v56 }
0x1b28   :  { %5831 = vmatpush3.bf16.msra.mxu0 %v7932_v15 }
0x1b29   :  { %5832 = vmatprep.subr.bf16.mxu0 %v9365_v56 }
0x1b2c   :  { %5833 = vmatpush3.bf16.msra.mxu0 %v7939_v53 }
0x1b2d   :  { %5838 = vmatprep.subr.bf16.mxu0 %v9365_v56 }
0x1b2f   :  { %5835 = vmatmul.mubr.bf16.vlgmr.msra.gmra.mrb[72].mxu0 %v8212_v3 }
0x1b30   :  { %5839 = vmatpush3.bf16.msra.mxu0 %v7943_v18  ;;  %5854 = vmatprep.mubr.msk.bf16.mxu0 %vm7253_vm0, %v9365_v56 }
0x1b31   :  { %5840 = vmatprep.subr.bf16.mxu0 %v9365_v56 }
0x1b34   :  { %5841 = vmatpush3.bf16.msra.mxu0 %v7941_v14 }
0x1b35   :  { %5842 = vmatprep.subr.bf16.mxu0 %v9365_v56 }
0x1b38   :  { %5843 = vmatpush3.bf16.msra.mxu0 %v7949_v27 }
0x1b39   :  { %5844 = vmatprep.subr.bf16.mxu0 %v9365_v56 }
0x1b3c   :  { %5845 = vmatpush3.bf16.msra.mxu0 %v7947_v25 }
0x1b3d   :  { %5846 = vmatprep.subr.bf16.mxu0 %v9365_v56 }
0x1b40   :  { %5847 = vmatpush3.bf16.msra.mxu0 %v7953_v37 }
0x1b41   :  { %5848 = vmatprep.subr.bf16.mxu0 %v9365_v56 }
0x1b44   :  { %5849 = vmatpush3.bf16.msra.mxu0 %v7951_v36 }
0x1b45   :  { %5850 = vmatprep.subr.bf16.mxu0 %v9365_v56 }
0x1b48   :  { %5851 = vmatpush3.bf16.msra.mxu0 %v7957_v41 }
0x1b49   :  { %5852 = vmatprep.subr.bf16.mxu0 %v9365_v56 }
0x1b4c   :  { %5853 = vmatpush3.bf16.msra.mxu0 %v7955_v62 }
0x1b4d   :  { %5878 = vmatprep.subr.bf16.mxu0 %v9365_v56 }
0x1be2   :  { %v2369_v48 = vpop.f32.mrb[68].mxu0 }
0x1be3   :  { %v8328_v46 = vadd.f32 %v9366_v8, %v2369_v48  ;;  %v5816_v63 = vpop.f32.mrb[69].mxu0 }
0x1be4   :  { %v2372_v50 = vpop.f32.mrb[70].mxu0 }
0x1be5   :  { %9367 = vst [vmem:[#allocation30_spill] sm:$0xff] %v8328_v46  ;;  %2375 = vmax.xlane.f32.xlu1 %v8328_v46  ;;  %v5817_v52 = vpop.f32.mrb[71].mxu0 }
0x1c72   :  { %v8331_v15 = vpop.xlane.xlu1 %2375 }
0x1c73   :  { %9368 = vst [vmem:[#allocation33_spill] sm:$0xff] %v8331_v15  ;;  %vm2388_vm8 = vcmp.ge.f32.partialorder %v8328_v46, %v8331_v15 }
0x1c74   :  { %v2389_v53 = vsel %vm2388_vm8, %v7983_v59, 128 }
0x1c75   :  { %v2391_v3 = vshra.s32 %v2389_v53, 16  ;;  %v2390_v61 = vand.u32 65535, %v2389_v53 }
0x1c77   :  { %v2393_v31 = vcvt.s32.f32 %v2391_v3  ;;  %v2392_v54 = vcvt.s32.f32 %v2390_v61  ;;  %v8434_v61 = vld [vmem:[#allocation13] sm:$0xff]  }
0x1c79   :  { %2394 = vmin.xlane.f32.xlu0 %v2393_v31 }
0x1d06   :  { %v2395_v10 = vpop.xlane.xlu0 %2394 }
0x1d07   :  { %vm2396_vm9 = vcmp.eq.f32.partialorder %v2393_v31, %v2395_v10  ;;  %v2401_v9 = vcvt.f32.s32 %v2395_v10  ;;  %v8440_v10 = vld [vmem:[#allocation13 + $0x8] sm:$0xff]  }
0x1d08   :  { %v2397_v23 = vsel %vm2396_vm9, %v2392_v54, inf  ;;  %v8444_v54 = vld [vmem:[#allocation13 + $0x10] sm:$0xff]  }
0x1d09   :  { %2398 = vmin.xlane.f32.xlu1 %v2397_v23  ;;  %v2402_v5 = vshll.u32 %v2401_v9, 16  ;;  %v8448_v23 = vld [vmem:[#allocation13 + $0x18] sm:$0xff]   ;;  %v8452_v9 = vld [vmem:[#allocation13 + $0x20] sm:$0xff]  }
0x1d96   :  { %v2399_v60 = vpop.xlane.xlu1 %2398 }
0x1d97   :  { %v2400_v38 = vcvt.f32.s32 %v2399_v60  ;;  %v8456_v60 = vld [vmem:[#allocation13 + $0x28] sm:$0xff]  }
0x1d99   :  { %v2403_v40 = vadd.s32 %v2402_v5, %v2400_v38  ;;  %v8460_v5 = vld [vmem:[#allocation13 + $0x30] sm:$0xff]   ;;  %v8464_v38 = vld [vmem:[#allocation13 + $0x38] sm:$0xff]  }
0x1d9b   :  { %vm2404_vm10 = vcmp.eq.s32.totalorder %v2403_v40, %v7983_v59 }
0x1d9c   :  { %vm4457_vm11 = vmpackc.low %vm2404_vm10, %vm2404_vm10 }
0x1d9d   :  { %5855 = vmatmul.mubr.msk.bf16.vlgmr.msra.gmra.mrb[72].mxu0 %vm4457_vm11, %v9364_v35 }
0x1d9e   :  { %5879 = vmatpush3.bf16.msra.mxu0 %v7859_v2  ;;  %5894 = vmatprep.mubr.msk.bf16.mxu0 %vm7253_vm0, %v9365_v56 }
0x1d9f   :  { %5880 = vmatprep.subr.bf16.mxu0 %v9365_v56 }
0x1da2   :  { %5881 = vmatpush3.bf16.msra.mxu0 %v7865_v4 }
0x1da3   :  { %5882 = vmatprep.subr.bf16.mxu0 %v9365_v56 }
0x1da6   :  { %5883 = vmatpush3.bf16.msra.mxu0 %v7871_v6 }
0x1da7   :  { %5884 = vmatprep.subr.bf16.mxu0 %v9365_v56 }
0x1daa   :  { %5885 = vmatpush3.bf16.msra.mxu0 %v7877_v57 }
0x1dab   :  { %5886 = vmatprep.subr.bf16.mxu0 %v9365_v56 }
0x1dae   :  { %5887 = vmatpush3.bf16.msra.mxu0 %v7883_v16 }
0x1daf   :  { %5888 = vmatprep.subr.bf16.mxu0 %v9365_v56 }
0x1db2   :  { %5889 = vmatpush3.bf16.msra.mxu0 %v7889_v26 }
0x1db3   :  { %5890 = vmatprep.subr.bf16.mxu0 %v9365_v56 }
0x1db6   :  { %5891 = vmatpush3.bf16.msra.mxu0 %v7894_v34 }
0x1db7   :  { %5892 = vmatprep.subr.bf16.mxu0 %v9365_v56 }
0x1dba   :  { %5893 = vmatpush3.bf16.msra.mxu0 %v7964_v58 }
0x1dbb   :  { %5938 = vmatprep.subr.bf16.mxu0 %v9365_v56 }
0x1e70   :  { %v2482_v0 = vpop.f32.mrb[72].mxu0 }
0x1e71   :  { %6852 = vtanh.f32 %v2482_v0  ;;  %v5856_v7 = vpop.f32.mrb[73].mxu0 }
0x1e72   :  { %v2485_v19 = vpop.f32.mrb[74].mxu0 }
0x1e73   :  { %v5857_v48 = vpop.f32.mrb[75].mxu0 }
0x1e7b   :  { %v6853_v63 = vpop.eup %6852 }
0x1e7c   :  { %v8356_v50 = vpack.c.bf16 %v6853_v63, %v6853_v63 }
0x1e7e   :  { %5875 = vmatmul.mubr.bf16.vlgmr.msra.gmra.mrb[64].mxu1 %v8356_v50 }
0x1e7f   :  { %5899 = vmatpush3.bf16.msra.mxu1 %v8009_v17  ;;  %5914 = vmatprep.mubr.msk.bf16.mxu1 %vm7253_vm0, %v9365_v56  ;;  %v9369_v17 = vld [vmem:[#allocation28_spill] sm:$0xff] }
0x1e80   :  { %5900 = vmatprep.subr.bf16.mxu1 %v9365_v56 }
0x1e83   :  { %5901 = vmatpush3.bf16.msra.mxu1 %v8015_v1  ;;  %v9370_v1 = vld [vmem:[#allocation29_spill] sm:$0xff] }
0x1e84   :  { %5902 = vmatprep.subr.bf16.mxu1 %v9365_v56 }
0x1e87   :  { %5903 = vmatpush3.bf16.msra.mxu1 %v8021_v22 }
0x1e88   :  { %5904 = vmatprep.subr.bf16.mxu1 %v9365_v56 }
0x1e8b   :  { %5905 = vmatpush3.bf16.msra.mxu1 %v8025_v24 }
0x1e8c   :  { %5906 = vmatprep.subr.bf16.mxu1 %v9365_v56 }
0x1e8f   :  { %5907 = vmatpush3.bf16.msra.mxu1 %v8029_v55 }
0x1e90   :  { %5908 = vmatprep.subr.bf16.mxu1 %v9365_v56 }
0x1e93   :  { %5909 = vmatpush3.bf16.msra.mxu1 %v8033_v28 }
0x1e94   :  { %5910 = vmatprep.subr.bf16.mxu1 %v9365_v56 }
0x1e97   :  { %5911 = vmatpush3.bf16.msra.mxu1 %v8037_v29 }
0x1e98   :  { %5912 = vmatprep.subr.bf16.mxu1 %v9365_v56 }
0x1e9b   :  { %5913 = vmatpush3.bf16.msra.mxu1 %v8041_v30 }
0x1e9c   :  { %5918 = vmatprep.subr.bf16.mxu1 %v9365_v56 }
0x1e9e   :  { %5915 = vmatmul.mubr.bf16.vlgmr.msra.gmra.mrb[68].mxu1 %v8356_v50 }
0x1e9f   :  { %5919 = vmatpush3.bf16.msra.mxu1 %v8057_v39  ;;  %5934 = vmatprep.mubr.msk.bf16.mxu1 %vm7253_vm0, %v9365_v56 }
0x1ea0   :  { %5920 = vmatprep.subr.bf16.mxu1 %v9365_v56 }
0x1ea3   :  { %5921 = vmatpush3.bf16.msra.mxu1 %v8060_v43 }
0x1ea4   :  { %5922 = vmatprep.subr.bf16.mxu1 %v9365_v56 }
0x1ea7   :  { %5923 = vmatpush3.bf16.msra.mxu1 %v8064_v44 }
0x1ea8   :  { %5924 = vmatprep.subr.bf16.mxu1 %v9365_v56 }
0x1eab   :  { %5925 = vmatpush3.bf16.msra.mxu1 %v8068_v45 }
0x1eac   :  { %5926 = vmatprep.subr.bf16.mxu1 %v9365_v56 }
0x1eaf   :  { %5927 = vmatpush3.bf16.msra.mxu1 %v8072_v47 }
0x1eb0   :  { %5928 = vmatprep.subr.bf16.mxu1 %v9365_v56 }
0x1eb3   :  { %5929 = vmatpush3.bf16.msra.mxu1 %v8076_v49 }
0x1eb4   :  { %5930 = vmatprep.subr.bf16.mxu1 %v9365_v56 }
0x1eb7   :  { %5931 = vmatpush3.bf16.msra.mxu1 %v9369_v17 }
0x1eb8   :  { %5932 = vmatprep.subr.bf16.mxu1 %v9365_v56 }
0x1ebb   :  { %5933 = vmatpush3.bf16.msra.mxu1 %v9370_v1 }
0x1ebc   :  { %5998 = vmatprep.subr.bf16.mxu1 %v9365_v56 }
0x1f51   :  { %v2524_v22 = vpop.f32.mrb[64].mxu1 }
0x1f52   :  { %v5876_v24 = vpop.f32.mrb[65].mxu1  ;;  %v2530_v55 = vsel %vm8051_vm3, %v2524_v22, -1e+30 }
0x1f53   :  { %2531 = vmax.xlane.f32.xlu0 %v2530_v55  ;;  %v2527_v28 = vpop.f32.mrb[66].mxu1 }
0x1f54   :  { %v5877_v29 = vpop.f32.mrb[67].mxu1 }
0x1fe0   :  { %v2532_v30 = vpop.xlane.xlu0 %2531 }
0x1fe1   :  { %v2533_v39 = vsub.f32 %v2530_v55, %v2532_v30 }
0x1fe3   :  { %v2534_v43 = vmul.f32 1.442695, %v2533_v39 }
0x1fe5   :  { %6854 = vpow2.f32 %v2534_v43 }
0x1fef   :  { %v6855_v44 = vpop.eup %6854 }
0x1ff0   :  { %2536 = vadd.xlane.f32.xlu1 %v6855_v44 }
0x207d   :  { %v2537_v45 = vpop.xlane.xlu1 %2536 }
0x207e   :  { %6856 = vrcp.f32 %v2537_v45 }
0x2088   :  { %v6857_v47 = vpop.eup %6856 }
0x2089   :  { %v2539_v49 = vmul.f32 %v6857_v47, %v6855_v44 }
0x208b   :  { %v2540_v52 = vpack.c.bf16 %v2539_v49, %v2539_v49 }
0x208d   :  { %5895 = vmatmul.mubr.bf16.vlgmr.msra.gmra.mrb[76].mxu0 %v2540_v52 }
0x208e   :  { %5939 = vmatpush3.bf16.msra.mxu0 %v8091_v11  ;;  %5954 = vmatprep.mubr.msk.bf16.mxu0 %vm7253_vm0, %v9365_v56 }
0x208f   :  { %5940 = vmatprep.subr.bf16.mxu0 %v9365_v56 }
0x2092   :  { %5941 = vmatpush3.bf16.msra.mxu0 %v8094_v13 }
0x2093   :  { %5942 = vmatprep.subr.bf16.mxu0 %v9365_v56 }
0x2096   :  { %5943 = vmatpush3.bf16.msra.mxu0 %v8098_v20 }
0x2097   :  { %5944 = vmatprep.subr.bf16.mxu0 %v9365_v56 }
0x209a   :  { %5945 = vmatpush3.bf16.msra.mxu0 %v8102_v21 }
0x209b   :  { %5946 = vmatprep.subr.bf16.mxu0 %v9365_v56 }
0x209e   :  { %5947 = vmatpush3.bf16.msra.mxu0 %v8106_v32 }
0x209f   :  { %5948 = vmatprep.subr.bf16.mxu0 %v9365_v56 }
0x20a2   :  { %5949 = vmatpush3.bf16.msra.mxu0 %v8129_v42 }
0x20a3   :  { %5950 = vmatprep.subr.bf16.mxu0 %v9365_v56 }
0x20a6   :  { %5951 = vmatpush3.bf16.msra.mxu0 %v8133_v51 }
0x20a7   :  { %5952 = vmatprep.subr.bf16.mxu0 %v9365_v56 }
0x20aa   :  { %5953 = vmatpush3.bf16.msra.mxu0 %v8137_v12 }
0x20ab   :  { %5958 = vmatprep.subr.bf16.mxu0 %v9365_v56 }
0x2160   :  { %v2575_v11 = vpop.f32.mrb[76].mxu0 }
0x2161   :  { %v2581_v13 = vpack.c.bf16 %v2575_v11, %v2575_v11  ;;  %v5896_v20 = vpop.f32.mrb[77].mxu0 }
0x2162   :  { %v2578_v21 = vpop.f32.mrb[78].mxu0  ;;  %v8525_v20 = vld [vmem:[#allocation16 + $0x8] sm:$0xff]  }
0x2163   :  { %v5897_v53 = vpop.f32.mrb[79].mxu0  ;;  %5935 = vmatmul.mubr.bf16.vlgmr.msra.gmra.mrb[68].mxu1 %v2581_v13  ;;  %v8519_v13 = vld [vmem:[#allocation16] sm:$0xff]   ;;  %v8529_v21 = vld [vmem:[#allocation16 + $0x10] sm:$0xff]  }
0x2164   :  { %5999 = vmatpush3.bf16.xpose.msra.mxu1 %v7859_v2  ;;  %6014 = vmatprep.mubr.msk.bf16.mxu1 %vm7253_vm0, %v9365_v56  ;;  %v8533_v53 = vld [vmem:[#allocation16 + $0x18] sm:$0xff]  }
0x2165   :  { %6000 = vmatprep.subr.bf16.mxu1 %v9365_v56 }
0x216c   :  { %6001 = vmatpush3.bf16.xpose.msra.mxu1 %v7865_v4 }
0x216d   :  { %6002 = vmatprep.subr.bf16.mxu1 %v9365_v56 }
0x2174   :  { %6003 = vmatpush3.bf16.xpose.msra.mxu1 %v7871_v6 }
0x2175   :  { %6004 = vmatprep.subr.bf16.mxu1 %v9365_v56 }
0x217c   :  { %6005 = vmatpush3.bf16.xpose.msra.mxu1 %v7877_v57 }
0x217d   :  { %6006 = vmatprep.subr.bf16.mxu1 %v9365_v56 }
0x2184   :  { %6007 = vmatpush3.bf16.xpose.msra.mxu1 %v7883_v16 }
0x2185   :  { %6008 = vmatprep.subr.bf16.mxu1 %v9365_v56 }
0x218c   :  { %6009 = vmatpush3.bf16.xpose.msra.mxu1 %v7889_v26 }
0x218d   :  { %6010 = vmatprep.subr.bf16.mxu1 %v9365_v56 }
0x2194   :  { %6011 = vmatpush3.bf16.xpose.msra.mxu1 %v7894_v34 }
0x2195   :  { %6012 = vmatprep.subr.bf16.mxu1 %v9365_v56 }
0x219c   :  { %6013 = vmatpush3.bf16.xpose.msra.mxu1 %v7964_v58 }
0x219d   :  { %6038 = vmatprep.subr.bf16.mxu1 %v9365_v56 }
0x2236   :  { %v2656_v32 = vpop.f32.mrb[68].mxu1 }
0x2237   :  { %6858 = vtanh.f32 %v2656_v32  ;;  %v5936_v42 = vpop.f32.mrb[69].mxu1  ;;  %v8537_v32 = vld [vmem:[#allocation16 + $0x20] sm:$0xff]  }
0x2238   :  { %v2659_v51 = vpop.f32.mrb[70].mxu1  ;;  %v8541_v42 = vld [vmem:[#allocation16 + $0x28] sm:$0xff]  }
0x2239   :  { %v5937_v12 = vpop.f32.mrb[71].mxu1  ;;  %v8545_v51 = vld [vmem:[#allocation16 + $0x30] sm:$0xff]  }
0x223a   :  { %v8549_v12 = vld [vmem:[#allocation16 + $0x38] sm:$0xff]  }
0x2241   :  { %v6859_v3 = vpop.eup %6858 }
0x2242   :  { %v2663_v31 = vpack.c.bf16 %v6859_v3, %v6859_v3  ;;  %v8554_v3 = vld [vmem:[#allocation15] sm:$0xff]  }
0x2244   :  { %5955 = vmatmul.mubr.bf16.vlgmr.msra.gmra.mrb[80].mxu0 %v2663_v31  ;;  %v8560_v31 = vld [vmem:[#allocation15 + $0x8] sm:$0xff]  }
0x2245   :  { %5959 = vmatpush3.bf16.msra.mxu0 %v8434_v61  ;;  %5974 = vmatprep.mubr.msk.bf16.mxu0 %vm7253_vm0, %v9365_v56 }
0x2246   :  { %5960 = vmatprep.subr.bf16.mxu0 %v9365_v56 }
0x2249   :  { %5961 = vmatpush3.bf16.msra.mxu0 %v8440_v10 }
0x224a   :  { %5962 = vmatprep.subr.bf16.mxu0 %v9365_v56 }
0x224d   :  { %5963 = vmatpush3.bf16.msra.mxu0 %v8444_v54 }
0x224e   :  { %5964 = vmatprep.subr.bf16.mxu0 %v9365_v56 }
0x2251   :  { %5965 = vmatpush3.bf16.msra.mxu0 %v8448_v23 }
0x2252   :  { %5966 = vmatprep.subr.bf16.mxu0 %v9365_v56 }
0x2255   :  { %5967 = vmatpush3.bf16.msra.mxu0 %v8452_v9 }
0x2256   :  { %5968 = vmatprep.subr.bf16.mxu0 %v9365_v56 }
0x2259   :  { %5969 = vmatpush3.bf16.msra.mxu0 %v8456_v60 }
0x225a   :  { %5970 = vmatprep.subr.bf16.mxu0 %v9365_v56 }
0x225d   :  { %5971 = vmatpush3.bf16.msra.mxu0 %v8460_v5 }
0x225e   :  { %5972 = vmatprep.subr.bf16.mxu0 %v9365_v56 }
0x2261   :  { %5973 = vmatpush3.bf16.msra.mxu0 %v8464_v38 }
0x2262   :  { %5978 = vmatprep.subr.bf16.mxu0 %v9365_v56 }
0x2264   :  { %5975 = vmatmul.mubr.bf16.vlgmr.msra.gmra.mrb[84].mxu0 %v8356_v50 }
0x2265   :  { %5979 = vmatpush3.bf16.msra.mxu0 %v7943_v18  ;;  %5994 = vmatprep.mubr.msk.bf16.mxu0 %vm7253_vm0, %v9365_v56 }
0x2266   :  { %5980 = vmatprep.subr.bf16.mxu0 %v9365_v56 }
0x2269   :  { %5981 = vmatpush3.bf16.msra.mxu0 %v7941_v14 }
0x226a   :  { %5982 = vmatprep.subr.bf16.mxu0 %v9365_v56 }
0x226d   :  { %5983 = vmatpush3.bf16.msra.mxu0 %v7949_v27 }
0x226e   :  { %5984 = vmatprep.subr.bf16.mxu0 %v9365_v56 }
0x2271   :  { %5985 = vmatpush3.bf16.msra.mxu0 %v7947_v25 }
0x2272   :  { %5986 = vmatprep.subr.bf16.mxu0 %v9365_v56 }
0x2275   :  { %5987 = vmatpush3.bf16.msra.mxu0 %v7953_v37 }
0x2276   :  { %5988 = vmatprep.subr.bf16.mxu0 %v9365_v56 }
0x2279   :  { %5989 = vmatpush3.bf16.msra.mxu0 %v7951_v36 }
0x227a   :  { %5990 = vmatprep.subr.bf16.mxu0 %v9365_v56 }
0x227d   :  { %5991 = vmatpush3.bf16.msra.mxu0 %v7957_v41 }
0x227e   :  { %5992 = vmatprep.subr.bf16.mxu0 %v9365_v56 }
0x2281   :  { %5993 = vmatpush3.bf16.msra.mxu0 %v7955_v62 }
0x2282   :  { %6018 = vmatprep.subr.bf16.mxu0 %v9365_v56 }
0x2317   :  { %v2698_v40 = vpop.f32.mrb[80].mxu0 }
0x2318   :  { %v8488_v0 = vadd.f32 %v9366_v8, %v2698_v40  ;;  %v5956_v7 = vpop.f32.mrb[81].mxu0  ;;  %v8564_v40 = vld [vmem:[#allocation15 + $0x10] sm:$0xff]  }
0x2319   :  { %v2701_v19 = vpop.f32.mrb[82].mxu0  ;;  %v8568_v7 = vld [vmem:[#allocation15 + $0x18] sm:$0xff]  }
0x231a   :  { %9371 = vst [vmem:[#allocation28_spill] sm:$0xff] %v8488_v0  ;;  %2704 = vmax.xlane.f32.xlu0 %v8488_v0  ;;  %v5957_v48 = vpop.f32.mrb[83].mxu0  ;;  %v8572_v19 = vld [vmem:[#allocation15 + $0x20] sm:$0xff]  }
0x231b   :  { %v8576_v48 = vld [vmem:[#allocation15 + $0x28] sm:$0xff]  }
0x23a7   :  { %v8491_v63 = vpop.xlane.xlu0 %2704 }
0x23a8   :  { %9372 = vst [vmem:[#allocation29_spill] sm:$0xff] %v8491_v63  ;;  %vm2717_vm12 = vcmp.ge.f32.partialorder %v8488_v0, %v8491_v63 }
0x23a9   :  { %v2718_v50 = vsel %vm2717_vm12, %v7983_v59, 128 }
0x23aa   :  { %v2720_v17 = vshra.s32 %v2718_v50, 16  ;;  %v2719_v22 = vand.u32 65535, %v2718_v50  ;;  %v8580_v50 = vld [vmem:[#allocation15 + $0x30] sm:$0xff]  }
0x23ac   :  { %v2722_v1 = vcvt.s32.f32 %v2720_v17  ;;  %v2721_v55 = vcvt.s32.f32 %v2719_v22  ;;  %v8584_v17 = vld [vmem:[#allocation15 + $0x38] sm:$0xff]  }
0x23ae   :  { %2723 = vmin.xlane.f32.xlu1 %v2722_v1 }
0x243b   :  { %v2724_v24 = vpop.xlane.xlu1 %2723 }
0x243c   :  { %vm2725_vm13 = vcmp.eq.f32.partialorder %v2722_v1, %v2724_v24  ;;  %v2730_v28 = vcvt.f32.s32 %v2724_v24 }
0x243d   :  { %v2726_v8 = vsel %vm2725_vm13, %v2721_v55, inf }
0x243e   :  { %2727 = vmin.xlane.f32.xlu0 %v2726_v8  ;;  %v2731_v30 = vshll.u32 %v2730_v28, 16 }
0x24cb   :  { %v2728_v29 = vpop.xlane.xlu0 %2727 }
0x24cc   :  { %v2729_v39 = vcvt.f32.s32 %v2728_v29 }
0x24ce   :  { %v2732_v43 = vadd.s32 %v2731_v30, %v2729_v39 }
0x24d0   :  { %vm2733_vm14 = vcmp.eq.s32.totalorder %v2732_v43, %v7983_v59 }
0x24d1   :  { %vm4460_vm15 = vmpackc.low %vm2733_vm14, %vm2733_vm14 }
0x24d2   :  { %5995 = vmatmul.mubr.msk.bf16.vlgmr.msra.gmra.mrb[84].mxu0 %vm4460_vm15, %v9364_v35 }
0x24d3   :  { %6019 = vmatpush3.bf16.msra.mxu0 %v7859_v2  ;;  %6034 = vmatprep.mubr.msk.bf16.mxu0 %vm7253_vm0, %v9365_v56 }
0x24d4   :  { %6020 = vmatprep.subr.bf16.mxu0 %v9365_v56 }
0x24d7   :  { %6021 = vmatpush3.bf16.msra.mxu0 %v7865_v4 }
0x24d8   :  { %6022 = vmatprep.subr.bf16.mxu0 %v9365_v56 }
0x24db   :  { %6023 = vmatpush3.bf16.msra.mxu0 %v7871_v6 }
0x24dc   :  { %6024 = vmatprep.subr.bf16.mxu0 %v9365_v56 }
0x24df   :  { %6025 = vmatpush3.bf16.msra.mxu0 %v7877_v57 }
0x24e0   :  { %6026 = vmatprep.subr.bf16.mxu0 %v9365_v56 }
0x24e3   :  { %6027 = vmatpush3.bf16.msra.mxu0 %v7883_v16 }
0x24e4   :  { %6028 = vmatprep.subr.bf16.mxu0 %v9365_v56 }
0x24e7   :  { %6029 = vmatpush3.bf16.msra.mxu0 %v7889_v26 }
0x24e8   :  { %6030 = vmatprep.subr.bf16.mxu0 %v9365_v56 }
0x24eb   :  { %6031 = vmatpush3.bf16.msra.mxu0 %v7894_v34 }
0x24ec   :  { %6032 = vmatprep.subr.bf16.mxu0 %v9365_v56 }
0x24ef   :  { %6033 = vmatpush3.bf16.msra.mxu0 %v7964_v58 }
0x24f0   :  { %6078 = vmatprep.subr.bf16.mxu0 %v9365_v56 }
0x25a5   :  { %v2811_v44 = vpop.f32.mrb[84].mxu0 }
0x25a6   :  { %6860 = vtanh.f32 %v2811_v44  ;;  %v5996_v45 = vpop.f32.mrb[85].mxu0 }
0x25a7   :  { %v2814_v47 = vpop.f32.mrb[86].mxu0 }
0x25a8   :  { %v5997_v49 = vpop.f32.mrb[87].mxu0 }
0x25a9   :  { %v8590_v49 = vld [vmem:[#allocation18] sm:$0xff]  }
0x25b0   :  { %v6861_v52 = vpop.eup %6860 }
0x25b1   :  { %v8516_v11 = vpack.c.bf16 %v6861_v52, %v6861_v52  ;;  %v8596_v52 = vld [vmem:[#allocation18 + $0x8] sm:$0xff]  }
0x25b3   :  { %6015 = vmatmul.mubr.bf16.vlgmr.msra.gmra.mrb[72].mxu1 %v8516_v11 }
0x25b4   :  { %6039 = vmatpush3.bf16.msra.mxu1 %v8519_v13  ;;  %6054 = vmatprep.mubr.msk.bf16.mxu1 %vm7253_vm0, %v9365_v56 }
0x25b5   :  { %6040 = vmatprep.subr.bf16.mxu1 %v9365_v56 }
0x25b8   :  { %6041 = vmatpush3.bf16.msra.mxu1 %v8525_v20 }
0x25b9   :  { %6042 = vmatprep.subr.bf16.mxu1 %v9365_v56 }
0x25bc   :  { %6043 = vmatpush3.bf16.msra.mxu1 %v8529_v21 }
0x25bd   :  { %6044 = vmatprep.subr.bf16.mxu1 %v9365_v56 }
0x25c0   :  { %6045 = vmatpush3.bf16.msra.mxu1 %v8533_v53 }
0x25c1   :  { %6046 = vmatprep.subr.bf16.mxu1 %v9365_v56 }
0x25c4   :  { %6047 = vmatpush3.bf16.msra.mxu1 %v8537_v32 }
0x25c5   :  { %6048 = vmatprep.subr.bf16.mxu1 %v9365_v56 }
0x25c8   :  { %6049 = vmatpush3.bf16.msra.mxu1 %v8541_v42 }
0x25c9   :  { %6050 = vmatprep.subr.bf16.mxu1 %v9365_v56 }
0x25cc   :  { %6051 = vmatpush3.bf16.msra.mxu1 %v8545_v51 }
0x25cd   :  { %6052 = vmatprep.subr.bf16.mxu1 %v9365_v56 }
0x25d0   :  { %6053 = vmatpush3.bf16.msra.mxu1 %v8549_v12 }
0x25d1   :  { %6058 = vmatprep.subr.bf16.mxu1 %v9365_v56 }
0x25d3   :  { %6055 = vmatmul.mubr.bf16.vlgmr.msra.gmra.mrb[76].mxu1 %v8516_v11 }
0x25d4   :  { %6059 = vmatpush3.bf16.msra.mxu1 %v8554_v3  ;;  %6074 = vmatprep.mubr.msk.bf16.mxu1 %vm7253_vm0, %v9365_v56 }
0x25d5   :  { %6060 = vmatprep.subr.bf16.mxu1 %v9365_v56 }
0x25d8   :  { %6061 = vmatpush3.bf16.msra.mxu1 %v8560_v31 }
0x25d9   :  { %6062 = vmatprep.subr.bf16.mxu1 %v9365_v56 }
0x25dc   :  { %6063 = vmatpush3.bf16.msra.mxu1 %v8564_v40 }
0x25dd   :  { %6064 = vmatprep.subr.bf16.mxu1 %v9365_v56 }
0x25e0   :  { %6065 = vmatpush3.bf16.msra.mxu1 %v8568_v7 }
0x25e1   :  { %6066 = vmatprep.subr.bf16.mxu1 %v9365_v56 }
0x25e4   :  { %6067 = vmatpush3.bf16.msra.mxu1 %v8572_v19 }
0x25e5   :  { %6068 = vmatprep.subr.bf16.mxu1 %v9365_v56 }
0x25e8   :  { %6069 = vmatpush3.bf16.msra.mxu1 %v8576_v48 }
0x25e9   :  { %6070 = vmatprep.subr.bf16.mxu1 %v9365_v56 }
0x25ec   :  { %6071 = vmatpush3.bf16.msra.mxu1 %v8580_v50 }
0x25ed   :  { %6072 = vmatprep.subr.bf16.mxu1 %v9365_v56 }
0x25f0   :  { %6073 = vmatpush3.bf16.msra.mxu1 %v8584_v17 }
0x25f1   :  { %6138 = vmatprep.subr.bf16.mxu1 %v9365_v56 }
0x2686   :  { %v2853_v1 = vpop.f32.mrb[72].mxu1 }
0x2687   :  { %v6016_v22 = vpop.f32.mrb[73].mxu1  ;;  %v2859_v24 = vsel %vm8051_vm3, %v2853_v1, -1e+30  ;;  %v8600_v1 = vld [vmem:[#allocation18 + $0x10] sm:$0xff]  }
0x2688   :  { %2860 = vmax.xlane.f32.xlu1 %v2859_v24  ;;  %v2856_v55 = vpop.f32.mrb[74].mxu1  ;;  %v8604_v22 = vld [vmem:[#allocation18 + $0x18] sm:$0xff]  }
0x2689   :  { %v6017_v8 = vpop.f32.mrb[75].mxu1  ;;  %v8612_v55 = vld [vmem:[#allocation18 + $0x28] sm:$0xff]  }
0x268a   :  { %v8616_v8 = vld [vmem:[#allocation18 + $0x30] sm:$0xff]  }
0x2715   :  { %v2861_v28 = vpop.xlane.xlu1 %2860 }
0x2716   :  { %v2862_v29 = vsub.f32 %v2859_v24, %v2861_v28  ;;  %v8608_v24 = vld [vmem:[#allocation18 + $0x20] sm:$0xff]   ;;  %v8620_v28 = vld [vmem:[#allocation18 + $0x38] sm:$0xff]  }
0x2718   :  { %v2863_v30 = vmul.f32 1.442695, %v2862_v29 }
0x271a   :  { %6862 = vpow2.f32 %v2863_v30 }
0x2724   :  { %v6863_v39 = vpop.eup %6862 }
0x2725   :  { %2865 = vadd.xlane.f32.xlu0 %v6863_v39 }
0x27b2   :  { %v2866_v43 = vpop.xlane.xlu0 %2865 }
0x27b3   :  { %6864 = vrcp.f32 %v2866_v43 }
0x27bd   :  { %v6865_v44 = vpop.eup %6864 }
0x27be   :  { %v2868_v45 = vmul.f32 %v6865_v44, %v6863_v39 }
0x27c0   :  { %v2869_v47 = vpack.c.bf16 %v2868_v45, %v2868_v45 }
0x27c2   :  { %6035 = vmatmul.mubr.bf16.vlgmr.msra.gmra.mrb[88].mxu0 %v2869_v47 }
0x27c3   :  { %6079 = vmatpush3.bf16.msra.mxu0 %v8590_v49  ;;  %6094 = vmatprep.mubr.msk.bf16.mxu0 %vm7253_vm0, %v9365_v56 }
0x27c4   :  { %6080 = vmatprep.subr.bf16.mxu0 %v9365_v56 }
0x27c7   :  { %6081 = vmatpush3.bf16.msra.mxu0 %v8596_v52 }
0x27c8   :  { %6082 = vmatprep.subr.bf16.mxu0 %v9365_v56 }
0x27cb   :  { %6083 = vmatpush3.bf16.msra.mxu0 %v8600_v1 }
0x27cc   :  { %6084 = vmatprep.subr.bf16.mxu0 %v9365_v56 }
0x27cf   :  { %6085 = vmatpush3.bf16.msra.mxu0 %v8604_v22 }
0x27d0   :  { %6086 = vmatprep.subr.bf16.mxu0 %v9365_v56 }
0x27d3   :  { %6087 = vmatpush3.bf16.msra.mxu0 %v8608_v24 }
0x27d4   :  { %6088 = vmatprep.subr.bf16.mxu0 %v9365_v56 }
0x27d7   :  { %6089 = vmatpush3.bf16.msra.mxu0 %v8612_v55 }
0x27d8   :  { %6090 = vmatprep.subr.bf16.mxu0 %v9365_v56 }
0x27db   :  { %6091 = vmatpush3.bf16.msra.mxu0 %v8616_v8 }
0x27dc   :  { %6092 = vmatprep.subr.bf16.mxu0 %v9365_v56 }
0x27df   :  { %6093 = vmatpush3.bf16.msra.mxu0 %v8620_v28 }
0x27e0   :  { %6098 = vmatprep.subr.bf16.mxu0 %v9365_v56 }
0x2895   :  { %v2904_v29 = vpop.f32.mrb[88].mxu0 }
0x2896   :  { %v2910_v30 = vpack.c.bf16 %v2904_v29, %v2904_v29  ;;  %v6036_v39 = vpop.f32.mrb[89].mxu0 }
0x2897   :  { %v2907_v43 = vpop.f32.mrb[90].mxu0 }
0x2898   :  { %v6037_v44 = vpop.f32.mrb[91].mxu0  ;;  %6075 = vmatmul.mubr.bf16.vlgmr.msra.gmra.mrb[76].mxu1 %v2910_v30 }
0x2899   :  { %6139 = vmatpush3.bf16.xpose.msra.mxu1 %v7859_v2  ;;  %6154 = vmatprep.mubr.msk.bf16.mxu1 %vm7253_vm0, %v9365_v56  ;;  %v8682_v44 = vld [vmem:[%s9323_s11] ss:$0 sm:$0xff] }
0x289a   :  { %6140 = vmatprep.subr.bf16.mxu1 %v9365_v56  ;;  %9373 = vst [vmem:[#allocation34_spill] sm:$0xff] %v8682_v44 }
0x28a1   :  { %6141 = vmatpush3.bf16.xpose.msra.mxu1 %v7865_v4 }
0x28a2   :  { %6142 = vmatprep.subr.bf16.mxu1 %v9365_v56 }
0x28a9   :  { %6143 = vmatpush3.bf16.xpose.msra.mxu1 %v7871_v6 }
0x28aa   :  { %6144 = vmatprep.subr.bf16.mxu1 %v9365_v56 }
0x28b1   :  { %6145 = vmatpush3.bf16.xpose.msra.mxu1 %v7877_v57 }
0x28b2   :  { %6146 = vmatprep.subr.bf16.mxu1 %v9365_v56 }
0x28b9   :  { %6147 = vmatpush3.bf16.xpose.msra.mxu1 %v7883_v16 }
0x28ba   :  { %6148 = vmatprep.subr.bf16.mxu1 %v9365_v56 }
0x28c1   :  { %6149 = vmatpush3.bf16.xpose.msra.mxu1 %v7889_v26 }
0x28c2   :  { %6150 = vmatprep.subr.bf16.mxu1 %v9365_v56 }
0x28c9   :  { %6151 = vmatpush3.bf16.xpose.msra.mxu1 %v7894_v34 }
0x28ca   :  { %6152 = vmatprep.subr.bf16.mxu1 %v9365_v56 }
0x28d1   :  { %6153 = vmatpush3.bf16.xpose.msra.mxu1 %v7964_v58 }
0x28d2   :  { %6178 = vmatprep.subr.bf16.mxu1 %v9365_v56 }
0x296b   :  { %v2985_v45 = vpop.f32.mrb[76].mxu1 }
0x296c   :  { %6866 = vtanh.f32 %v2985_v45  ;;  %v6076_v47 = vpop.f32.mrb[77].mxu1 }
0x296d   :  { %v2988_v29 = vpop.f32.mrb[78].mxu1 }
0x296e   :  { %v6077_v30 = vpop.f32.mrb[79].mxu1 }
0x2976   :  { %v6867_v39 = vpop.eup %6866 }
0x2977   :  { %v2992_v43 = vpack.c.bf16 %v6867_v39, %v6867_v39 }
0x2979   :  { %6095 = vmatmul.mubr.bf16.vlgmr.msra.gmra.mrb[92].mxu0 %v2992_v43 }
0x297a   :  { %6099 = vmatpush3.bf16.msra.mxu0 %v8434_v61  ;;  %6114 = vmatprep.mubr.msk.bf16.mxu0 %vm7253_vm0, %v9365_v56 }
0x297b   :  { %6100 = vmatprep.subr.bf16.mxu0 %v9365_v56 }
0x297e   :  { %6101 = vmatpush3.bf16.msra.mxu0 %v8440_v10 }
0x297f   :  { %6102 = vmatprep.subr.bf16.mxu0 %v9365_v56 }
0x2982   :  { %6103 = vmatpush3.bf16.msra.mxu0 %v8444_v54 }
0x2983   :  { %6104 = vmatprep.subr.bf16.mxu0 %v9365_v56 }
0x2986   :  { %6105 = vmatpush3.bf16.msra.mxu0 %v8448_v23 }
0x2987   :  { %6106 = vmatprep.subr.bf16.mxu0 %v9365_v56 }
0x298a   :  { %6107 = vmatpush3.bf16.msra.mxu0 %v8452_v9 }
0x298b   :  { %6108 = vmatprep.subr.bf16.mxu0 %v9365_v56 }
0x298e   :  { %6109 = vmatpush3.bf16.msra.mxu0 %v8456_v60 }
0x298f   :  { %6110 = vmatprep.subr.bf16.mxu0 %v9365_v56 }
0x2992   :  { %6111 = vmatpush3.bf16.msra.mxu0 %v8460_v5 }
0x2993   :  { %6112 = vmatprep.subr.bf16.mxu0 %v9365_v56 }
0x2996   :  { %6113 = vmatpush3.bf16.msra.mxu0 %v8464_v38 }
0x2997   :  { %6118 = vmatprep.subr.bf16.mxu0 %v9365_v56 }
0x2999   :  { %6115 = vmatmul.mubr.bf16.vlgmr.msra.gmra.mrb[96].mxu0 %v8516_v11 }
0x299a   :  { %6119 = vmatpush3.bf16.msra.mxu0 %v7943_v18  ;;  %6134 = vmatprep.mubr.msk.bf16.mxu0 %vm7253_vm0, %v9365_v56 }
0x299b   :  { %6120 = vmatprep.subr.bf16.mxu0 %v9365_v56 }
0x299e   :  { %6121 = vmatpush3.bf16.msra.mxu0 %v7941_v14 }
0x299f   :  { %6122 = vmatprep.subr.bf16.mxu0 %v9365_v56 }
0x29a2   :  { %6123 = vmatpush3.bf16.msra.mxu0 %v7949_v27 }
0x29a3   :  { %6124 = vmatprep.subr.bf16.mxu0 %v9365_v56 }
0x29a6   :  { %6125 = vmatpush3.bf16.msra.mxu0 %v7947_v25 }
0x29a7   :  { %6126 = vmatprep.subr.bf16.mxu0 %v9365_v56 }
0x29aa   :  { %6127 = vmatpush3.bf16.msra.mxu0 %v7953_v37 }
0x29ab   :  { %6128 = vmatprep.subr.bf16.mxu0 %v9365_v56 }
0x29ae   :  { %6129 = vmatpush3.bf16.msra.mxu0 %v7951_v36 }
0x29af   :  { %6130 = vmatprep.subr.bf16.mxu0 %v9365_v56 }
0x29b2   :  { %6131 = vmatpush3.bf16.msra.mxu0 %v7957_v41 }
0x29b3   :  { %6132 = vmatprep.subr.bf16.mxu0 %v9365_v56 }
0x29b6   :  { %6133 = vmatpush3.bf16.msra.mxu0 %v7955_v62 }
0x29b7   :  { %6158 = vmatprep.subr.bf16.mxu0 %v9365_v56 }
0x2a4c   :  { %v3027_v11 = vpop.f32.mrb[92].mxu0 }
0x2a4d   :  { %v8685_v45 = vadd.f32 %v8682_v44, %v3027_v11  ;;  %v6096_v47 = vpop.f32.mrb[93].mxu0 }
0x2a4e   :  { %v3030_v29 = vpop.f32.mrb[94].mxu0 }
0x2a4f   :  { %9374 = vst [vmem:[#allocation35_spill] sm:$0xff] %v8685_v45  ;;  %3033 = vmax.xlane.f32.xlu1 %v8685_v45  ;;  %v6097_v30 = vpop.f32.mrb[95].mxu0 }
0x2adc   :  { %v8688_v39 = vpop.xlane.xlu1 %3033 }
0x2add   :  { %9375 = vst [vmem:[#allocation36_spill] sm:$0xff] %v8688_v39  ;;  %vm3046_vm1 = vcmp.ge.f32.partialorder %v8685_v45, %v8688_v39 }
0x2ade   :  { %v3047_v43 = vsel %vm3046_vm1, %v7983_v59, 128 }
0x2adf   :  { %v3049_v46 = vshra.s32 %v3047_v43, 16  ;;  %v3048_v0 = vand.u32 65535, %v3047_v43 }
0x2ae1   :  { %v3051_v15 = vcvt.s32.f32 %v3049_v46  ;;  %v3050_v62 = vcvt.s32.f32 %v3048_v0 }
0x2ae3   :  { %3052 = vmin.xlane.f32.xlu0 %v3051_v15 }
0x2b70   :  { %v3053_v63 = vpop.xlane.xlu0 %3052 }
0x2b71   :  { %vm3054_vm2 = vcmp.eq.f32.partialorder %v3051_v15, %v3053_v63  ;;  %v3059_v47 = vcvt.f32.s32 %v3053_v63 }
0x2b72   :  { %v3055_v11 = vsel %vm3054_vm2, %v3050_v62, inf }
0x2b73   :  { %3056 = vmin.xlane.f32.xlu1 %v3055_v11  ;;  %v3060_v44 = vshll.u32 %v3059_v47, 16 }
0x2c00   :  { %v3057_v29 = vpop.xlane.xlu1 %3056 }
0x2c01   :  { %v3058_v30 = vcvt.f32.s32 %v3057_v29 }
0x2c03   :  { %v3061_v41 = vadd.s32 %v3060_v44, %v3058_v30 }
0x2c05   :  { %vm3062_vm4 = vcmp.eq.s32.totalorder %v3061_v41, %v7983_v59 }
0x2c06   :  { %vm4463_vm5 = vmpackc.low %vm3062_vm4, %vm3062_vm4 }
0x2c07   :  { %6135 = vmatmul.mubr.msk.bf16.vlgmr.msra.gmra.mrb[96].mxu0 %vm4463_vm5, %v9364_v35 }
0x2c08   :  { %6159 = vmatpush3.bf16.msra.mxu0 %v7859_v2  ;;  %6174 = vmatprep.mubr.msk.bf16.mxu0 %vm7253_vm0, %v9365_v56 }
0x2c09   :  { %6160 = vmatprep.subr.bf16.mxu0 %v9365_v56 }
0x2c0c   :  { %6161 = vmatpush3.bf16.msra.mxu0 %v7865_v4 }
0x2c0d   :  { %6162 = vmatprep.subr.bf16.mxu0 %v9365_v56 }
0x2c10   :  { %6163 = vmatpush3.bf16.msra.mxu0 %v7871_v6 }
0x2c11   :  { %6164 = vmatprep.subr.bf16.mxu0 %v9365_v56 }
0x2c14   :  { %6165 = vmatpush3.bf16.msra.mxu0 %v7877_v57 }
0x2c15   :  { %6166 = vmatprep.subr.bf16.mxu0 %v9365_v56 }
0x2c18   :  { %6167 = vmatpush3.bf16.msra.mxu0 %v7883_v16 }
0x2c19   :  { %6168 = vmatprep.subr.bf16.mxu0 %v9365_v56 }
0x2c1c   :  { %6169 = vmatpush3.bf16.msra.mxu0 %v7889_v26 }
0x2c1d   :  { %6170 = vmatprep.subr.bf16.mxu0 %v9365_v56 }
0x2c20   :  { %6171 = vmatpush3.bf16.msra.mxu0 %v7894_v34 }
0x2c21   :  { %6172 = vmatprep.subr.bf16.mxu0 %v9365_v56 }
0x2c24   :  { %6173 = vmatpush3.bf16.msra.mxu0 %v7964_v58 }
0x2c25   :  { %6218 = vmatprep.subr.bf16.mxu0 %v9365_v56 }
0x2cda   :  { %v3140_v62 = vpop.f32.mrb[96].mxu0 }
0x2cdb   :  { %6868 = vtanh.f32 %v3140_v62  ;;  %v6136_v41 = vpop.f32.mrb[97].mxu0 }
0x2cdc   :  { %v3143_v46 = vpop.f32.mrb[98].mxu0 }
0x2cdd   :  { %v6137_v15 = vpop.f32.mrb[99].mxu0 }
0x2ce5   :  { %v6869_v0 = vpop.eup %6868 }
0x2ce6   :  { %v8713_v63 = vpack.c.bf16 %v6869_v0, %v6869_v0 }
0x2ce8   :  { %6155 = vmatmul.mubr.bf16.vlgmr.msra.gmra.mrb[80].mxu1 %v8713_v63 }
0x2ce9   :  { %6179 = vmatpush3.bf16.msra.mxu1 %v8519_v13  ;;  %6194 = vmatprep.mubr.msk.bf16.mxu1 %vm7253_vm0, %v9365_v56 }
0x2cea   :  { %6180 = vmatprep.subr.bf16.mxu1 %v9365_v56 }
0x2ced   :  { %6181 = vmatpush3.bf16.msra.mxu1 %v8525_v20 }
0x2cee   :  { %6182 = vmatprep.subr.bf16.mxu1 %v9365_v56 }
0x2cf1   :  { %6183 = vmatpush3.bf16.msra.mxu1 %v8529_v21 }
0x2cf2   :  { %6184 = vmatprep.subr.bf16.mxu1 %v9365_v56 }
0x2cf5   :  { %6185 = vmatpush3.bf16.msra.mxu1 %v8533_v53 }
0x2cf6   :  { %6186 = vmatprep.subr.bf16.mxu1 %v9365_v56 }
0x2cf9   :  { %6187 = vmatpush3.bf16.msra.mxu1 %v8537_v32 }
0x2cfa   :  { %6188 = vmatprep.subr.bf16.mxu1 %v9365_v56 }
0x2cfd   :  { %6189 = vmatpush3.bf16.msra.mxu1 %v8541_v42 }
0x2cfe   :  { %6190 = vmatprep.subr.bf16.mxu1 %v9365_v56 }
0x2d01   :  { %6191 = vmatpush3.bf16.msra.mxu1 %v8545_v51 }
0x2d02   :  { %6192 = vmatprep.subr.bf16.mxu1 %v9365_v56 }
0x2d05   :  { %6193 = vmatpush3.bf16.msra.mxu1 %v8549_v12 }
0x2d06   :  { %6198 = vmatprep.subr.bf16.mxu1 %v9365_v56 }
0x2d08   :  { %6195 = vmatmul.mubr.bf16.vlgmr.msra.gmra.mrb[84].mxu1 %v8713_v63 }
0x2d09   :  { %6199 = vmatpush3.bf16.msra.mxu1 %v8554_v3  ;;  %6214 = vmatprep.mubr.msk.bf16.mxu1 %vm7253_vm0, %v9365_v56 }
0x2d0a   :  { %6200 = vmatprep.subr.bf16.mxu1 %v9365_v56 }
0x2d0d   :  { %6201 = vmatpush3.bf16.msra.mxu1 %v8560_v31 }
0x2d0e   :  { %6202 = vmatprep.subr.bf16.mxu1 %v9365_v56 }
0x2d11   :  { %6203 = vmatpush3.bf16.msra.mxu1 %v8564_v40 }
0x2d12   :  { %6204 = vmatprep.subr.bf16.mxu1 %v9365_v56 }
0x2d15   :  { %6205 = vmatpush3.bf16.msra.mxu1 %v8568_v7 }
0x2d16   :  { %6206 = vmatprep.subr.bf16.mxu1 %v9365_v56 }
0x2d19   :  { %6207 = vmatpush3.bf16.msra.mxu1 %v8572_v19 }
0x2d1a   :  { %6208 = vmatprep.subr.bf16.mxu1 %v9365_v56 }
0x2d1d   :  { %6209 = vmatpush3.bf16.msra.mxu1 %v8576_v48 }
0x2d1e   :  { %6210 = vmatprep.subr.bf16.mxu1 %v9365_v56 }
0x2d21   :  { %6211 = vmatpush3.bf16.msra.mxu1 %v8580_v50 }
0x2d22   :  { %6212 = vmatprep.subr.bf16.mxu1 %v9365_v56 }
0x2d25   :  { %6213 = vmatpush3.bf16.msra.mxu1 %v8584_v17 }
0x2d26   :  { %6278 = vmatprep.subr.bf16.mxu1 %v9365_v56 }
0x2dbb   :  { %v3182_v44 = vpop.f32.mrb[80].mxu1 }
0x2dbc   :  { %v6156_v43 = vpop.f32.mrb[81].mxu1  ;;  %v3188_v11 = vsel %vm8051_vm3, %v3182_v44, -1e+30 }
0x2dbd   :  { %3189 = vmax.xlane.f32.xlu0 %v3188_v11  ;;  %v3185_v47 = vpop.f32.mrb[82].mxu1 }
0x2dbe   :  { %v6157_v29 = vpop.f32.mrb[83].mxu1 }
0x2e4a   :  { %v3190_v30 = vpop.xlane.xlu0 %3189 }
0x2e4b   :  { %v3191_v62 = vsub.f32 %v3188_v11, %v3190_v30 }
0x2e4d   :  { %v3192_v41 = vmul.f32 1.442695, %v3191_v62 }
0x2e4f   :  { %6870 = vpow2.f32 %v3192_v41 }
0x2e59   :  { %v6871_v46 = vpop.eup %6870 }
0x2e5a   :  { %3194 = vadd.xlane.f32.xlu1 %v6871_v46 }
0x2ee7   :  { %v3195_v15 = vpop.xlane.xlu1 %3194 }
0x2ee8   :  { %6872 = vrcp.f32 %v3195_v15 }
0x2ef2   :  { %v6873_v0 = vpop.eup %6872 }
0x2ef3   :  { %v3197_v45 = vmul.f32 %v6873_v0, %v6871_v46 }
0x2ef5   :  { %v3198_v39 = vpack.c.bf16 %v3197_v45, %v3197_v45 }
0x2ef7   :  { %6175 = vmatmul.mubr.bf16.vlgmr.msra.gmra.mrb[100].mxu0 %v3198_v39 }
0x2ef8   :  { %6219 = vmatpush3.bf16.msra.mxu0 %v8590_v49  ;;  %6234 = vmatprep.mubr.msk.bf16.mxu0 %vm7253_vm0, %v9365_v56 }
0x2ef9   :  { %6220 = vmatprep.subr.bf16.mxu0 %v9365_v56 }
0x2efc   :  { %6221 = vmatpush3.bf16.msra.mxu0 %v8596_v52 }
0x2efd   :  { %6222 = vmatprep.subr.bf16.mxu0 %v9365_v56 }
0x2f00   :  { %6223 = vmatpush3.bf16.msra.mxu0 %v8600_v1 }
0x2f01   :  { %6224 = vmatprep.subr.bf16.mxu0 %v9365_v56 }
0x2f04   :  { %6225 = vmatpush3.bf16.msra.mxu0 %v8604_v22 }
0x2f05   :  { %6226 = vmatprep.subr.bf16.mxu0 %v9365_v56 }
0x2f08   :  { %6227 = vmatpush3.bf16.msra.mxu0 %v8608_v24 }
0x2f09   :  { %6228 = vmatprep.subr.bf16.mxu0 %v9365_v56 }
0x2f0c   :  { %6229 = vmatpush3.bf16.msra.mxu0 %v8612_v55 }
0x2f0d   :  { %6230 = vmatprep.subr.bf16.mxu0 %v9365_v56 }
0x2f10   :  { %6231 = vmatpush3.bf16.msra.mxu0 %v8616_v8 }
0x2f11   :  { %6232 = vmatprep.subr.bf16.mxu0 %v9365_v56 }
0x2f14   :  { %6233 = vmatpush3.bf16.msra.mxu0 %v8620_v28 }
0x2f15   :  { %6238 = vmatprep.subr.bf16.mxu0 %v9365_v56 }
0x2fca   :  { %v3233_v45 = vpop.f32.mrb[100].mxu0 }
0x2fcb   :  { %v3239_v39 = vpack.c.bf16 %v3233_v45, %v3233_v45  ;;  %v6176_v44 = vpop.f32.mrb[101].mxu0 }
0x2fcc   :  { %v3236_v43 = vpop.f32.mrb[102].mxu0 }
0x2fcd   :  { %v6177_v11 = vpop.f32.mrb[103].mxu0  ;;  %6215 = vmatmul.mubr.bf16.vlgmr.msra.gmra.mrb[84].mxu1 %v3239_v39 }
0x2fce   :  { %6279 = vmatpush3.bf16.xpose.msra.mxu1 %v7859_v2  ;;  %6294 = vmatprep.mubr.msk.bf16.mxu1 %vm7253_vm0, %v9365_v56 }
0x2fcf   :  { %6280 = vmatprep.subr.bf16.mxu1 %v9365_v56 }
0x2fd6   :  { %6281 = vmatpush3.bf16.xpose.msra.mxu1 %v7865_v4 }
0x2fd7   :  { %6282 = vmatprep.subr.bf16.mxu1 %v9365_v56 }
0x2fde   :  { %6283 = vmatpush3.bf16.xpose.msra.mxu1 %v7871_v6 }
0x2fdf   :  { %6284 = vmatprep.subr.bf16.mxu1 %v9365_v56 }
0x2fe6   :  { %6285 = vmatpush3.bf16.xpose.msra.mxu1 %v7877_v57 }
0x2fe7   :  { %6286 = vmatprep.subr.bf16.mxu1 %v9365_v56 }
0x2fee   :  { %6287 = vmatpush3.bf16.xpose.msra.mxu1 %v7883_v16 }
0x2fef   :  { %6288 = vmatprep.subr.bf16.mxu1 %v9365_v56 }
0x2ff6   :  { %6289 = vmatpush3.bf16.xpose.msra.mxu1 %v7889_v26 }
0x2ff7   :  { %6290 = vmatprep.subr.bf16.mxu1 %v9365_v56 }
0x2ffe   :  { %6291 = vmatpush3.bf16.xpose.msra.mxu1 %v7894_v34 }
0x2fff   :  { %6292 = vmatprep.subr.bf16.mxu1 %v9365_v56 }
0x3006   :  { %6293 = vmatpush3.bf16.xpose.msra.mxu1 %v7964_v58 }
0x3007   :  { %6318 = vmatprep.subr.bf16.mxu1 %v9365_v56 }
0x30a0   :  { %v3314_v47 = vpop.f32.mrb[84].mxu1 }
0x30a1   :  { %6874 = vtanh.f32 %v3314_v47  ;;  %v6216_v29 = vpop.f32.mrb[85].mxu1 }
0x30a2   :  { %v3317_v30 = vpop.f32.mrb[86].mxu1 }
0x30a3   :  { %v6217_v62 = vpop.f32.mrb[87].mxu1 }
0x30ab   :  { %v6875_v41 = vpop.eup %6874 }
0x30ac   :  { %v3321_v46 = vpack.c.bf16 %v6875_v41, %v6875_v41 }
0x30ae   :  { %6235 = vmatmul.mubr.bf16.vlgmr.msra.gmra.mrb[104].mxu0 %v3321_v46 }
0x30af   :  { %6239 = vmatpush3.bf16.msra.mxu0 %v8434_v61  ;;  %6254 = vmatprep.mubr.msk.bf16.mxu0 %vm7253_vm0, %v9365_v56  ;;  %v9376_v61 = vld [vmem:[#allocation27_spill] sm:$0xff] }
0x30b0   :  { %6240 = vmatprep.subr.bf16.mxu0 %v9365_v56 }
0x30b3   :  { %6241 = vmatpush3.bf16.msra.mxu0 %v8440_v10  ;;  %v9377_v10 = vld [vmem:[#allocation26_spill] sm:$0xff] }
0x30b4   :  { %6242 = vmatprep.subr.bf16.mxu0 %v9365_v56 }
0x30b7   :  { %6243 = vmatpush3.bf16.msra.mxu0 %v8444_v54 }
0x30b8   :  { %6244 = vmatprep.subr.bf16.mxu0 %v9365_v56 }
0x30bb   :  { %6245 = vmatpush3.bf16.msra.mxu0 %v8448_v23  ;;  %v9378_v23 = vld [vmem:[#allocation34_spill] sm:$0xff] }
0x30bc   :  { %6246 = vmatprep.subr.bf16.mxu0 %v9365_v56 }
0x30bf   :  { %6247 = vmatpush3.bf16.msra.mxu0 %v8452_v9 }
0x30c0   :  { %6248 = vmatprep.subr.bf16.mxu0 %v9365_v56 }
0x30c3   :  { %6249 = vmatpush3.bf16.msra.mxu0 %v8456_v60 }
0x30c4   :  { %6250 = vmatprep.subr.bf16.mxu0 %v9365_v56 }
0x30c7   :  { %6251 = vmatpush3.bf16.msra.mxu0 %v8460_v5 }
0x30c8   :  { %6252 = vmatprep.subr.bf16.mxu0 %v9365_v56 }
0x30cb   :  { %6253 = vmatpush3.bf16.msra.mxu0 %v8464_v38 }
0x30cc   :  { %6258 = vmatprep.subr.bf16.mxu0 %v9365_v56 }
0x30ce   :  { %6255 = vmatmul.mubr.bf16.vlgmr.msra.gmra.mrb[108].mxu0 %v8713_v63 }
0x30cf   :  { %6259 = vmatpush3.bf16.msra.mxu0 %v7943_v18  ;;  %6274 = vmatprep.mubr.msk.bf16.mxu0 %vm7253_vm0, %v9365_v56 }
0x30d0   :  { %6260 = vmatprep.subr.bf16.mxu0 %v9365_v56 }
0x30d3   :  { %6261 = vmatpush3.bf16.msra.mxu0 %v7941_v14 }
0x30d4   :  { %6262 = vmatprep.subr.bf16.mxu0 %v9365_v56 }
0x30d7   :  { %6263 = vmatpush3.bf16.msra.mxu0 %v7949_v27 }
0x30d8   :  { %6264 = vmatprep.subr.bf16.mxu0 %v9365_v56 }
0x30db   :  { %6265 = vmatpush3.bf16.msra.mxu0 %v7947_v25 }
0x30dc   :  { %6266 = vmatprep.subr.bf16.mxu0 %v9365_v56 }
0x30df   :  { %6267 = vmatpush3.bf16.msra.mxu0 %v7953_v37 }
0x30e0   :  { %6268 = vmatprep.subr.bf16.mxu0 %v9365_v56 }
0x30e3   :  { %6269 = vmatpush3.bf16.msra.mxu0 %v7951_v36 }
0x30e4   :  { %6270 = vmatprep.subr.bf16.mxu0 %v9365_v56 }
0x30e7   :  { %6271 = vmatpush3.bf16.msra.mxu0 %v9376_v61 }
0x30e8   :  { %6272 = vmatprep.subr.bf16.mxu0 %v9365_v56 }
0x30eb   :  { %6273 = vmatpush3.bf16.msra.mxu0 %v9377_v10 }
0x30ec   :  { %6298 = vmatprep.subr.bf16.mxu0 %v9365_v56 }
0x3181   :  { %v3356_v54 = vpop.f32.mrb[104].mxu0 }
0x3182   :  { %v8829_v9 = vadd.f32 %v9378_v23, %v3356_v54  ;;  %v6236_v60 = vpop.f32.mrb[105].mxu0 }
0x3183   :  { %v3359_v5 = vpop.f32.mrb[106].mxu0 }
0x3184   :  { %3362 = vmax.xlane.f32.xlu0 %v8829_v9  ;;  %v6237_v38 = vpop.f32.mrb[107].mxu0 }
0x3211   :  { %v8832_v63 = vpop.xlane.xlu0 %3362 }
0x3212   :  { %vm3375_vm6 = vcmp.ge.f32.partialorder %v8829_v9, %v8832_v63  ;;  %v3364_v33 = vsub.f32 %v8829_v9, %v8832_v63 }
0x3213   :  { %v3376_v15 = vsel %vm3375_vm6, %v7983_v59, 128 }
0x3214   :  { %v3378_v0 = vshra.s32 %v3376_v15, 16  ;;  %v3377_v39 = vand.u32 65535, %v3376_v15 }
0x3216   :  { %v3380_v45 = vcvt.s32.f32 %v3378_v0  ;;  %v3379_v43 = vcvt.s32.f32 %v3377_v39  ;;  %v8935_v0 = vld [vmem:[#allocation13] sm:$0xff]   ;;  %v8945_v39 = vld [vmem:[#allocation13 + $0x10] sm:$0xff]  }
0x3218   :  { %3381 = vmin.xlane.f32.xlu1 %v3380_v45 }
0x32a5   :  { %v3382_v44 = vpop.xlane.xlu1 %3381 }
0x32a6   :  { %vm3383_vm7 = vcmp.eq.f32.partialorder %v3380_v45, %v3382_v44  ;;  %v3388_v47 = vcvt.f32.s32 %v3382_v44  ;;  %v8941_v45 = vld [vmem:[#allocation13 + $0x8] sm:$0xff]   ;;  %v8949_v44 = vld [vmem:[#allocation13 + $0x18] sm:$0xff]  }
0x32a7   :  { %v3384_v11 = vsel %vm3383_vm7, %v3379_v43, inf  ;;  %v8953_v43 = vld [vmem:[#allocation13 + $0x20] sm:$0xff]  }
0x32a8   :  { %3385 = vmin.xlane.f32.xlu0 %v3384_v11  ;;  %v3389_v30 = vshll.u32 %v3388_v47, 16  ;;  %v8957_v11 = vld [vmem:[#allocation13 + $0x28] sm:$0xff]   ;;  %v8961_v47 = vld [vmem:[#allocation13 + $0x30] sm:$0xff]  }
0x3335   :  { %v3386_v29 = vpop.xlane.xlu0 %3385 }
0x3336   :  { %v3387_v62 = vcvt.f32.s32 %v3386_v29  ;;  %v8965_v29 = vld [vmem:[#allocation13 + $0x38] sm:$0xff]  }
0x3338   :  { %v3390_v41 = vadd.s32 %v3389_v30, %v3387_v62 }
0x333a   :  { %vm3391_vm8 = vcmp.eq.s32.totalorder %v3390_v41, %v7983_v59 }
0x333b   :  { %vm4466_vm9 = vmpackc.low %vm3391_vm8, %vm3391_vm8 }
0x333c   :  { %6275 = vmatmul.mubr.msk.bf16.vlgmr.msra.gmra.mrb[108].mxu0 %vm4466_vm9, %v9364_v35 }
0x333d   :  { %6299 = vmatpush3.bf16.msra.mxu0 %v7859_v2  ;;  %6314 = vmatprep.mubr.msk.bf16.mxu0 %vm7253_vm0, %v9365_v56 }
0x333e   :  { %6300 = vmatprep.subr.bf16.mxu0 %v9365_v56 }
0x3341   :  { %6301 = vmatpush3.bf16.msra.mxu0 %v7865_v4 }
0x3342   :  { %6302 = vmatprep.subr.bf16.mxu0 %v9365_v56 }
0x3345   :  { %6303 = vmatpush3.bf16.msra.mxu0 %v7871_v6 }
0x3346   :  { %6304 = vmatprep.subr.bf16.mxu0 %v9365_v56 }
0x3349   :  { %6305 = vmatpush3.bf16.msra.mxu0 %v7877_v57 }
0x334a   :  { %6306 = vmatprep.subr.bf16.mxu0 %v9365_v56 }
0x334d   :  { %6307 = vmatpush3.bf16.msra.mxu0 %v7883_v16 }
0x334e   :  { %6308 = vmatprep.subr.bf16.mxu0 %v9365_v56 }
0x3351   :  { %6309 = vmatpush3.bf16.msra.mxu0 %v7889_v26 }
0x3352   :  { %6310 = vmatprep.subr.bf16.mxu0 %v9365_v56 }
0x3355   :  { %6311 = vmatpush3.bf16.msra.mxu0 %v7894_v34 }
0x3356   :  { %6312 = vmatprep.subr.bf16.mxu0 %v9365_v56 }
0x3359   :  { %6313 = vmatpush3.bf16.msra.mxu0 %v7964_v58 }
0x335a   :  { %6358 = vmatprep.subr.bf16.mxu0 %v9365_v56 }
0x340f   :  { %v3469_v46 = vpop.f32.mrb[108].mxu0 }
0x3410   :  { %6876 = vtanh.f32 %v3469_v46  ;;  %v6276_v54 = vpop.f32.mrb[109].mxu0 }
0x3411   :  { %v3472_v60 = vpop.f32.mrb[110].mxu0 }
0x3412   :  { %v6277_v5 = vpop.f32.mrb[111].mxu0 }
0x341a   :  { %v6877_v38 = vpop.eup %6876 }
0x341b   :  { %v8857_v15 = vpack.c.bf16 %v6877_v38, %v6877_v38 }
0x341d   :  { %6295 = vmatmul.mubr.bf16.vlgmr.msra.gmra.mrb[88].mxu1 %v8857_v15 }
0x341e   :  { %6319 = vmatpush3.bf16.msra.mxu1 %v8519_v13  ;;  %6334 = vmatprep.mubr.msk.bf16.mxu1 %vm7253_vm0, %v9365_v56 }
0x341f   :  { %6320 = vmatprep.subr.bf16.mxu1 %v9365_v56 }
0x3422   :  { %6321 = vmatpush3.bf16.msra.mxu1 %v8525_v20 }
0x3423   :  { %6322 = vmatprep.subr.bf16.mxu1 %v9365_v56 }
0x3426   :  { %6323 = vmatpush3.bf16.msra.mxu1 %v8529_v21 }
0x3427   :  { %6324 = vmatprep.subr.bf16.mxu1 %v9365_v56 }
0x342a   :  { %6325 = vmatpush3.bf16.msra.mxu1 %v8533_v53 }
0x342b   :  { %6326 = vmatprep.subr.bf16.mxu1 %v9365_v56 }
0x342e   :  { %6327 = vmatpush3.bf16.msra.mxu1 %v8537_v32 }
0x342f   :  { %6328 = vmatprep.subr.bf16.mxu1 %v9365_v56 }
0x3432   :  { %6329 = vmatpush3.bf16.msra.mxu1 %v8541_v42 }
0x3433   :  { %6330 = vmatprep.subr.bf16.mxu1 %v9365_v56 }
0x3436   :  { %6331 = vmatpush3.bf16.msra.mxu1 %v8545_v51 }
0x3437   :  { %6332 = vmatprep.subr.bf16.mxu1 %v9365_v56 }
0x343a   :  { %6333 = vmatpush3.bf16.msra.mxu1 %v8549_v12 }
0x343b   :  { %6338 = vmatprep.subr.bf16.mxu1 %v9365_v56 }
0x343d   :  { %6335 = vmatmul.mubr.bf16.vlgmr.msra.gmra.mrb[92].mxu1 %v8857_v15 }
0x343e   :  { %6339 = vmatpush3.bf16.msra.mxu1 %v8554_v3  ;;  %6354 = vmatprep.mubr.msk.bf16.mxu1 %vm7253_vm0, %v9365_v56 }
0x343f   :  { %6340 = vmatprep.subr.bf16.mxu1 %v9365_v56 }
0x3442   :  { %6341 = vmatpush3.bf16.msra.mxu1 %v8560_v31 }
0x3443   :  { %6342 = vmatprep.subr.bf16.mxu1 %v9365_v56 }
0x3446   :  { %6343 = vmatpush3.bf16.msra.mxu1 %v8564_v40 }
0x3447   :  { %6344 = vmatprep.subr.bf16.mxu1 %v9365_v56 }
0x344a   :  { %6345 = vmatpush3.bf16.msra.mxu1 %v8568_v7 }
0x344b   :  { %6346 = vmatprep.subr.bf16.mxu1 %v9365_v56 }
0x344e   :  { %6347 = vmatpush3.bf16.msra.mxu1 %v8572_v19 }
0x344f   :  { %6348 = vmatprep.subr.bf16.mxu1 %v9365_v56 }
0x3452   :  { %6349 = vmatpush3.bf16.msra.mxu1 %v8576_v48 }
0x3453   :  { %6350 = vmatprep.subr.bf16.mxu1 %v9365_v56 }
0x3456   :  { %6351 = vmatpush3.bf16.msra.mxu1 %v8580_v50 }
0x3457   :  { %6352 = vmatprep.subr.bf16.mxu1 %v9365_v56 }
0x345a   :  { %6353 = vmatpush3.bf16.msra.mxu1 %v8584_v17 }
0x345b   :  { %6418 = vmatprep.subr.bf16.mxu1 %v9365_v56 }
0x34f0   :  { %v3511_v13 = vpop.f32.mrb[88].mxu1 }
0x34f1   :  { %v6296_v20 = vpop.f32.mrb[89].mxu1  ;;  %v3517_v21 = vsel %vm8051_vm3, %v3511_v13, -1e+30 }
0x34f2   :  { %3518 = vmax.xlane.f32.xlu1 %v3517_v21  ;;  %v3514_v53 = vpop.f32.mrb[90].mxu1 }
0x34f3   :  { %v6297_v32 = vpop.f32.mrb[91].mxu1 }
0x357f   :  { %v3519_v42 = vpop.xlane.xlu1 %3518 }
0x3580   :  { %v3520_v51 = vsub.f32 %v3517_v21, %v3519_v42 }
0x3582   :  { %v3521_v12 = vmul.f32 1.442695, %v3520_v51 }
0x3584   :  { %6878 = vpow2.f32 %v3521_v12 }
0x358e   :  { %v6879_v3 = vpop.eup %6878 }
0x358f   :  { %3523 = vadd.xlane.f32.xlu0 %v6879_v3 }
0x361c   :  { %v3524_v31 = vpop.xlane.xlu0 %3523 }
0x361d   :  { %6880 = vrcp.f32 %v3524_v31 }
0x3627   :  { %v6881_v40 = vpop.eup %6880 }
0x3628   :  { %v3526_v7 = vmul.f32 %v6881_v40, %v6879_v3 }
0x362a   :  { %v3527_v19 = vpack.c.bf16 %v3526_v7, %v3526_v7 }
0x362c   :  { %6315 = vmatmul.mubr.bf16.vlgmr.msra.gmra.mrb[112].mxu0 %v3527_v19 }
0x362d   :  { %6359 = vmatpush3.bf16.msra.mxu0 %v8590_v49  ;;  %6374 = vmatprep.mubr.msk.bf16.mxu0 %vm7253_vm0, %v9365_v56 }
0x362e   :  { %6360 = vmatprep.subr.bf16.mxu0 %v9365_v56 }
0x3631   :  { %6361 = vmatpush3.bf16.msra.mxu0 %v8596_v52 }
0x3632   :  { %6362 = vmatprep.subr.bf16.mxu0 %v9365_v56 }
0x3635   :  { %6363 = vmatpush3.bf16.msra.mxu0 %v8600_v1 }
0x3636   :  { %6364 = vmatprep.subr.bf16.mxu0 %v9365_v56 }
0x3639   :  { %6365 = vmatpush3.bf16.msra.mxu0 %v8604_v22 }
0x363a   :  { %6366 = vmatprep.subr.bf16.mxu0 %v9365_v56 }
0x363d   :  { %6367 = vmatpush3.bf16.msra.mxu0 %v8608_v24 }
0x363e   :  { %6368 = vmatprep.subr.bf16.mxu0 %v9365_v56 }
0x3641   :  { %6369 = vmatpush3.bf16.msra.mxu0 %v8612_v55 }
0x3642   :  { %6370 = vmatprep.subr.bf16.mxu0 %v9365_v56 }
0x3645   :  { %6371 = vmatpush3.bf16.msra.mxu0 %v8616_v8 }
0x3646   :  { %6372 = vmatprep.subr.bf16.mxu0 %v9365_v56 }
0x3649   :  { %6373 = vmatpush3.bf16.msra.mxu0 %v8620_v28 }
0x364a   :  { %6378 = vmatprep.subr.bf16.mxu0 %v9365_v56 }
0x36ff   :  { %v3562_v48 = vpop.f32.mrb[112].mxu0 }
0x3700   :  { %v3568_v50 = vpack.c.bf16 %v3562_v48, %v3562_v48  ;;  %v6316_v17 = vpop.f32.mrb[113].mxu0 }
0x3701   :  { %v3565_v49 = vpop.f32.mrb[114].mxu0  ;;  %v9026_v17 = vld [vmem:[#allocation16 + $0x8] sm:$0xff]  }
0x3702   :  { %v6317_v52 = vpop.f32.mrb[115].mxu0  ;;  %6355 = vmatmul.mubr.bf16.vlgmr.msra.gmra.mrb[92].mxu1 %v3568_v50  ;;  %v9020_v50 = vld [vmem:[#allocation16] sm:$0xff]   ;;  %v9030_v49 = vld [vmem:[#allocation16 + $0x10] sm:$0xff]  }
0x3703   :  { %6419 = vmatpush3.bf16.xpose.msra.mxu1 %v7859_v2  ;;  %6434 = vmatprep.mubr.msk.bf16.mxu1 %vm7253_vm0, %v9365_v56  ;;  %v9034_v52 = vld [vmem:[#allocation16 + $0x18] sm:$0xff]  }
0x3704   :  { %6420 = vmatprep.subr.bf16.mxu1 %v9365_v56 }
0x370b   :  { %6421 = vmatpush3.bf16.xpose.msra.mxu1 %v7865_v4 }
0x370c   :  { %6422 = vmatprep.subr.bf16.mxu1 %v9365_v56 }
0x3713   :  { %6423 = vmatpush3.bf16.xpose.msra.mxu1 %v7871_v6 }
0x3714   :  { %6424 = vmatprep.subr.bf16.mxu1 %v9365_v56 }
0x371b   :  { %6425 = vmatpush3.bf16.xpose.msra.mxu1 %v7877_v57 }
0x371c   :  { %6426 = vmatprep.subr.bf16.mxu1 %v9365_v56 }
0x3723   :  { %6427 = vmatpush3.bf16.xpose.msra.mxu1 %v7883_v16 }
0x3724   :  { %6428 = vmatprep.subr.bf16.mxu1 %v9365_v56 }
0x372b   :  { %6429 = vmatpush3.bf16.xpose.msra.mxu1 %v7889_v26 }
0x372c   :  { %6430 = vmatprep.subr.bf16.mxu1 %v9365_v56 }
0x3733   :  { %6431 = vmatpush3.bf16.xpose.msra.mxu1 %v7894_v34 }
0x3734   :  { %6432 = vmatprep.subr.bf16.mxu1 %v9365_v56 }
0x373b   :  { %6433 = vmatpush3.bf16.xpose.msra.mxu1 %v7964_v58 }
0x373c   :  { %6458 = vmatprep.subr.bf16.mxu1 %v9365_v56 }
0x37d5   :  { %v3643_v1 = vpop.f32.mrb[92].mxu1 }
0x37d6   :  { %6882 = vtanh.f32 %v3643_v1  ;;  %v6356_v22 = vpop.f32.mrb[93].mxu1  ;;  %v9038_v1 = vld [vmem:[#allocation16 + $0x20] sm:$0xff]  }
0x37d7   :  { %v3646_v24 = vpop.f32.mrb[94].mxu1  ;;  %v9042_v22 = vld [vmem:[#allocation16 + $0x28] sm:$0xff]  }
0x37d8   :  { %v6357_v55 = vpop.f32.mrb[95].mxu1  ;;  %v9046_v24 = vld [vmem:[#allocation16 + $0x30] sm:$0xff]  }
0x37d9   :  { %v9050_v55 = vld [vmem:[#allocation16 + $0x38] sm:$0xff]  }
0x37e0   :  { %v6883_v8 = vpop.eup %6882 }
0x37e1   :  { %v3650_v28 = vpack.c.bf16 %v6883_v8, %v6883_v8  ;;  %v9055_v8 = vld [vmem:[#allocation15] sm:$0xff]  }
0x37e3   :  { %6375 = vmatmul.mubr.bf16.vlgmr.msra.gmra.mrb[116].mxu0 %v3650_v28  ;;  %v9061_v28 = vld [vmem:[#allocation15 + $0x8] sm:$0xff]  }
0x37e4   :  { %6379 = vmatpush3.bf16.msra.mxu0 %v8935_v0  ;;  %6394 = vmatprep.mubr.msk.bf16.mxu0 %vm7253_vm0, %v9365_v56 }
0x37e5   :  { %6380 = vmatprep.subr.bf16.mxu0 %v9365_v56 }
0x37e8   :  { %6381 = vmatpush3.bf16.msra.mxu0 %v8941_v45 }
0x37e9   :  { %6382 = vmatprep.subr.bf16.mxu0 %v9365_v56 }
0x37ec   :  { %6383 = vmatpush3.bf16.msra.mxu0 %v8945_v39 }
0x37ed   :  { %6384 = vmatprep.subr.bf16.mxu0 %v9365_v56 }
0x37f0   :  { %6385 = vmatpush3.bf16.msra.mxu0 %v8949_v44 }
0x37f1   :  { %6386 = vmatprep.subr.bf16.mxu0 %v9365_v56 }
0x37f4   :  { %6387 = vmatpush3.bf16.msra.mxu0 %v8953_v43 }
0x37f5   :  { %6388 = vmatprep.subr.bf16.mxu0 %v9365_v56 }
0x37f8   :  { %6389 = vmatpush3.bf16.msra.mxu0 %v8957_v11 }
0x37f9   :  { %6390 = vmatprep.subr.bf16.mxu0 %v9365_v56 }
0x37fc   :  { %6391 = vmatpush3.bf16.msra.mxu0 %v8961_v47 }
0x37fd   :  { %6392 = vmatprep.subr.bf16.mxu0 %v9365_v56 }
0x3800   :  { %6393 = vmatpush3.bf16.msra.mxu0 %v8965_v29 }
0x3801   :  { %6398 = vmatprep.subr.bf16.mxu0 %v9365_v56 }
0x3803   :  { %6395 = vmatmul.mubr.bf16.vlgmr.msra.gmra.mrb[120].mxu0 %v8857_v15 }
0x3804   :  { %6399 = vmatpush3.bf16.msra.mxu0 %v7943_v18  ;;  %6414 = vmatprep.mubr.msk.bf16.mxu0 %vm7253_vm0, %v9365_v56 }
0x3805   :  { %6400 = vmatprep.subr.bf16.mxu0 %v9365_v56 }
0x3808   :  { %6401 = vmatpush3.bf16.msra.mxu0 %v7941_v14 }
0x3809   :  { %6402 = vmatprep.subr.bf16.mxu0 %v9365_v56 }
0x380c   :  { %6403 = vmatpush3.bf16.msra.mxu0 %v7949_v27 }
0x380d   :  { %6404 = vmatprep.subr.bf16.mxu0 %v9365_v56 }
0x3810   :  { %6405 = vmatpush3.bf16.msra.mxu0 %v7947_v25 }
0x3811   :  { %6406 = vmatprep.subr.bf16.mxu0 %v9365_v56 }
0x3814   :  { %6407 = vmatpush3.bf16.msra.mxu0 %v7953_v37 }
0x3815   :  { %6408 = vmatprep.subr.bf16.mxu0 %v9365_v56 }
0x3818   :  { %6409 = vmatpush3.bf16.msra.mxu0 %v7951_v36 }
0x3819   :  { %6410 = vmatprep.subr.bf16.mxu0 %v9365_v56 }
0x381c   :  { %6411 = vmatpush3.bf16.msra.mxu0 %v9376_v61 }
0x381d   :  { %6412 = vmatprep.subr.bf16.mxu0 %v9365_v56 }
0x3820   :  { %6413 = vmatpush3.bf16.msra.mxu0 %v9377_v10 }
0x3821   :  { %6438 = vmatprep.subr.bf16.mxu0 %v9365_v56 }
0x38b6   :  { %v3685_v30 = vpop.f32.mrb[116].mxu0 }
0x38b7   :  { %v8989_v62 = vadd.f32 %v9378_v23, %v3685_v30  ;;  %v6376_v41 = vpop.f32.mrb[117].mxu0  ;;  %v9065_v30 = vld [vmem:[#allocation15 + $0x10] sm:$0xff]  }
0x38b8   :  { %v3688_v46 = vpop.f32.mrb[118].mxu0  ;;  %v9069_v41 = vld [vmem:[#allocation15 + $0x18] sm:$0xff]  }
0x38b9   :  { %3691 = vmax.xlane.f32.xlu1 %v8989_v62  ;;  %v6377_v54 = vpop.f32.mrb[119].mxu0  ;;  %v9073_v46 = vld [vmem:[#allocation15 + $0x20] sm:$0xff]  }
0x38ba   :  { %v9077_v54 = vld [vmem:[#allocation15 + $0x28] sm:$0xff]  }
0x3946   :  { %v8992_v60 = vpop.xlane.xlu1 %3691 }
0x3947   :  { %vm3704_vm10 = vcmp.ge.f32.partialorder %v8989_v62, %v8992_v60 }
0x3948   :  { %v3705_v5 = vsel %vm3704_vm10, %v7983_v59, 128 }
0x3949   :  { %v3707_v38 = vshra.s32 %v3705_v5, 16  ;;  %v3706_v13 = vand.u32 65535, %v3705_v5  ;;  %v9081_v5 = vld [vmem:[#allocation15 + $0x30] sm:$0xff]  }
0x394b   :  { %v3709_v15 = vcvt.s32.f32 %v3707_v38  ;;  %v3708_v21 = vcvt.s32.f32 %v3706_v13  ;;  %v9085_v38 = vld [vmem:[#allocation15 + $0x38] sm:$0xff]  }
0x394d   :  { %3710 = vmin.xlane.f32.xlu0 %v3709_v15 }
0x39da   :  { %v3711_v20 = vpop.xlane.xlu0 %3710 }
0x39db   :  { %vm3712_vm11 = vcmp.eq.f32.partialorder %v3709_v15, %v3711_v20  ;;  %v3717_v53 = vcvt.f32.s32 %v3711_v20 }
0x39dc   :  { %v3713_v23 = vsel %vm3712_vm11, %v3708_v21, inf }
0x39dd   :  { %3714 = vmin.xlane.f32.xlu1 %v3713_v23  ;;  %v3718_v42 = vshll.u32 %v3717_v53, 16 }
0x3a6a   :  { %v3715_v32 = vpop.xlane.xlu1 %3714 }
0x3a6b   :  { %v3716_v51 = vcvt.f32.s32 %v3715_v32 }
0x3a6d   :  { %v3719_v12 = vadd.s32 %v3718_v42, %v3716_v51 }
0x3a6f   :  { %vm3720_vm12 = vcmp.eq.s32.totalorder %v3719_v12, %v7983_v59 }
0x3a70   :  { %vm4469_vm13 = vmpackc.low %vm3720_vm12, %vm3720_vm12 }
0x3a71   :  { %6415 = vmatmul.mubr.msk.bf16.vlgmr.msra.gmra.mrb[120].mxu0 %vm4469_vm13, %v9364_v35 }
0x3a72   :  { %6439 = vmatpush3.bf16.msra.mxu0 %v7859_v2  ;;  %6454 = vmatprep.mubr.msk.bf16.mxu0 %vm7253_vm0, %v9365_v56 }
0x3a73   :  { %6440 = vmatprep.subr.bf16.mxu0 %v9365_v56 }
0x3a76   :  { %6441 = vmatpush3.bf16.msra.mxu0 %v7865_v4 }
0x3a77   :  { %6442 = vmatprep.subr.bf16.mxu0 %v9365_v56 }
0x3a7a   :  { %6443 = vmatpush3.bf16.msra.mxu0 %v7871_v6 }
0x3a7b   :  { %6444 = vmatprep.subr.bf16.mxu0 %v9365_v56 }
0x3a7e   :  { %6445 = vmatpush3.bf16.msra.mxu0 %v7877_v57 }
0x3a7f   :  { %6446 = vmatprep.subr.bf16.mxu0 %v9365_v56 }
0x3a82   :  { %6447 = vmatpush3.bf16.msra.mxu0 %v7883_v16 }
0x3a83   :  { %6448 = vmatprep.subr.bf16.mxu0 %v9365_v56 }
0x3a86   :  { %6449 = vmatpush3.bf16.msra.mxu0 %v7889_v26 }
0x3a87   :  { %6450 = vmatprep.subr.bf16.mxu0 %v9365_v56 }
0x3a8a   :  { %6451 = vmatpush3.bf16.msra.mxu0 %v7894_v34 }
0x3a8b   :  { %6452 = vmatprep.subr.bf16.mxu0 %v9365_v56 }
0x3a8e   :  { %6453 = vmatpush3.bf16.msra.mxu0 %v7964_v58 }
0x3a8f   :  { %6498 = vmatprep.subr.bf16.mxu0 %v9365_v56 }
0x3b44   :  { %v3798_v3 = vpop.f32.mrb[120].mxu0 }
0x3b45   :  { %6884 = vtanh.f32 %v3798_v3  ;;  %v6416_v31 = vpop.f32.mrb[121].mxu0 }
0x3b46   :  { %v3801_v40 = vpop.f32.mrb[122].mxu0 }
0x3b47   :  { %v6417_v7 = vpop.f32.mrb[123].mxu0 }
0x3b48   :  { %v9091_v7 = vld [vmem:[#allocation18] sm:$0xff]  }
0x3b4f   :  { %v6885_v19 = vpop.eup %6884 }
0x3b50   :  { %v9017_v48 = vpack.c.bf16 %v6885_v19, %v6885_v19  ;;  %v9097_v19 = vld [vmem:[#allocation18 + $0x8] sm:$0xff]  }
0x3b52   :  { %6435 = vmatmul.mubr.bf16.vlgmr.msra.gmra.mrb[96].mxu1 %v9017_v48 }
0x3b53   :  { %6459 = vmatpush3.bf16.msra.mxu1 %v9020_v50  ;;  %6474 = vmatprep.mubr.msk.bf16.mxu1 %vm7253_vm0, %v9365_v56 }
0x3b54   :  { %6460 = vmatprep.subr.bf16.mxu1 %v9365_v56 }
0x3b57   :  { %6461 = vmatpush3.bf16.msra.mxu1 %v9026_v17 }
0x3b58   :  { %6462 = vmatprep.subr.bf16.mxu1 %v9365_v56 }
0x3b5b   :  { %6463 = vmatpush3.bf16.msra.mxu1 %v9030_v49 }
0x3b5c   :  { %6464 = vmatprep.subr.bf16.mxu1 %v9365_v56 }
0x3b5f   :  { %6465 = vmatpush3.bf16.msra.mxu1 %v9034_v52 }
0x3b60   :  { %6466 = vmatprep.subr.bf16.mxu1 %v9365_v56 }
0x3b63   :  { %6467 = vmatpush3.bf16.msra.mxu1 %v9038_v1 }
0x3b64   :  { %6468 = vmatprep.subr.bf16.mxu1 %v9365_v56 }
0x3b67   :  { %6469 = vmatpush3.bf16.msra.mxu1 %v9042_v22 }
0x3b68   :  { %6470 = vmatprep.subr.bf16.mxu1 %v9365_v56 }
0x3b6b   :  { %6471 = vmatpush3.bf16.msra.mxu1 %v9046_v24 }
0x3b6c   :  { %6472 = vmatprep.subr.bf16.mxu1 %v9365_v56 }
0x3b6f   :  { %6473 = vmatpush3.bf16.msra.mxu1 %v9050_v55 }
0x3b70   :  { %6478 = vmatprep.subr.bf16.mxu1 %v9365_v56 }
0x3b72   :  { %6475 = vmatmul.mubr.bf16.vlgmr.msra.gmra.mrb[100].mxu1 %v9017_v48 }
0x3b73   :  { %6479 = vmatpush3.bf16.msra.mxu1 %v9055_v8  ;;  %6494 = vmatprep.mubr.msk.bf16.mxu1 %vm7253_vm0, %v9365_v56 }
0x3b74   :  { %6480 = vmatprep.subr.bf16.mxu1 %v9365_v56 }
0x3b77   :  { %6481 = vmatpush3.bf16.msra.mxu1 %v9061_v28 }
0x3b78   :  { %6482 = vmatprep.subr.bf16.mxu1 %v9365_v56 }
0x3b7b   :  { %6483 = vmatpush3.bf16.msra.mxu1 %v9065_v30 }
0x3b7c   :  { %6484 = vmatprep.subr.bf16.mxu1 %v9365_v56 }
0x3b7f   :  { %6485 = vmatpush3.bf16.msra.mxu1 %v9069_v41 }
0x3b80   :  { %6486 = vmatprep.subr.bf16.mxu1 %v9365_v56 }
0x3b83   :  { %6487 = vmatpush3.bf16.msra.mxu1 %v9073_v46 }
0x3b84   :  { %6488 = vmatprep.subr.bf16.mxu1 %v9365_v56 }
0x3b87   :  { %6489 = vmatpush3.bf16.msra.mxu1 %v9077_v54 }
0x3b88   :  { %6490 = vmatprep.subr.bf16.mxu1 %v9365_v56 }
0x3b8b   :  { %6491 = vmatpush3.bf16.msra.mxu1 %v9081_v5 }
0x3b8c   :  { %6492 = vmatprep.subr.bf16.mxu1 %v9365_v56 }
0x3b8f   :  { %6493 = vmatpush3.bf16.msra.mxu1 %v9085_v38 }
0x3b90   :  { %6558 = vmatprep.subr.bf16.mxu1 %v9365_v56 }
0x3c25   :  { %v3840_v15 = vpop.f32.mrb[96].mxu1 }
0x3c26   :  { %v6436_v13 = vpop.f32.mrb[97].mxu1  ;;  %v3846_v20 = vsel %vm8051_vm3, %v3840_v15, -1e+30  ;;  %v9101_v15 = vld [vmem:[#allocation18 + $0x10] sm:$0xff]  }
0x3c27   :  { %3847 = vmax.xlane.f32.xlu0 %v3846_v20  ;;  %v3843_v21 = vpop.f32.mrb[98].mxu1  ;;  %v9105_v13 = vld [vmem:[#allocation18 + $0x18] sm:$0xff]  }
0x3c28   :  { %v6437_v23 = vpop.f32.mrb[99].mxu1  ;;  %v9113_v21 = vld [vmem:[#allocation18 + $0x28] sm:$0xff]  }
0x3c29   :  { %v9117_v23 = vld [vmem:[#allocation18 + $0x30] sm:$0xff]  }
0x3cb4   :  { %v3848_v53 = vpop.xlane.xlu0 %3847 }
0x3cb5   :  { %v3849_v32 = vsub.f32 %v3846_v20, %v3848_v53  ;;  %v9109_v20 = vld [vmem:[#allocation18 + $0x20] sm:$0xff]   ;;  %v9121_v53 = vld [vmem:[#allocation18 + $0x38] sm:$0xff]  }
0x3cb7   :  { %v3850_v42 = vmul.f32 1.442695, %v3849_v32 }
0x3cb9   :  { %6886 = vpow2.f32 %v3850_v42 }
0x3cc3   :  { %v6887_v51 = vpop.eup %6886 }
0x3cc4   :  { %3852 = vadd.xlane.f32.xlu1 %v6887_v51 }
0x3d51   :  { %v3853_v12 = vpop.xlane.xlu1 %3852 }
0x3d52   :  { %6888 = vrcp.f32 %v3853_v12 }
0x3d5c   :  { %v6889_v3 = vpop.eup %6888 }
0x3d5d   :  { %v3855_v31 = vmul.f32 %v6889_v3, %v6887_v51 }
0x3d5f   :  { %v3856_v40 = vpack.c.bf16 %v3855_v31, %v3855_v31 }
0x3d61   :  { %6455 = vmatmul.mubr.bf16.vlgmr.msra.gmra.mrb[124].mxu0 %v3856_v40 }
0x3d62   :  { %6499 = vmatpush3.bf16.msra.mxu0 %v9091_v7  ;;  %6514 = vmatprep.mubr.msk.bf16.mxu0 %vm7253_vm0, %v9365_v56 }
0x3d63   :  { %6500 = vmatprep.subr.bf16.mxu0 %v9365_v56 }
0x3d66   :  { %6501 = vmatpush3.bf16.msra.mxu0 %v9097_v19 }
0x3d67   :  { %6502 = vmatprep.subr.bf16.mxu0 %v9365_v56 }
0x3d6a   :  { %6503 = vmatpush3.bf16.msra.mxu0 %v9101_v15 }
0x3d6b   :  { %6504 = vmatprep.subr.bf16.mxu0 %v9365_v56 }
0x3d6e   :  { %6505 = vmatpush3.bf16.msra.mxu0 %v9105_v13 }
0x3d6f   :  { %6506 = vmatprep.subr.bf16.mxu0 %v9365_v56 }
0x3d72   :  { %6507 = vmatpush3.bf16.msra.mxu0 %v9109_v20 }
0x3d73   :  { %6508 = vmatprep.subr.bf16.mxu0 %v9365_v56 }
0x3d76   :  { %6509 = vmatpush3.bf16.msra.mxu0 %v9113_v21 }
0x3d77   :  { %6510 = vmatprep.subr.bf16.mxu0 %v9365_v56 }
0x3d7a   :  { %6511 = vmatpush3.bf16.msra.mxu0 %v9117_v23 }
0x3d7b   :  { %6512 = vmatprep.subr.bf16.mxu0 %v9365_v56 }
0x3d7e   :  { %6513 = vmatpush3.bf16.msra.mxu0 %v9121_v53 }
0x3d7f   :  { %6518 = vmatprep.subr.bf16.mxu0 %v9365_v56 }
0x3e34   :  { %v3891_v32 = vpop.f32.mrb[124].mxu0 }
0x3e35   :  { %v3897_v42 = vpack.c.bf16 %v3891_v32, %v3891_v32  ;;  %v6456_v51 = vpop.f32.mrb[125].mxu0 }
0x3e36   :  { %v3894_v12 = vpop.f32.mrb[126].mxu0 }
0x3e37   :  { %v6457_v3 = vpop.f32.mrb[127].mxu0  ;;  %6495 = vmatmul.mubr.bf16.vlgmr.msra.gmra.mrb[100].mxu1 %v3897_v42 }
0x3e38   :  { %6559 = vmatpush3.bf16.xpose.msra.mxu1 %v7859_v2  ;;  %6574 = vmatprep.mubr.msk.bf16.mxu1 %vm7253_vm0, %v9365_v56 }
0x3e39   :  { %6560 = vmatprep.subr.bf16.mxu1 %v9365_v56 }
0x3e40   :  { %6561 = vmatpush3.bf16.xpose.msra.mxu1 %v7865_v4 }
0x3e41   :  { %6562 = vmatprep.subr.bf16.mxu1 %v9365_v56 }
0x3e48   :  { %6563 = vmatpush3.bf16.xpose.msra.mxu1 %v7871_v6 }
0x3e49   :  { %6564 = vmatprep.subr.bf16.mxu1 %v9365_v56 }
0x3e50   :  { %6565 = vmatpush3.bf16.xpose.msra.mxu1 %v7877_v57 }
0x3e51   :  { %6566 = vmatprep.subr.bf16.mxu1 %v9365_v56 }
0x3e58   :  { %6567 = vmatpush3.bf16.xpose.msra.mxu1 %v7883_v16 }
0x3e59   :  { %6568 = vmatprep.subr.bf16.mxu1 %v9365_v56 }
0x3e60   :  { %6569 = vmatpush3.bf16.xpose.msra.mxu1 %v7889_v26 }
0x3e61   :  { %6570 = vmatprep.subr.bf16.mxu1 %v9365_v56 }
0x3e68   :  { %6571 = vmatpush3.bf16.xpose.msra.mxu1 %v7894_v34 }
0x3e69   :  { %6572 = vmatprep.subr.bf16.mxu1 %v9365_v56 }
0x3e70   :  { %6573 = vmatpush3.bf16.xpose.msra.mxu1 %v7964_v58 }
0x3e71   :  { %6598 = vmatprep.subr.bf16.mxu1 %v9365_v56 }
0x3f0a   :  { %v3972_v31 = vpop.f32.mrb[100].mxu1 }
0x3f0b   :  { %6890 = vtanh.f32 %v3972_v31  ;;  %v6496_v40 = vpop.f32.mrb[101].mxu1 }
0x3f0c   :  { %v3975_v32 = vpop.f32.mrb[102].mxu1 }
0x3f0d   :  { %v6497_v42 = vpop.f32.mrb[103].mxu1 }
0x3f15   :  { %v6891_v51 = vpop.eup %6890 }
0x3f16   :  { %v3979_v12 = vpack.c.bf16 %v6891_v51, %v6891_v51 }
0x3f18   :  { %6515 = vmatmul.mubr.bf16.vlgmr.msra.gmra.mrb[128].mxu0 %v3979_v12 }
0x3f19   :  { %6519 = vmatpush3.bf16.msra.mxu0 %v8935_v0  ;;  %6534 = vmatprep.mubr.msk.bf16.mxu0 %vm7253_vm0, %v9365_v56 }
0x3f1a   :  { %6520 = vmatprep.subr.bf16.mxu0 %v9365_v56 }
0x3f1d   :  { %6521 = vmatpush3.bf16.msra.mxu0 %v8941_v45 }
0x3f1e   :  { %6522 = vmatprep.subr.bf16.mxu0 %v9365_v56 }
0x3f21   :  { %6523 = vmatpush3.bf16.msra.mxu0 %v8945_v39 }
0x3f22   :  { %6524 = vmatprep.subr.bf16.mxu0 %v9365_v56 }
0x3f25   :  { %6525 = vmatpush3.bf16.msra.mxu0 %v8949_v44 }
0x3f26   :  { %6526 = vmatprep.subr.bf16.mxu0 %v9365_v56 }
0x3f29   :  { %6527 = vmatpush3.bf16.msra.mxu0 %v8953_v43 }
0x3f2a   :  { %6528 = vmatprep.subr.bf16.mxu0 %v9365_v56 }
0x3f2d   :  { %6529 = vmatpush3.bf16.msra.mxu0 %v8957_v11 }
0x3f2e   :  { %6530 = vmatprep.subr.bf16.mxu0 %v9365_v56 }
0x3f31   :  { %6531 = vmatpush3.bf16.msra.mxu0 %v8961_v47 }
0x3f32   :  { %6532 = vmatprep.subr.bf16.mxu0 %v9365_v56 }
0x3f35   :  { %6533 = vmatpush3.bf16.msra.mxu0 %v8965_v29 }
0x3f36   :  { %6538 = vmatprep.subr.bf16.mxu0 %v9365_v56 }
0x3f38   :  { %6535 = vmatmul.mubr.bf16.vlgmr.msra.gmra.mrb[132].mxu0 %v9017_v48 }
0x3f39   :  { %6539 = vmatpush3.bf16.msra.mxu0 %v7943_v18  ;;  %6554 = vmatprep.mubr.msk.bf16.mxu0 %vm7253_vm0, %v9365_v56  ;;  %v9183_v18 = vld [vmem:[%s9323_s11] ss:$0 sm:$0xff]  ;;  %s7256_s11 = smov [#allocation19]  }
0x3f3a   :  { %6540 = vmatprep.subr.bf16.mxu0 %v9365_v56  ;;  %s4367_s25 = sshll.u32 %s7256_s11, 4  ;;  %s4368_s25 = int_to_ptr.vmem [resolvable:$true] %s4367_s25 }
0x3f3b   :  { %s7205_s27 = scalar_lea.vmem %s4368_s25, 1024  ;;  %p7210_p3 = scmp.lt.s32.totalorder %s4368_s25, %s4368_s25 }
0x3f3c   :  { %p7206_p2 = scmp.ne.s32.totalorder %s4368_s25, %s7205_s27  ;;  %p7211_p4 = scmp.lt.s32.totalorder %s7205_s27, %s7205_s27 }
0x3f3d   :  { %6541 = vmatpush3.bf16.msra.mxu0 %v7941_v14 }
0x3f3e   :  { %6542 = vmatprep.subr.bf16.mxu0 %v9365_v56  ;;  %p7212_p5 = por %p7211_p4, %p7210_p3 }
0x3f40   :  { %p7213_p6 = pnand %p7212_p5, %p7206_p2 }
0x3f41   :  { %6543 = vmatpush3.bf16.msra.mxu0 %v7949_v27 }
0x3f42   :  { %6544 = vmatprep.subr.bf16.mxu0 %v9365_v56 }
0x3f45   :  { %6545 = vmatpush3.bf16.msra.mxu0 %v7947_v25 }
0x3f46   :  { %6546 = vmatprep.subr.bf16.mxu0 %v9365_v56 }
0x3f49   :  { %6547 = vmatpush3.bf16.msra.mxu0 %v7953_v37 }
0x3f4a   :  { %6548 = vmatprep.subr.bf16.mxu0 %v9365_v56 }
0x3f4d   :  { %6549 = vmatpush3.bf16.msra.mxu0 %v7951_v36 }
0x3f4e   :  { %6550 = vmatprep.subr.bf16.mxu0 %v9365_v56 }
0x3f51   :  { %6551 = vmatpush3.bf16.msra.mxu0 %v9376_v61 }
0x3f52   :  { %6552 = vmatprep.subr.bf16.mxu0 %v9365_v56 }
0x3f55   :  { %6553 = vmatpush3.bf16.msra.mxu0 %v9377_v10 }
0x3f56   :  { %6578 = vmatprep.subr.bf16.mxu0 %v9365_v56 }
0x3feb   :  { %v4014_v14 = vpop.f32.mrb[128].mxu0 }
0x3fec   :  { %v9186_v25 = vadd.f32 %v9183_v18, %v4014_v14  ;;  %v6516_v27 = vpop.f32.mrb[129].mxu0 }
0x3fed   :  { %v4017_v36 = vpop.f32.mrb[130].mxu0 }
0x3fee   :  { %4020 = vmax.xlane.f32.xlu0 %v9186_v25  ;;  %v6517_v37 = vpop.f32.mrb[131].mxu0 }
0x407b   :  { %v9189_v61 = vpop.xlane.xlu0 %4020 }
0x407c   :  { %vm4033_vm14 = vcmp.ge.f32.partialorder %v9186_v25, %v9189_v61 }
0x407d   :  { %v4034_v10 = vsel %vm4033_vm14, %v7983_v59, 128 }
0x407e   :  { %v4036_v0 = vshra.s32 %v4034_v10, 16  ;;  %v4035_v39 = vand.u32 65535, %v4034_v10 }
0x4080   :  { %v4038_v45 = vcvt.s32.f32 %v4036_v0  ;;  %v4037_v43 = vcvt.s32.f32 %v4035_v39 }
0x4082   :  { %4039 = vmin.xlane.f32.xlu1 %v4038_v45 }
0x410f   :  { %v4040_v44 = vpop.xlane.xlu1 %4039 }
0x4110   :  { %vm4041_vm15 = vcmp.eq.f32.partialorder %v4038_v45, %v4040_v44  ;;  %v4046_v47 = vcvt.f32.s32 %v4040_v44 }
0x4111   :  { %v4042_v11 = vsel %vm4041_vm15, %v4037_v43, inf }
0x4112   :  { %4043 = vmin.xlane.f32.xlu0 %v4042_v11  ;;  %v4047_v48 = vshll.u32 %v4046_v47, 16 }
0x419f   :  { %v4044_v29 = vpop.xlane.xlu0 %4043 }
0x41a0   :  { %v4045_v3 = vcvt.f32.s32 %v4044_v29 }
0x41a2   :  { %v4048_v31 = vadd.s32 %v4047_v48, %v4045_v3 }
0x41a4   :  { %vm4049_vm1 = vcmp.eq.s32.totalorder %v4048_v31, %v7983_v59 }
0x41a5   :  { %vm4472_vm2 = vmpackc.low %vm4049_vm1, %vm4049_vm1 }
0x41a6   :  { %6555 = vmatmul.mubr.msk.bf16.vlgmr.msra.gmra.mrb[132].mxu0 %vm4472_vm2, %v9364_v35 }
0x41a7   :  { %6579 = vmatpush3.bf16.msra.mxu0 %v7859_v2  ;;  %6594 = vmatprep.mubr.msk.bf16.mxu0 %vm7253_vm0, %v9365_v56 }
0x41a8   :  { %6580 = vmatprep.subr.bf16.mxu0 %v9365_v56 }
0x41ab   :  { %6581 = vmatpush3.bf16.msra.mxu0 %v7865_v4 }
0x41ac   :  { %6582 = vmatprep.subr.bf16.mxu0 %v9365_v56 }
0x41af   :  { %6583 = vmatpush3.bf16.msra.mxu0 %v7871_v6 }
0x41b0   :  { %6584 = vmatprep.subr.bf16.mxu0 %v9365_v56 }
0x41b3   :  { %6585 = vmatpush3.bf16.msra.mxu0 %v7877_v57 }
0x41b4   :  { %6586 = vmatprep.subr.bf16.mxu0 %v9365_v56 }
0x41b7   :  { %6587 = vmatpush3.bf16.msra.mxu0 %v7883_v16 }
0x41b8   :  { %6588 = vmatprep.subr.bf16.mxu0 %v9365_v56 }
0x41bb   :  { %6589 = vmatpush3.bf16.msra.mxu0 %v7889_v26 }
0x41bc   :  { %6590 = vmatprep.subr.bf16.mxu0 %v9365_v56 }
0x41bf   :  { %6591 = vmatpush3.bf16.msra.mxu0 %v7894_v34 }
0x41c0   :  { %6592 = vmatprep.subr.bf16.mxu0 %v9365_v56 }
0x41c3   :  { %6593 = vmatpush3.bf16.msra.mxu0 %v7964_v58 }
0x41c4   :  { %6638 = vmatprep.subr.bf16.mxu0 %v9365_v56 }
0x4279   :  { %v4127_v2 = vpop.f32.mrb[132].mxu0 }
0x427a   :  { %6892 = vtanh.f32 %v4127_v2  ;;  %v6556_v4 = vpop.f32.mrb[133].mxu0 }
0x427b   :  { %v4130_v6 = vpop.f32.mrb[134].mxu0 }
0x427c   :  { %v6557_v57 = vpop.f32.mrb[135].mxu0 }
0x4284   :  { %v6893_v16 = vpop.eup %6892 }
0x4285   :  { %v4134_v59 = vpack.c.bf16 %v6893_v16, %v6893_v16 }
0x4287   :  { %6575 = vmatmul.mubr.bf16.vlgmr.msra.gmra.mrb[104].mxu1 %v4134_v59 }
0x4288   :  { %6599 = vmatpush3.bf16.msra.mxu1 %v9020_v50  ;;  %6614 = vmatprep.mubr.msk.bf16.mxu1 %vm7253_vm0, %v9365_v56 }
0x4289   :  { %6600 = vmatprep.subr.bf16.mxu1 %v9365_v56 }
0x428c   :  { %6601 = vmatpush3.bf16.msra.mxu1 %v9026_v17 }
0x428d   :  { %6602 = vmatprep.subr.bf16.mxu1 %v9365_v56 }
0x4290   :  { %6603 = vmatpush3.bf16.msra.mxu1 %v9030_v49  ;;  %v9379_v49 = vld [vmem:[#allocation32_spill] sm:$0xff] }
0x4291   :  { %6604 = vmatprep.subr.bf16.mxu1 %v9365_v56 }
0x4294   :  { %6605 = vmatpush3.bf16.msra.mxu1 %v9034_v52  ;;  %v9380_v52 = vld [vmem:[#allocation31_spill] sm:$0xff] }
0x4295   :  { %6606 = vmatprep.subr.bf16.mxu1 %v9365_v56 }
0x4298   :  { %6607 = vmatpush3.bf16.msra.mxu1 %v9038_v1  ;;  %v2049_v1 = vsub.f32 %v9380_v52, %v9379_v49 }
0x4299   :  { %6608 = vmatprep.subr.bf16.mxu1 %v9365_v56 }
0x429c   :  { %6609 = vmatpush3.bf16.msra.mxu1 %v9042_v22 }
0x429d   :  { %6610 = vmatprep.subr.bf16.mxu1 %v9365_v56 }
0x42a0   :  { %6611 = vmatpush3.bf16.msra.mxu1 %v9046_v24 }
0x42a1   :  { %6612 = vmatprep.subr.bf16.mxu1 %v9365_v56 }
0x42a4   :  { %6613 = vmatpush3.bf16.msra.mxu1 %v9050_v55  ;;  %v2050_v55 = vmul.f32 1.442695, %v2049_v1 }
0x42a5   :  { %6618 = vmatprep.subr.bf16.mxu1 %v9365_v56 }
0x42a7   :  { %6615 = vmatmul.mubr.bf16.vlgmr.msra.gmra.mrb[108].mxu1 %v4134_v59 }
0x42a8   :  { %6619 = vmatpush3.bf16.msra.mxu1 %v9055_v8  ;;  %6634 = vmatprep.mubr.msk.bf16.mxu1 %vm7253_vm0, %v9365_v56  ;;  %v9381_v8 = vld [vmem:[#allocation29_spill] sm:$0xff] }
0x42a9   :  { %6620 = vmatprep.subr.bf16.mxu1 %v9365_v56 }
0x42ac   :  { %6621 = vmatpush3.bf16.msra.mxu1 %v9061_v28  ;;  %v9382_v28 = vld [vmem:[#allocation28_spill] sm:$0xff] }
0x42ad   :  { %6622 = vmatprep.subr.bf16.mxu1 %v9365_v56 }
0x42b0   :  { %6623 = vmatpush3.bf16.msra.mxu1 %v9065_v30  ;;  %v2706_v30 = vsub.f32 %v9382_v28, %v9381_v8 }
0x42b1   :  { %6624 = vmatprep.subr.bf16.mxu1 %v9365_v56 }
0x42b4   :  { %6625 = vmatpush3.bf16.msra.mxu1 %v9069_v41  ;;  %v2707_v41 = vmul.f32 1.442695, %v2706_v30 }
0x42b5   :  { %6626 = vmatprep.subr.bf16.mxu1 %v9365_v56 }
0x42b8   :  { %6627 = vmatpush3.bf16.msra.mxu1 %v9073_v46  ;;  %v3365_v46 = vmul.f32 1.442695, %v3364_v33 }
0x42b9   :  { %6628 = vmatprep.subr.bf16.mxu1 %v9365_v56 }
0x42bc   :  { %6629 = vmatpush3.bf16.msra.mxu1 %v9077_v54  ;;  %v4022_v54 = vsub.f32 %v9186_v25, %v9189_v61 }
0x42bd   :  { %6630 = vmatprep.subr.bf16.mxu1 %v9365_v56 }
0x42c0   :  { %6631 = vmatpush3.bf16.msra.mxu1 %v9081_v5 }
0x42c1   :  { %6632 = vmatprep.subr.bf16.mxu1 %v9365_v56 }
0x42c4   :  { %6633 = vmatpush3.bf16.msra.mxu1 %v9085_v38  ;;  %v4023_v38 = vmul.f32 1.442695, %v4022_v54 }
0x435a   :  { %v4169_v26 = vpop.f32.mrb[104].mxu1 }
0x435b   :  { %v6576_v34 = vpop.f32.mrb[105].mxu1  ;;  %v4175_v58 = vsel %vm8051_vm3, %v4169_v26, -1e+30 }
0x435c   :  { %4176 = vmax.xlane.f32.xlu1 %v4175_v58  ;;  %v4172_v35 = vpop.f32.mrb[106].mxu1 }
0x435d   :  { %v6577_v50 = vpop.f32.mrb[107].mxu1 }
0x435e   :  { %v9385_v50 = vld [vmem:[#allocation36_spill] sm:$0xff] }
0x43e9   :  { %v4177_v17 = vpop.xlane.xlu1 %4176 }
0x43ea   :  { %v4178_v22 = vsub.f32 %v4175_v58, %v4177_v17  ;;  %v9383_v58 = vld [vmem:[#allocation33_spill] sm:$0xff] }
0x43ec   :  { %v4179_v24 = vmul.f32 1.442695, %v4178_v22 }
0x43ee   :  { %6894 = vpow2.f32 %v4179_v24 }
0x43ef   :  { %6896 = vpow2.f32 %v2050_v55 }
0x43f0   :  { %6898 = vpow2.f32 %v2707_v41 }
0x43f1   :  { %6900 = vpow2.f32 %v3365_v46 }
0x43f2   :  { %6902 = vpow2.f32 %v4023_v38 }
0x43f8   :  { %v6895_v5 = vpop.eup %6894 }
0x43f9   :  { %4181 = vadd.xlane.f32.xlu0 %v6895_v5  ;;  %v6897_v40 = vpop.eup %6896 }
0x43fa   :  { %v6899_v32 = vpop.eup %6898 }
0x43fb   :  { %v6901_v42 = vpop.eup %6900 }
0x43fc   :  { %v6903_v51 = vpop.eup %6902 }
0x43fd   :  { %2052 = vadd.xlane.f32.xlu0 %v6897_v40 }
0x4401   :  { %2709 = vadd.xlane.f32.xlu0 %v6899_v32 }
0x4405   :  { %3367 = vadd.xlane.f32.xlu0 %v6901_v42 }
0x4409   :  { %4025 = vadd.xlane.f32.xlu0 %v6903_v51 }
0x4486   :  { %v4182_v12 = vpop.xlane.xlu0 %4181 }
0x4487   :  { %6904 = vrcp.f32 %v4182_v12 }
0x448a   :  { %v2053_v14 = vpop.xlane.xlu0 %2052 }
0x448b   :  { %6906 = vlog2.f32 %v2053_v14 }
0x448e   :  { %v2710_v27 = vpop.xlane.xlu0 %2709 }
0x448f   :  { %6908 = vlog2.f32 %v2710_v27 }
0x4491   :  { %v6905_v36 = vpop.eup %6904 }
0x4492   :  { %v3368_v37 = vpop.xlane.xlu0 %3367  ;;  %v4184_v10 = vmul.f32 %v6905_v36, %v6895_v5 }
0x4493   :  { %6910 = vlog2.f32 %v3368_v37 }
0x4494   :  { %v4185_v0 = vpack.c.bf16 %v4184_v10, %v4184_v10 }
0x4495   :  { %v6907_v45 = vpop.eup %6906 }
0x4496   :  { %v2055_v39 = vmul.f32 0.6931472, %v6907_v45  ;;  %6595 = vmatmul.mubr.bf16.vlgmr.msra.gmra.mrb[136].mxu0 %v4185_v0  ;;  %v4026_v44 = vpop.xlane.xlu0 %4025 }
0x4497   :  { %6912 = vlog2.f32 %v4026_v44  ;;  %6639 = vmatpush3.bf16.msra.mxu0 %v9091_v7  ;;  %6654 = vmatprep.mubr.msk.bf16.mxu0 %vm7253_vm0, %v9365_v56 }
0x4498   :  { %v2056_v43 = vadd.f32 %v2055_v39, %v9379_v49  ;;  %6640 = vmatprep.subr.bf16.mxu0 %v9365_v56 }
0x4499   :  { %v6909_v11 = vpop.eup %6908 }
0x449a   :  { %v2057_v47 = vsub.f32 %v9380_v52, %v2056_v43  ;;  %v2712_v29 = vmul.f32 0.6931472, %v6909_v11  ;;  %v3693_v52 = vsub.f32 %v8989_v62, %v8992_v60 }
0x449b   :  { %6641 = vmatpush3.bf16.msra.mxu0 %v9097_v19 }
0x449c   :  { %2058 = vst [vmem:[#allocation19] sm:$0xff] %v2057_v47  ;;  %v2713_v48 = vadd.f32 %v2712_v29, %v9381_v8  ;;  %6642 = vmatprep.subr.bf16.mxu0 %v9365_v56  ;;  %v3694_v1 = vmul.f32 1.442695, %v3693_v52 }
0x449d   :  { %v6911_v3 = vpop.eup %6910 }
0x449e   :  { %v2714_v7 = vsub.f32 %v9382_v28, %v2713_v48  ;;  %v3370_v31 = vmul.f32 0.6931472, %v6911_v3 }
0x449f   :  { %6643 = vmatpush3.bf16.msra.mxu0 %v9101_v15 }
0x44a0   :  { %2716 = vst [vmem:[#allocation19 + $0x10] sm:$0xff] %v2714_v7  ;;  %v3371_v2 = vadd.f32 %v3370_v31, %v8832_v63  ;;  %6644 = vmatprep.subr.bf16.mxu0 %v9365_v56 }
0x44a1   :  { %v6913_v4 = vpop.eup %6912 }
0x44a2   :  { %v3372_v6 = vsub.f32 %v8829_v9, %v3371_v2  ;;  %v4028_v19 = vmul.f32 0.6931472, %v6913_v4 }
0x44a3   :  { %6645 = vmatpush3.bf16.msra.mxu0 %v9105_v13 }
0x44a4   :  { %3374 = vst [vmem:[#allocation19 + $0x20] sm:$0xff] %v3372_v6  ;;  %v4029_v57 = vadd.f32 %v4028_v19, %v9189_v61  ;;  %6646 = vmatprep.subr.bf16.mxu0 %v9365_v56 }
0x44a6   :  { %v4030_v16 = vsub.f32 %v9186_v25, %v4029_v57 }
0x44a7   :  { %6647 = vmatpush3.bf16.msra.mxu0 %v9109_v20 }
0x44a8   :  { %4032 = vst [vmem:[#allocation19 + $0x30] sm:$0xff] %v4030_v16  ;;  %6648 = vmatprep.subr.bf16.mxu0 %v9365_v56 }
0x44ab   :  { %6649 = vmatpush3.bf16.msra.mxu0 %v9113_v21 }
0x44ac   :  { %6650 = vmatprep.subr.bf16.mxu0 %v9365_v56 }
0x44af   :  { %6651 = vmatpush3.bf16.msra.mxu0 %v9117_v23  ;;  %v9384_v23 = vld [vmem:[#allocation30_spill] sm:$0xff] }
0x44b0   :  { %6652 = vmatprep.subr.bf16.mxu0 %v9365_v56  ;;  %v2377_v35 = vsub.f32 %v9384_v23, %v9383_v58 }
0x44b2   :  { %v2378_v56 = vmul.f32 1.442695, %v2377_v35 }
0x44b3   :  { %6653 = vmatpush3.bf16.msra.mxu0 %v9121_v53  ;;  %v9386_v53 = vld [vmem:[#allocation35_spill] sm:$0xff] }
0x44b4   :  { %v3035_v17 = vsub.f32 %v9386_v53, %v9385_v50 }
0x44b6   :  { %v3036_v49 = vmul.f32 1.442695, %v3035_v17 }
0x4569   :  { %v4220_v9 = vpop.f32.mrb[136].mxu0 }
0x456a   :  { %v4226_v63 = vpack.c.bf16 %v4220_v9, %v4220_v9  ;;  %v6596_v15 = vpop.f32.mrb[137].mxu0 }
0x456b   :  { %v4223_v13 = vpop.f32.mrb[138].mxu0 }
0x456c   :  { %v6597_v25 = vpop.f32.mrb[139].mxu0  ;;  %6635 = vmatmul.mubr.bf16.vlgmr.msra.gmra.mrb[108].mxu1 %v4226_v63 }
0x463f   :  { %v4301_v20 = vpop.f32.mrb[108].mxu1 }
0x4640   :  { %6914 = vtanh.f32 %v4301_v20  ;;  %v6636_v61 = vpop.f32.mrb[109].mxu1 }
0x4641   :  { %v4304_v59 = vpop.f32.mrb[110].mxu1  ;;  %6916 = vpow2.f32 %v2378_v56 }
0x4642   :  { %v6637_v26 = vpop.f32.mrb[111].mxu1  ;;  %6918 = vpow2.f32 %v3036_v49 }
0x4643   :  { %6920 = vpow2.f32 %v3694_v1 }
0x464a   :  { %v6915_v21 = vpop.eup %6914 }
0x464b   :  { %v4308_v34 = vpack.c.bf16 %v6915_v21, %v6915_v21  ;;  %v6917_v30 = vpop.eup %6916 }
0x464c   :  { %v6919_v41 = vpop.eup %6918 }
0x464d   :  { %6655 = vmatmul.mubr.bf16.vlgmr.msra.gmra.mrb[140].mxu0 %v4308_v34  ;;  %v6921_v33 = vpop.eup %6920 }
0x4720   :  { %v4343_v22 = vpop.f32.mrb[140].mxu0 }
0x4721   :  { %v4344_v24 = vadd.f32 %v9183_v18, %v4343_v22  ;;  %v6656_v55 = vpop.f32.mrb[141].mxu0 }
0x4722   :  { %v4346_v8 = vpop.f32.mrb[142].mxu0 }
0x4723   :  { %4349 = vmax.xlane.f32.xlu1 %v4344_v24  ;;  %v6657_v28 = vpop.f32.mrb[143].mxu0 }
0x4727   :  { %2380 = vadd.xlane.f32.xlu1 %v6917_v30 }
0x472b   :  { %3038 = vadd.xlane.f32.xlu1 %v6919_v41 }
0x472f   :  { %3696 = vadd.xlane.f32.xlu1 %v6921_v33 }
0x47b0   :  { %v4350_v46 = vpop.xlane.xlu1 %4349 }
0x47b1   :  { %v4351_v54 = vsub.f32 %v4344_v24, %v4350_v46 }
0x47b3   :  { %v4352_v5 = vmul.f32 1.442695, %v4351_v54 }
0x47b4   :  { %v2381_v38 = vpop.xlane.xlu1 %2380 }
0x47b5   :  { %6922 = vpow2.f32 %v4352_v5 }
0x47b6   :  { %6924 = vlog2.f32 %v2381_v38 }
0x47b8   :  { %v3039_v40 = vpop.xlane.xlu1 %3038 }
0x47b9   :  { %6926 = vlog2.f32 %v3039_v40 }
0x47bc   :  { %v3697_v18 = vpop.xlane.xlu1 %3696 }
0x47bd   :  { %6928 = vlog2.f32 %v3697_v18 }
0x47bf   :  { %v6923_v32 = vpop.eup %6922 }
0x47c0   :  { %v6925_v42 = vpop.eup %6924  ;;  %4354 = vadd.xlane.f32.xlu1 %v6923_v32 }
0x47c1   :  { %v2383_v51 = vmul.f32 0.6931472, %v6925_v42 }
0x47c3   :  { %v6927_v12 = vpop.eup %6926  ;;  %v2384_v14 = vadd.f32 %v2383_v51, %v9383_v58 }
0x47c4   :  { %v3041_v27 = vmul.f32 0.6931472, %v6927_v12 }
0x47c5   :  { %v2385_v36 = vsub.f32 %v9384_v23, %v2384_v14 }
0x47c6   :  { %v3042_v37 = vadd.f32 %v3041_v27, %v9385_v50 }
0x47c7   :  { %v6929_v10 = vpop.eup %6928  ;;  %2387 = vst [vmem:[#allocation19 + $0x8] sm:$0xff] %v2385_v36 }
0x47c8   :  { %v3043_v0 = vsub.f32 %v9386_v53, %v3042_v37  ;;  %v3699_v45 = vmul.f32 0.6931472, %v6929_v10 }
0x47ca   :  { %3045 = vst [vmem:[#allocation19 + $0x18] sm:$0xff] %v3043_v0  ;;  %v3700_v39 = vadd.f32 %v3699_v45, %v8992_v60 }
0x47cc   :  { %v3701_v44 = vsub.f32 %v8989_v62, %v3700_v39 }
0x47ce   :  { %3703 = vst [vmem:[#allocation19 + $0x28] sm:$0xff] %v3701_v44 }
0x484d   :  { %v4355_v43 = vpop.xlane.xlu1 %4354 }
0x484e   :  { %6930 = vlog2.f32 %v4355_v43 }
0x4858   :  { %v6931_v11 = vpop.eup %6930 }
0x4859   :  { %v4357_v47 = vmul.f32 0.6931472, %v6931_v11 }
0x485b   :  { %v4358_v29 = vadd.f32 %v4357_v47, %v4350_v46 }
0x485d   :  { %v4359_v48 = vsub.f32 %v4344_v24, %v4358_v29 }
0x485f   :  { %4361 = vst [vmem:[#allocation19 + $0x38] sm:$0xff] %v4359_v48 }
0x4860   :  { %7216 = shalt.err (!%p7213_p6)
}
0x4861   :  { %s7217_s1 = scalar_lea.hbm %s9324_s12, 1024 }
0x4862   :  { %p7218_p7 = scmp.ne.s32.totalorder %s9324_s12, %s7217_s1  ;;  %p7221_p8 = scmp.lt.u32.totalorder %s7217_s1, %s9324_s12 }
0x4864   :  { %p7223_p9 = pnand %p7221_p8, %p7218_p7 }
0x4866   :  { %7226 = shalt.err (!%p7223_p9)
}
0x4867   :  { %4373 = dma.vmem_to_hbm [thread:$0]  %s4368_s25, 1024, %s9324_s12, [#allocation6], %s7246_s9, %s7246_s9, %s7247_s26  }
0x4868   :  { %7237 = dma.done.wait [#allocation6], 1024  }
0x4869   :  { %7238 = vsyncadd [#allocation6], 4294966272 }
0x486a   :  { %4377 = vsyncpa [#allocation5], 1 }
0x486b   :  { %4378 = vsyncpa [#allocation8], 1 }
0x486c   :  { %4379 = vsyncpa [#allocation11], 1 }
0x486d   :  { %4380 = vsyncpa [#allocation14], 1 }
0x486e   :  { %4381 = vsyncpa [#allocation17], 1 }
0x486f   :  { %4382 = vsyncpa [#allocation6], 1 }

</bundles_post_ra>
